<compile_context>
chip_gen: v7x
topology: tpu7x:2x2x1
jax: 0.10.0
libtpu: 0.0.40
codegen_flags: <defaults>
</compile_context>

<pallas_src>
import functools

import jax
import jax.numpy as jnp
from jax.experimental import pallas as pl
from jax.experimental.pallas import tpu as pltpu  # noqa: F401  (not needed at these sizes)

# ----------------------------- model config (small synthetic dims) ----------
IMG = 32           # image size (224 in the real model)
PATCH = 16         # patch size
IN_CH = 3
DIM = 32           # embed dim (768 in the real model)
DEPTH = 2          # transformer depth (12 in the real model)
HEADS = 4          # num heads (12 in the real model)
MLP_RATIO = 4
NUM_CLASSES = 7
EPS = 1e-6

GRID_HW = IMG // PATCH              # 2
NUM_PATCHES = GRID_HW * GRID_HW     # 4
N_TOK = NUM_PATCHES + 2             # 6 (cls + dist + patches)
HEAD_DIM = DIM // HEADS             # 8
HIDDEN = DIM * MLP_RATIO            # 128


# ----------------------------- small in-kernel helpers ----------------------
def _ln(x, g, b):
    """Row-wise LayerNorm; x:(M,D), g/b:(1,D)."""
    mu = jnp.mean(x, axis=-1, keepdims=True)
    xc = x - mu
    var = jnp.mean(xc * xc, axis=-1, keepdims=True)
    return xc * jax.lax.rsqrt(var + EPS) * g + b


def _gelu_erf(x):
    # exact (erf) GELU, matching torch.nn.GELU()
    return 0.5 * x * (1.0 + jax.lax.erf(x * 0.7071067811865476))


def _sigmoid(x):
    return 1.0 / (1.0 + jnp.exp(-x))


# ----------------------------- Pallas kernels -------------------------------
def _matmul_bias_kernel(a_ref, b_ref, bias_ref, o_ref):
    o_ref[...] = (jnp.dot(a_ref[...], b_ref[...],
                          preferred_element_type=jnp.float32) + bias_ref[...])


def matmul_bias(a, b, bias_1n):
    """o = a @ b + bias; a:(M,K) b:(K,N) bias:(1,N)."""
    m = a.shape[0]
    n = b.shape[1]
    return pl.pallas_call(
        _matmul_bias_kernel,
        out_shape=jax.ShapeDtypeStruct((m, n), jnp.float32),
    )(a, b, bias_1n)


def _block_kernel(x_ref, ln1_g, ln1_b, wq_ref, wk_ref, wv_ref, bq_ref, bk_ref,
                  bv_ref, wproj_ref, bproj_ref, ln2_g, ln2_b, fc1_w, fc1_b,
                  fc2_w, fc2_b, o_ref, *, batch, n_tok, dim, heads, head_dim):
    """One fused DeiT encoder block over the whole (B, N, D) slab in VMEM."""
    scale = float(head_dim) ** -0.5
    g1, b1 = ln1_g[...], ln1_b[...]
    g2, b2 = ln2_g[...], ln2_b[...]
    w1, fb1 = fc1_w[...], fc1_b[...]
    w2, fb2 = fc2_w[...], fc2_b[...]
    bproj = bproj_ref[...]

    for b in range(batch):                      # static unroll (B is tiny)
        x = x_ref[b]                            # (N, D)
        xn = _ln(x, g1, b1)
        # ---- multi-head self-attention; heads unrolled, per-head weight slabs
        acc = jnp.zeros((n_tok, dim), jnp.float32)
        for h in range(heads):
            q = (jnp.dot(xn, wq_ref[h], preferred_element_type=jnp.float32)
                 + bq_ref[h]) * scale
            k = jnp.dot(xn, wk_ref[h], preferred_element_type=jnp.float32) + bk_ref[h]
            v = jnp.dot(xn, wv_ref[h], preferred_element_type=jnp.float32) + bv_ref[h]
            s = jax.lax.dot_general(q, k, (((1,), (1,)), ((), ())),
                                    preferred_element_type=jnp.float32)  # (N, N)
            m = jnp.max(s, axis=-1, keepdims=True)
            e = jnp.exp(s - m)
            p = e * pl.reciprocal(jnp.sum(e, axis=-1, keepdims=True), approx=True)
            o_h = jnp.dot(p, v, preferred_element_type=jnp.float32)     # (N, hd)
            # fold the per-head output projection into the accumulation
            acc = acc + jnp.dot(o_h, wproj_ref[h],
                                preferred_element_type=jnp.float32)
        x = x + acc + bproj                     # residual (no layer-scale in DeiT)
        # ---- MLP branch
        xn = _ln(x, g2, b2)
        hmid = _gelu_erf(jnp.dot(xn, w1, preferred_element_type=jnp.float32) + fb1)
        y = jnp.dot(hmid, w2, preferred_element_type=jnp.float32) + fb2
        o_ref[b] = x + y


def transformer_block(h, blk):
    b = h.shape[0]
    kern = functools.partial(_block_kernel, batch=b, n_tok=N_TOK, dim=DIM,
                             heads=HEADS, head_dim=HEAD_DIM)
    return pl.pallas_call(
        kern,
        out_shape=jax.ShapeDtypeStruct((b, N_TOK, DIM), jnp.float32),
    )(h,
      blk["ln1_g"], blk["ln1_b"],
      blk["wq"], blk["wk"], blk["wv"], blk["bq"], blk["bk"], blk["bv"],
      blk["wproj"], blk["bproj"],
      blk["ln2_g"], blk["ln2_b"],
      blk["fc1_w"], blk["fc1_b"], blk["fc2_w"], blk["fc2_b"])


def _head_kernel(cls_ref, dist_ref, g_ref, b_ref, hw_ref, hb_ref, dw_ref,
                 db_ref, o_ref):
    """Final LN on cls & dist tokens, head / head_dist Linear(D,D), average."""
    c = _ln(cls_ref[...], g_ref[...], b_ref[...])
    d = _ln(dist_ref[...], g_ref[...], b_ref[...])
    hc = jnp.dot(c, hw_ref[...], preferred_element_type=jnp.float32) + hb_ref[...]
    hd = jnp.dot(d, dw_ref[...], preferred_element_type=jnp.float32) + db_ref[...]
    o_ref[...] = 0.5 * (hc + hd)


def head_fused(x_cls, x_dist, params):
    b = x_cls.shape[0]
    return pl.pallas_call(
        _head_kernel,
        out_shape=jax.ShapeDtypeStruct((b, DIM), jnp.float32),
    )(x_cls, x_dist, params["norm_g"], params["norm_b"],
      params["head_w"], params["head_b"],
      params["head_dist_w"], params["head_dist_b"])


def _lstm_phase_kernel(x_ref, wih_ref, whh_ref, b_ref, pw_ref, pb_ref, o_ref,
                       *, seq, dim):
    """Single-layer LSTM (PyTorch gate order i,f,g,o) + phase Linear, fused."""
    pw = pw_ref[...]
    pb = pb_ref[...]
    h = jnp.zeros((1, dim), jnp.float32)
    c = jnp.zeros((1, dim), jnp.float32)
    for t in range(seq):                        # static unroll (seq = batch, tiny)
        xt = x_ref[t]                           # (1, D)
        pre = [jnp.dot(xt, wih_ref[gi], preferred_element_type=jnp.float32)
               + jnp.dot(h, whh_ref[gi], preferred_element_type=jnp.float32)
               + b_ref[gi]
               for gi in range(4)]
        i_g = _sigmoid(pre[0])
        f_g = _sigmoid(pre[1])
        g_g = jnp.tanh(pre[2])
        o_g = _sigmoid(pre[3])
        c = f_g * c + i_g * g_g
        h = o_g * jnp.tanh(c)
        o_ref[t] = jnp.dot(h, pw, preferred_element_type=jnp.float32) + pb


def lstm_phase(feats, params):
    seq = feats.shape[0]
    kern = functools.partial(_lstm_phase_kernel, seq=seq, dim=DIM)
    out = pl.pallas_call(
        kern,
        out_shape=jax.ShapeDtypeStruct((seq, 1, NUM_CLASSES), jnp.float32),
    )(feats.reshape(seq, 1, DIM),
      params["lstm_wih"], params["lstm_whh"], params["lstm_b"],
      params["phase_w"], params["phase_b"])
    return out.reshape(seq, NUM_CLASSES)


# ----------------------------- parameters -----------------------------------
def build_params(key):
    ks = iter(jax.random.split(key, 48))
    std = 0.02

    def nrm(shape):
        return (std * jax.random.normal(next(ks), shape)).astype(jnp.float32)

    p = {}
    # patch embed: Conv2d(IN_CH, DIM, PATCH, PATCH) == per-patch matmul
    conv_w = nrm((DIM, IN_CH, PATCH, PATCH))
    p["patch_w"] = conv_w.reshape(DIM, -1).T             # (C*P*P, DIM)
    p["patch_b"] = nrm((DIM,)).reshape(1, DIM)
    p["cls_token"] = nrm((1, 1, DIM))
    p["dist_token"] = nrm((1, 1, DIM))
    p["pos_embed"] = nrm((1, N_TOK, DIM))                # abs pos embed (cls+dist+patches)

    blocks = []
    for _ in range(DEPTH):
        qkv_w = nrm((DIM, 3 * DIM))      # x @ qkv_w ; column order [q | k | v]
        qkv_b = nrm((3 * DIM,))
        proj_w = nrm((DIM, DIM))
        blk = {
            "ln1_g": jnp.ones((1, DIM), jnp.float32),
            "ln1_b": jnp.zeros((1, DIM), jnp.float32),
            "ln2_g": jnp.ones((1, DIM), jnp.float32),
            "ln2_b": jnp.zeros((1, DIM), jnp.float32),
            # per-head layouts (head on the leading axis) so the fused kernel
            # never slices the lane axis and never transposes.
            "wq": qkv_w[:, 0 * DIM:1 * DIM].reshape(DIM, HEADS, HEAD_DIM).transpose(1, 0, 2),
            "wk": qkv_w[:, 1 * DIM:2 * DIM].reshape(DIM, HEADS, HEAD_DIM).transpose(1, 0, 2),
            "wv": qkv_w[:, 2 * DIM:3 * DIM].reshape(DIM, HEADS, HEAD_DIM).transpose(1, 0, 2),
            "bq": qkv_b[0 * DIM:1 * DIM].reshape(HEADS, 1, HEAD_DIM),
            "bk": qkv_b[1 * DIM:2 * DIM].reshape(HEADS, 1, HEAD_DIM),
            "bv": qkv_b[2 * DIM:3 * DIM].reshape(HEADS, 1, HEAD_DIM),
            "wproj": proj_w.reshape(HEADS, HEAD_DIM, DIM),
            "bproj": nrm((DIM,)).reshape(1, DIM),
            "fc1_w": nrm((DIM, HIDDEN)),
            "fc1_b": nrm((HIDDEN,)).reshape(1, HIDDEN),
            "fc2_w": nrm((HIDDEN, DIM)),
            "fc2_b": nrm((DIM,)).reshape(1, DIM),
        }
        blocks.append(blk)
    p["blocks"] = blocks

    # final norm + the two replaced heads (Linear(D, D) each)
    p["norm_g"] = jnp.ones((1, DIM), jnp.float32)
    p["norm_b"] = jnp.zeros((1, DIM), jnp.float32)
    p["head_w"] = nrm((DIM, DIM))
    p["head_b"] = nrm((DIM,)).reshape(1, DIM)
    p["head_dist_w"] = nrm((DIM, DIM))
    p["head_dist_b"] = nrm((DIM,)).reshape(1, DIM)

    # LSTM: PyTorch layout is W_ih:(4H, In), W_hh:(4H, H), gate order [i,f,g,o].
    # Stored pre-transposed + per-gate so the kernel indexes gates on a leading axis.
    w_ih = nrm((4 * DIM, DIM))
    w_hh = nrm((4 * DIM, DIM))
    b_ih = nrm((4 * DIM,))
    b_hh = nrm((4 * DIM,))
    p["lstm_wih"] = w_ih.reshape(4, DIM, DIM).transpose(0, 2, 1)  # (4, In, H)
    p["lstm_whh"] = w_hh.reshape(4, DIM, DIM).transpose(0, 2, 1)  # (4, H, H)
    p["lstm_b"] = (b_ih + b_hh).reshape(4, 1, DIM)

    p["phase_w"] = nrm((DIM, NUM_CLASSES))
    p["phase_b"] = nrm((NUM_CLASSES,)).reshape(1, NUM_CLASSES)
    return p


# ----------------------------- forward ---------------------------------------
def deit_lstm_forward(x, params):
    """x: NCHW (B, C, H, W) -> (B, NUM_CLASSES)."""
    b = x.shape[0]
    # ---- patch embed: stride-PATCH conv == per-patch matmul (flatten c, kh, kw)
    patches = x.reshape(b, IN_CH, GRID_HW, PATCH, GRID_HW, PATCH)
    patches = patches.transpose(0, 2, 4, 1, 3, 5).reshape(
        b * NUM_PATCHES, IN_CH * PATCH * PATCH)
    tok = matmul_bias(patches, params["patch_w"], params["patch_b"])
    tok = tok.reshape(b, NUM_PATCHES, DIM)

    # ---- prepend cls + distillation tokens, add absolute positional embedding
    cls = jnp.broadcast_to(params["cls_token"], (b, 1, DIM))
    dist = jnp.broadcast_to(params["dist_token"], (b, 1, DIM))
    h = jnp.concatenate([cls, dist, tok], axis=1) + params["pos_embed"]  # (B, N, D)

    # ---- transformer blocks: one fused pallas_call each
    for blk in params["blocks"]:
        h = transformer_block(h, blk)

    # ---- final norm + head / head_dist (both Linear(D, D)) + eval-mode average
    feats = head_fused(h[:, 0, :], h[:, 1, :], params)      # (B, D)

    # ---- nn.LSTM on the 2-D (B, D) tensor = unbatched length-B sequence,
    #      then the phase linear. (flatten_parameters() is a no-op.)
    return lstm_phase(feats, params)                        # (B, NUM_CLASSES)


if __name__ == "__main__":
    key = jax.random.PRNGKey(0)
    k_in, k_par = jax.random.split(key)
    x = jax.random.normal(k_in, (2, IN_CH, IMG, IMG), dtype=jnp.float32)
    params = build_params(k_par)

    out = jax.jit(deit_lstm_forward)(x, params)
    jax.block_until_ready(out)
    assert out.shape == (2, NUM_CLASSES)
    assert bool(jnp.all(jnp.isfinite(out)))
    print("KERNEL_OK")
</pallas_src>

<mosaic_0001>
module attributes {stable_mosaic.version = 11 : i64} {
  func.func @_head_kernel(%arg0: memref<2x32xf32, #tpu.memory_space<vmem>>, %arg1: memref<2x32xf32, #tpu.memory_space<vmem>>, %arg2: memref<1x32xf32, #tpu.memory_space<vmem>>, %arg3: memref<1x32xf32, #tpu.memory_space<vmem>>, %arg4: memref<32x32xf32, #tpu.memory_space<vmem>>, %arg5: memref<1x32xf32, #tpu.memory_space<vmem>>, %arg6: memref<32x32xf32, #tpu.memory_space<vmem>>, %arg7: memref<1x32xf32, #tpu.memory_space<vmem>>, %arg8: memref<2x32xf32, #tpu.memory_space<vmem>>) attributes {dimension_semantics = [], scalar_prefetch = 0 : i64, scratch_operands = 0 : i64, tpu.core_type = #tpu.core_type<tc>} {
    %c0 = arith.constant 0 : index
    %c0_0 = arith.constant 0 : index
    %0 = vector.load %arg0[%c0, %c0_0] : memref<2x32xf32, #tpu.memory_space<vmem>>, vector<2x32xf32>
    %c0_1 = arith.constant 0 : index
    %c0_2 = arith.constant 0 : index
    %1 = vector.load %arg2[%c0_1, %c0_2] : memref<1x32xf32, #tpu.memory_space<vmem>>, vector<1x32xf32>
    %c0_3 = arith.constant 0 : index
    %c0_4 = arith.constant 0 : index
    %2 = vector.load %arg3[%c0_3, %c0_4] : memref<1x32xf32, #tpu.memory_space<vmem>>, vector<1x32xf32>
    %cst = arith.constant dense<0.000000e+00> : vector<2xf32>
    %3 = vector.multi_reduction <add>, %0, %cst [1] : vector<2x32xf32> to vector<2xf32>
    %4 = vector.shape_cast %3 : vector<2xf32> to vector<2x1xf32>
    %cst_5 = arith.constant 3.200000e+01 : f32
    %5 = vector.broadcast %cst_5 : f32 to vector<2x1xf32>
    %6 = arith.divf %4, %5 : vector<2x1xf32>
    %7 = vector.broadcast %6 : vector<2x1xf32> to vector<2x32xf32>
    %8 = arith.subf %0, %7 : vector<2x32xf32>
    %9 = arith.mulf %8, %8 : vector<2x32xf32>
    %cst_6 = arith.constant dense<0.000000e+00> : vector<2xf32>
    %10 = vector.multi_reduction <add>, %9, %cst_6 [1] : vector<2x32xf32> to vector<2xf32>
    %11 = vector.shape_cast %10 : vector<2xf32> to vector<2x1xf32>
    %cst_7 = arith.constant 3.200000e+01 : f32
    %12 = vector.broadcast %cst_7 : f32 to vector<2x1xf32>
    %13 = arith.divf %11, %12 : vector<2x1xf32>
    %cst_8 = arith.constant 9.99999997E-7 : f32
    %14 = vector.broadcast %cst_8 : f32 to vector<2x1xf32>
    %15 = arith.addf %13, %14 : vector<2x1xf32>
    %16 = math.rsqrt %15 : vector<2x1xf32>
    %17 = vector.broadcast %16 : vector<2x1xf32> to vector<2x32xf32>
    %18 = arith.mulf %8, %17 : vector<2x32xf32>
    %19 = vector.broadcast %1 : vector<1x32xf32> to vector<2x32xf32>
    %20 = arith.mulf %18, %19 : vector<2x32xf32>
    %21 = vector.broadcast %2 : vector<1x32xf32> to vector<2x32xf32>
    %22 = arith.addf %20, %21 : vector<2x32xf32>
    %c0_9 = arith.constant 0 : index
    %c0_10 = arith.constant 0 : index
    %23 = vector.load %arg1[%c0_9, %c0_10] : memref<2x32xf32, #tpu.memory_space<vmem>>, vector<2x32xf32>
    %c0_11 = arith.constant 0 : index
    %c0_12 = arith.constant 0 : index
    %24 = vector.load %arg2[%c0_11, %c0_12] : memref<1x32xf32, #tpu.memory_space<vmem>>, vector<1x32xf32>
    %c0_13 = arith.constant 0 : index
    %c0_14 = arith.constant 0 : index
    %25 = vector.load %arg3[%c0_13, %c0_14] : memref<1x32xf32, #tpu.memory_space<vmem>>, vector<1x32xf32>
    %cst_15 = arith.constant dense<0.000000e+00> : vector<2xf32>
    %26 = vector.multi_reduction <add>, %23, %cst_15 [1] : vector<2x32xf32> to vector<2xf32>
    %27 = vector.shape_cast %26 : vector<2xf32> to vector<2x1xf32>
    %cst_16 = arith.constant 3.200000e+01 : f32
    %28 = vector.broadcast %cst_16 : f32 to vector<2x1xf32>
    %29 = arith.divf %27, %28 : vector<2x1xf32>
    %30 = vector.broadcast %29 : vector<2x1xf32> to vector<2x32xf32>
    %31 = arith.subf %23, %30 : vector<2x32xf32>
    %32 = arith.mulf %31, %31 : vector<2x32xf32>
    %cst_17 = arith.constant dense<0.000000e+00> : vector<2xf32>
    %33 = vector.multi_reduction <add>, %32, %cst_17 [1] : vector<2x32xf32> to vector<2xf32>
    %34 = vector.shape_cast %33 : vector<2xf32> to vector<2x1xf32>
    %cst_18 = arith.constant 3.200000e+01 : f32
    %35 = vector.broadcast %cst_18 : f32 to vector<2x1xf32>
    %36 = arith.divf %34, %35 : vector<2x1xf32>
    %cst_19 = arith.constant 9.99999997E-7 : f32
    %37 = vector.broadcast %cst_19 : f32 to vector<2x1xf32>
    %38 = arith.addf %36, %37 : vector<2x1xf32>
    %39 = math.rsqrt %38 : vector<2x1xf32>
    %40 = vector.broadcast %39 : vector<2x1xf32> to vector<2x32xf32>
    %41 = arith.mulf %31, %40 : vector<2x32xf32>
    %42 = vector.broadcast %24 : vector<1x32xf32> to vector<2x32xf32>
    %43 = arith.mulf %41, %42 : vector<2x32xf32>
    %44 = vector.broadcast %25 : vector<1x32xf32> to vector<2x32xf32>
    %45 = arith.addf %43, %44 : vector<2x32xf32>
    %c0_20 = arith.constant 0 : index
    %c0_21 = arith.constant 0 : index
    %46 = vector.load %arg4[%c0_20, %c0_21] : memref<32x32xf32, #tpu.memory_space<vmem>>, vector<32x32xf32>
    %cst_22 = arith.constant dense<0.000000e+00> : vector<2x32xf32>
    %47 = tpu.matmul %22, %46, %cst_22 {dimension_numbers = #tpu.dot_dimension_numbers<[1], [0], [0], [1], [0, 0, 1, 1], [], []>} : vector<2x32xf32>, vector<32x32xf32>, vector<2x32xf32> -> vector<2x32xf32>
    %c0_23 = arith.constant 0 : index
    %c0_24 = arith.constant 0 : index
    %48 = vector.load %arg5[%c0_23, %c0_24] : memref<1x32xf32, #tpu.memory_space<vmem>>, vector<1x32xf32>
    %49 = vector.broadcast %48 : vector<1x32xf32> to vector<2x32xf32>
    %50 = arith.addf %47, %49 : vector<2x32xf32>
    %c0_25 = arith.constant 0 : index
    %c0_26 = arith.constant 0 : index
    %51 = vector.load %arg6[%c0_25, %c0_26] : memref<32x32xf32, #tpu.memory_space<vmem>>, vector<32x32xf32>
    %cst_27 = arith.constant dense<0.000000e+00> : vector<2x32xf32>
    %52 = tpu.matmul %45, %51, %cst_27 {dimension_numbers = #tpu.dot_dimension_numbers<[1], [0], [0], [1], [0, 0, 1, 1], [], []>} : vector<2x32xf32>, vector<32x32xf32>, vector<2x32xf32> -> vector<2x32xf32>
    %c0_28 = arith.constant 0 : index
    %c0_29 = arith.constant 0 : index
    %53 = vector.load %arg7[%c0_28, %c0_29] : memref<1x32xf32, #tpu.memory_space<vmem>>, vector<1x32xf32>
    %54 = vector.broadcast %53 : vector<1x32xf32> to vector<2x32xf32>
    %55 = arith.addf %52, %54 : vector<2x32xf32>
    %56 = arith.addf %50, %55 : vector<2x32xf32>
    %cst_30 = arith.constant 5.000000e-01 : f32
    %57 = vector.broadcast %cst_30 : f32 to vector<2x32xf32>
    %58 = arith.mulf %57, %56 : vector<2x32xf32>
    %c0_31 = arith.constant 0 : index
    %c0_32 = arith.constant 0 : index
    %59 = vector.load %arg8[%c0_31, %c0_32] : memref<2x32xf32, #tpu.memory_space<vmem>>, vector<2x32xf32>
    tpu.vector_store %arg8[%c0_31, %c0_32], %58 {strides = array<i32>} : memref<2x32xf32, #tpu.memory_space<vmem>>, vector<2x32xf32>,
    return
  }
}

module attributes {stable_mosaic.version = 11 : i64} {
  func.func @_matmul_bias_kernel(%arg0: memref<8x768xf32, #tpu.memory_space<vmem>>, %arg1: memref<768x32xf32, #tpu.memory_space<vmem>>, %arg2: memref<1x32xf32, #tpu.memory_space<vmem>>, %arg3: memref<8x32xf32, #tpu.memory_space<vmem>>) attributes {dimension_semantics = [], scalar_prefetch = 0 : i64, scratch_operands = 0 : i64, tpu.core_type = #tpu.core_type<tc>} {
    %c0 = arith.constant 0 : index
    %c0_0 = arith.constant 0 : index
    %0 = vector.load %arg0[%c0, %c0_0] : memref<8x768xf32, #tpu.memory_space<vmem>>, vector<8x768xf32>
    %c0_1 = arith.constant 0 : index
    %c0_2 = arith.constant 0 : index
    %1 = vector.load %arg1[%c0_1, %c0_2] : memref<768x32xf32, #tpu.memory_space<vmem>>, vector<768x32xf32>
    %cst = arith.constant dense<0.000000e+00> : vector<8x32xf32>
    %2 = tpu.matmul %0, %1, %cst {dimension_numbers = #tpu.dot_dimension_numbers<[1], [0], [0], [1], [0, 0, 1, 1], [], []>} : vector<8x768xf32>, vector<768x32xf32>, vector<8x32xf32> -> vector<8x32xf32>
    %c0_3 = arith.constant 0 : index
    %c0_4 = arith.constant 0 : index
    %3 = vector.load %arg2[%c0_3, %c0_4] : memref<1x32xf32, #tpu.memory_space<vmem>>, vector<1x32xf32>
    %4 = vector.broadcast %3 : vector<1x32xf32> to vector<8x32xf32>
    %5 = arith.addf %2, %4 : vector<8x32xf32>
    %c0_5 = arith.constant 0 : index
    %c0_6 = arith.constant 0 : index
    %6 = vector.load %arg3[%c0_5, %c0_6] : memref<8x32xf32, #tpu.memory_space<vmem>>, vector<8x32xf32>
    tpu.vector_store %arg3[%c0_5, %c0_6], %5 {strides = array<i32>} : memref<8x32xf32, #tpu.memory_space<vmem>>, vector<8x32xf32>,
    return
  }
}

module attributes {stable_mosaic.version = 11 : i64} {
  func.func @_block_kernel(%arg0: memref<2x6x32xf32, #tpu.memory_space<vmem>>, %arg1: memref<1x32xf32, #tpu.memory_space<vmem>>, %arg2: memref<1x32xf32, #tpu.memory_space<vmem>>, %arg3: memref<4x32x8xf32, #tpu.memory_space<vmem>>, %arg4: memref<4x32x8xf32, #tpu.memory_space<vmem>>, %arg5: memref<4x32x8xf32, #tpu.memory_space<vmem>>, %arg6: memref<4x1x8xf32, #tpu.memory_space<vmem>>, %arg7: memref<4x1x8xf32, #tpu.memory_space<vmem>>, %arg8: memref<4x1x8xf32, #tpu.memory_space<vmem>>, %arg9: memref<4x8x32xf32, #tpu.memory_space<vmem>>, %arg10: memref<1x32xf32, #tpu.memory_space<vmem>>, %arg11: memref<1x32xf32, #tpu.memory_space<vmem>>, %arg12: memref<1x32xf32, #tpu.memory_space<vmem>>, %arg13: memref<32x128xf32, #tpu.memory_space<vmem>>, %arg14: memref<1x128xf32, #tpu.memory_space<vmem>>, %arg15: memref<128x32xf32, #tpu.memory_space<vmem>>, %arg16: memref<1x32xf32, #tpu.memory_space<vmem>>, %arg17: memref<2x6x32xf32, #tpu.memory_space<vmem>>) attributes {dimension_semantics = [], scalar_prefetch = 0 : i64, scratch_operands = 0 : i64, tpu.core_type = #tpu.core_type<tc>} {
    %c0 = arith.constant 0 : index
    %c0_0 = arith.constant 0 : index
    %0 = vector.load %arg1[%c0, %c0_0] : memref<1x32xf32, #tpu.memory_space<vmem>>, vector<1x32xf32>
    %c0_1 = arith.constant 0 : index
    %c0_2 = arith.constant 0 : index
    %1 = vector.load %arg2[%c0_1, %c0_2] : memref<1x32xf32, #tpu.memory_space<vmem>>, vector<1x32xf32>
    %c0_3 = arith.constant 0 : index
    %c0_4 = arith.constant 0 : index
    %2 = vector.load %arg11[%c0_3, %c0_4] : memref<1x32xf32, #tpu.memory_space<vmem>>, vector<1x32xf32>
    %c0_5 = arith.constant 0 : index
    %c0_6 = arith.constant 0 : index
    %3 = vector.load %arg12[%c0_5, %c0_6] : memref<1x32xf32, #tpu.memory_space<vmem>>, vector<1x32xf32>
    %c0_7 = arith.constant 0 : index
    %c0_8 = arith.constant 0 : index
    %4 = vector.load %arg13[%c0_7, %c0_8] : memref<32x128xf32, #tpu.memory_space<vmem>>, vector<32x128xf32>
    %c0_9 = arith.constant 0 : index
    %c0_10 = arith.constant 0 : index
    %5 = vector.load %arg14[%c0_9, %c0_10] : memref<1x128xf32, #tpu.memory_space<vmem>>, vector<1x128xf32>
    %c0_11 = arith.constant 0 : index
    %c0_12 = arith.constant 0 : index
    %6 = vector.load %arg15[%c0_11, %c0_12] : memref<128x32xf32, #tpu.memory_space<vmem>>, vector<128x32xf32>
    %c0_13 = arith.constant 0 : index
    %c0_14 = arith.constant 0 : index
    %7 = vector.load %arg16[%c0_13, %c0_14] : memref<1x32xf32, #tpu.memory_space<vmem>>, vector<1x32xf32>
    %c0_15 = arith.constant 0 : index
    %c0_16 = arith.constant 0 : index
    %8 = vector.load %arg10[%c0_15, %c0_16] : memref<1x32xf32, #tpu.memory_space<vmem>>, vector<1x32xf32>
    %c0_17 = arith.constant 0 : index
    %c0_18 = arith.constant 0 : index
    %c0_19 = arith.constant 0 : index
    %9 = vector.load %arg0[%c0_17, %c0_18, %c0_19] : memref<2x6x32xf32, #tpu.memory_space<vmem>>, vector<1x6x32xf32>
    %10 = vector.shape_cast %9 : vector<1x6x32xf32> to vector<6x32xf32>
    %cst = arith.constant dense<0.000000e+00> : vector<6xf32>
    %11 = vector.multi_reduction <add>, %10, %cst [1] : vector<6x32xf32> to vector<6xf32>
    %12 = vector.shape_cast %11 : vector<6xf32> to vector<6x1xf32>
    %cst_20 = arith.constant 3.200000e+01 : f32
    %13 = vector.broadcast %cst_20 : f32 to vector<6x1xf32>
    %14 = arith.divf %12, %13 : vector<6x1xf32>
    %15 = vector.broadcast %14 : vector<6x1xf32> to vector<6x32xf32>
    %16 = arith.subf %10, %15 : vector<6x32xf32>
    %17 = arith.mulf %16, %16 : vector<6x32xf32>
    %cst_21 = arith.constant dense<0.000000e+00> : vector<6xf32>
    %18 = vector.multi_reduction <add>, %17, %cst_21 [1] : vector<6x32xf32> to vector<6xf32>
    %19 = vector.shape_cast %18 : vector<6xf32> to vector<6x1xf32>
    %cst_22 = arith.constant 3.200000e+01 : f32
    %20 = vector.broadcast %cst_22 : f32 to vector<6x1xf32>
    %21 = arith.divf %19, %20 : vector<6x1xf32>
    %cst_23 = arith.constant 9.99999997E-7 : f32
    %22 = vector.broadcast %cst_23 : f32 to vector<6x1xf32>
    %23 = arith.addf %21, %22 : vector<6x1xf32>
    %24 = math.rsqrt %23 : vector<6x1xf32>
    %25 = vector.broadcast %24 : vector<6x1xf32> to vector<6x32xf32>
    %26 = arith.mulf %16, %25 : vector<6x32xf32>
    %27 = vector.broadcast %0 : vector<1x32xf32> to vector<6x32xf32>
    %28 = arith.mulf %26, %27 : vector<6x32xf32>
    %29 = vector.broadcast %1 : vector<1x32xf32> to vector<6x32xf32>
    %30 = arith.addf %28, %29 : vector<6x32xf32>
    %cst_24 = arith.constant 0.000000e+00 : f32
    %31 = vector.broadcast %cst_24 : f32 to vector<6x32xf32>
    %c0_25 = arith.constant 0 : index
    %c0_26 = arith.constant 0 : index
    %c0_27 = arith.constant 0 : index
    %32 = vector.load %arg3[%c0_25, %c0_26, %c0_27] : memref<4x32x8xf32, #tpu.memory_space<vmem>>, vector<1x32x8xf32>
    %33 = vector.shape_cast %32 : vector<1x32x8xf32> to vector<32x8xf32>
    %cst_28 = arith.constant dense<0.000000e+00> : vector<6x8xf32>
    %34 = tpu.matmul %30, %33, %cst_28 {dimension_numbers = #tpu.dot_dimension_numbers<[1], [0], [0], [1], [0, 0, 1, 1], [], []>} : vector<6x32xf32>, vector<32x8xf32>, vector<6x8xf32> -> vector<6x8xf32>
    %c0_29 = arith.constant 0 : index
    %c0_30 = arith.constant 0 : index
    %c0_31 = arith.constant 0 : index
    %35 = vector.load %arg6[%c0_29, %c0_30, %c0_31] : memref<4x1x8xf32, #tpu.memory_space<vmem>>, vector<1x1x8xf32>
    %36 = vector.shape_cast %35 : vector<1x1x8xf32> to vector<1x8xf32>
    %37 = vector.broadcast %36 : vector<1x8xf32> to vector<6x8xf32>
    %38 = arith.addf %34, %37 : vector<6x8xf32>
    %cst_32 = arith.constant 0.353553385 : f32
    %39 = vector.broadcast %cst_32 : f32 to vector<6x8xf32>
    %40 = arith.mulf %38, %39 : vector<6x8xf32>
    %c0_33 = arith.constant 0 : index
    %c0_34 = arith.constant 0 : index
    %c0_35 = arith.constant 0 : index
    %41 = vector.load %arg4[%c0_33, %c0_34, %c0_35] : memref<4x32x8xf32, #tpu.memory_space<vmem>>, vector<1x32x8xf32>
    %42 = vector.shape_cast %41 : vector<1x32x8xf32> to vector<32x8xf32>
    %cst_36 = arith.constant dense<0.000000e+00> : vector<6x8xf32>
    %43 = tpu.matmul %30, %42, %cst_36 {dimension_numbers = #tpu.dot_dimension_numbers<[1], [0], [0], [1], [0, 0, 1, 1], [], []>} : vector<6x32xf32>, vector<32x8xf32>, vector<6x8xf32> -> vector<6x8xf32>
    %c0_37 = arith.constant 0 : index
    %c0_38 = arith.constant 0 : index
    %c0_39 = arith.constant 0 : index
    %44 = vector.load %arg7[%c0_37, %c0_38, %c0_39] : memref<4x1x8xf32, #tpu.memory_space<vmem>>, vector<1x1x8xf32>
    %45 = vector.shape_cast %44 : vector<1x1x8xf32> to vector<1x8xf32>
    %46 = vector.broadcast %45 : vector<1x8xf32> to vector<6x8xf32>
    %47 = arith.addf %43, %46 : vector<6x8xf32>
    %c0_40 = arith.constant 0 : index
    %c0_41 = arith.constant 0 : index
    %c0_42 = arith.constant 0 : index
    %48 = vector.load %arg5[%c0_40, %c0_41, %c0_42] : memref<4x32x8xf32, #tpu.memory_space<vmem>>, vector<1x32x8xf32>
    %49 = vector.shape_cast %48 : vector<1x32x8xf32> to vector<32x8xf32>
    %cst_43 = arith.constant dense<0.000000e+00> : vector<6x8xf32>
    %50 = tpu.matmul %30, %49, %cst_43 {dimension_numbers = #tpu.dot_dimension_numbers<[1], [0], [0], [1], [0, 0, 1, 1], [], []>} : vector<6x32xf32>, vector<32x8xf32>, vector<6x8xf32> -> vector<6x8xf32>
    %c0_44 = arith.constant 0 : index
    %c0_45 = arith.constant 0 : index
    %c0_46 = arith.constant 0 : index
    %51 = vector.load %arg8[%c0_44, %c0_45, %c0_46] : memref<4x1x8xf32, #tpu.memory_space<vmem>>, vector<1x1x8xf32>
    %52 = vector.shape_cast %51 : vector<1x1x8xf32> to vector<1x8xf32>
    %53 = vector.broadcast %52 : vector<1x8xf32> to vector<6x8xf32>
    %54 = arith.addf %50, %53 : vector<6x8xf32>
    %cst_47 = arith.constant dense<0.000000e+00> : vector<6x6xf32>
    %55 = tpu.matmul %40, %47, %cst_47 {dimension_numbers = #tpu.dot_dimension_numbers<[1], [1], [0], [0], [0, 0, 1, 0], [], []>} : vector<6x8xf32>, vector<6x8xf32>, vector<6x6xf32> -> vector<6x6xf32>
    %cst_48 = arith.constant dense<0xFF800000> : vector<6xf32>
    %56 = vector.multi_reduction <maximumf>, %55, %cst_48 [1] : vector<6x6xf32> to vector<6xf32>
    %57 = vector.shape_cast %56 : vector<6xf32> to vector<6x1xf32>
    %58 = vector.broadcast %57 : vector<6x1xf32> to vector<6x6xf32>
    %59 = arith.subf %55, %58 : vector<6x6xf32>
    %60 = math.exp %59 : vector<6x6xf32>
    %cst_49 = arith.constant dense<0.000000e+00> : vector<6xf32>
    %61 = vector.multi_reduction <add>, %60, %cst_49 [1] : vector<6x6xf32> to vector<6xf32>
    %62 = vector.shape_cast %61 : vector<6xf32> to vector<6x1xf32>
    %63 = tpu.reciprocal %62 {approx = true} : vector<6x1xf32> -> vector<6x1xf32>
    %64 = vector.broadcast %63 : vector<6x1xf32> to vector<6x6xf32>
    %65 = arith.mulf %60, %64 : vector<6x6xf32>
    %cst_50 = arith.constant dense<0.000000e+00> : vector<6x8xf32>
    %66 = tpu.matmul %65, %54, %cst_50 {dimension_numbers = #tpu.dot_dimension_numbers<[1], [0], [0], [1], [0, 0, 1, 1], [], []>} : vector<6x6xf32>, vector<6x8xf32>, vector<6x8xf32> -> vector<6x8xf32>
    %c0_51 = arith.constant 0 : index
    %c0_52 = arith.constant 0 : index
    %c0_53 = arith.constant 0 : index
    %67 = vector.load %arg9[%c0_51, %c0_52, %c0_53] : memref<4x8x32xf32, #tpu.memory_space<vmem>>, vector<1x8x32xf32>
    %68 = vector.shape_cast %67 : vector<1x8x32xf32> to vector<8x32xf32>
    %cst_54 = arith.constant dense<0.000000e+00> : vector<6x32xf32>
    %69 = tpu.matmul %66, %68, %cst_54 {dimension_numbers = #tpu.dot_dimension_numbers<[1], [0], [0], [1], [0, 0, 1, 1], [], []>} : vector<6x8xf32>, vector<8x32xf32>, vector<6x32xf32> -> vector<6x32xf32>
    %70 = arith.addf %31, %69 : vector<6x32xf32>
    %c1 = arith.constant 1 : index
    %c0_55 = arith.constant 0 : index
    %c0_56 = arith.constant 0 : index
    %71 = vector.load %arg3[%c1, %c0_55, %c0_56] : memref<4x32x8xf32, #tpu.memory_space<vmem>>, vector<1x32x8xf32>
    %72 = vector.shape_cast %71 : vector<1x32x8xf32> to vector<32x8xf32>
    %cst_57 = arith.constant dense<0.000000e+00> : vector<6x8xf32>
    %73 = tpu.matmul %30, %72, %cst_57 {dimension_numbers = #tpu.dot_dimension_numbers<[1], [0], [0], [1], [0, 0, 1, 1], [], []>} : vector<6x32xf32>, vector<32x8xf32>, vector<6x8xf32> -> vector<6x8xf32>
    %c1_58 = arith.constant 1 : index
    %c0_59 = arith.constant 0 : index
    %c0_60 = arith.constant 0 : index
    %74 = vector.load %arg6[%c1_58, %c0_59, %c0_60] : memref<4x1x8xf32, #tpu.memory_space<vmem>>, vector<1x1x8xf32>
    %75 = vector.shape_cast %74 : vector<1x1x8xf32> to vector<1x8xf32>
    %76 = vector.broadcast %75 : vector<1x8xf32> to vector<6x8xf32>
    %77 = arith.addf %73, %76 : vector<6x8xf32>
    %cst_61 = arith.constant 0.353553385 : f32
    %78 = vector.broadcast %cst_61 : f32 to vector<6x8xf32>
    %79 = arith.mulf %77, %78 : vector<6x8xf32>
    %c1_62 = arith.constant 1 : index
    %c0_63 = arith.constant 0 : index
    %c0_64 = arith.constant 0 : index
    %80 = vector.load %arg4[%c1_62, %c0_63, %c0_64] : memref<4x32x8xf32, #tpu.memory_space<vmem>>, vector<1x32x8xf32>
    %81 = vector.shape_cast %80 : vector<1x32x8xf32> to vector<32x8xf32>
    %cst_65 = arith.constant dense<0.000000e+00> : vector<6x8xf32>
    %82 = tpu.matmul %30, %81, %cst_65 {dimension_numbers = #tpu.dot_dimension_numbers<[1], [0], [0], [1], [0, 0, 1, 1], [], []>} : vector<6x32xf32>, vector<32x8xf32>, vector<6x8xf32> -> vector<6x8xf32>
    %c1_66 = arith.constant 1 : index
    %c0_67 = arith.constant 0 : index
    %c0_68 = arith.constant 0 : index
    %83 = vector.load %arg7[%c1_66, %c0_67, %c0_68] : memref<4x1x8xf32, #tpu.memory_space<vmem>>, vector<1x1x8xf32>
    %84 = vector.shape_cast %83 : vector<1x1x8xf32> to vector<1x8xf32>
    %85 = vector.broadcast %84 : vector<1x8xf32> to vector<6x8xf32>
    %86 = arith.addf %82, %85 : vector<6x8xf32>
    %c1_69 = arith.constant 1 : index
    %c0_70 = arith.constant 0 : index
    %c0_71 = arith.constant 0 : index
    %87 = vector.load %arg5[%c1_69, %c0_70, %c0_71] : memref<4x32x8xf32, #tpu.memory_space<vmem>>, vector<1x32x8xf32>
    %88 = vector.shape_cast %87 : vector<1x32x8xf32> to vector<32x8xf32>
    %cst_72 = arith.constant dense<0.000000e+00> : vector<6x8xf32>
    %89 = tpu.matmul %30, %88, %cst_72 {dimension_numbers = #tpu.dot_dimension_numbers<[1], [0], [0], [1], [0, 0, 1, 1], [], []>} : vector<6x32xf32>, vector<32x8xf32>, vector<6x8xf32> -> vector<6x8xf32>
    %c1_73 = arith.constant 1 : index
    %c0_74 = arith.constant 0 : index
    %c0_75 = arith.constant 0 : index
    %90 = vector.load %arg8[%c1_73, %c0_74, %c0_75] : memref<4x1x8xf32, #tpu.memory_space<vmem>>, vector<1x1x8xf32>
    %91 = vector.shape_cast %90 : vector<1x1x8xf32> to vector<1x8xf32>
    %92 = vector.broadcast %91 : vector<1x8xf32> to vector<6x8xf32>
    %93 = arith.addf %89, %92 : vector<6x8xf32>
    %cst_76 = arith.constant dense<0.000000e+00> : vector<6x6xf32>
    %94 = tpu.matmul %79, %86, %cst_76 {dimension_numbers = #tpu.dot_dimension_numbers<[1], [1], [0], [0], [0, 0, 1, 0], [], []>} : vector<6x8xf32>, vector<6x8xf32>, vector<6x6xf32> -> vector<6x6xf32>
    %cst_77 = arith.constant dense<0xFF800000> : vector<6xf32>
    %95 = vector.multi_reduction <maximumf>, %94, %cst_77 [1] : vector<6x6xf32> to vector<6xf32>
    %96 = vector.shape_cast %95 : vector<6xf32> to vector<6x1xf32>
    %97 = vector.broadcast %96 : vector<6x1xf32> to vector<6x6xf32>
    %98 = arith.subf %94, %97 : vector<6x6xf32>
    %99 = math.exp %98 : vector<6x6xf32>
    %cst_78 = arith.constant dense<0.000000e+00> : vector<6xf32>
    %100 = vector.multi_reduction <add>, %99, %cst_78 [1] : vector<6x6xf32> to vector<6xf32>
    %101 = vector.shape_cast %100 : vector<6xf32> to vector<6x1xf32>
    %102 = tpu.reciprocal %101 {approx = true} : vector<6x1xf32> -> vector<6x1xf32>
    %103 = vector.broadcast %102 : vector<6x1xf32> to vector<6x6xf32>
    %104 = arith.mulf %99, %103 : vector<6x6xf32>
    %cst_79 = arith.constant dense<0.000000e+00> : vector<6x8xf32>
    %105 = tpu.matmul %104, %93, %cst_79 {dimension_numbers = #tpu.dot_dimension_numbers<[1], [0], [0], [1], [0, 0, 1, 1], [], []>} : vector<6x6xf32>, vector<6x8xf32>, vector<6x8xf32> -> vector<6x8xf32>
    %c1_80 = arith.constant 1 : index
    %c0_81 = arith.constant 0 : index
    %c0_82 = arith.constant 0 : index
    %106 = vector.load %arg9[%c1_80, %c0_81, %c0_82] : memref<4x8x32xf32, #tpu.memory_space<vmem>>, vector<1x8x32xf32>
    %107 = vector.shape_cast %106 : vector<1x8x32xf32> to vector<8x32xf32>
    %cst_83 = arith.constant dense<0.000000e+00> : vector<6x32xf32>
    %108 = tpu.matmul %105, %107, %cst_83 {dimension_numbers = #tpu.dot_dimension_numbers<[1], [0], [0], [1], [0, 0, 1, 1], [], []>} : vector<6x8xf32>, vector<8x32xf32>, vector<6x32xf32> -> vector<6x32xf32>
    %109 = arith.addf %70, %108 : vector<6x32xf32>
    %c2 = arith.constant 2 : index
    %c0_84 = arith.constant 0 : index
    %c0_85 = arith.constant 0 : index
    %110 = vector.load %arg3[%c2, %c0_84, %c0_85] : memref<4x32x8xf32, #tpu.memory_space<vmem>>, vector<1x32x8xf32>
    %111 = vector.shape_cast %110 : vector<1x32x8xf32> to vector<32x8xf32>
    %cst_86 = arith.constant dense<0.000000e+00> : vector<6x8xf32>
    %112 = tpu.matmul %30, %111, %cst_86 {dimension_numbers = #tpu.dot_dimension_numbers<[1], [0], [0], [1], [0, 0, 1, 1], [], []>} : vector<6x32xf32>, vector<32x8xf32>, vector<6x8xf32> -> vector<6x8xf32>
    %c2_87 = arith.constant 2 : index
    %c0_88 = arith.constant 0 : index
    %c0_89 = arith.constant 0 : index
    %113 = vector.load %arg6[%c2_87, %c0_88, %c0_89] : memref<4x1x8xf32, #tpu.memory_space<vmem>>, vector<1x1x8xf32>
    %114 = vector.shape_cast %113 : vector<1x1x8xf32> to vector<1x8xf32>
    %115 = vector.broadcast %114 : vector<1x8xf32> to vector<6x8xf32>
    %116 = arith.addf %112, %115 : vector<6x8xf32>
    %cst_90 = arith.constant 0.353553385 : f32
    %117 = vector.broadcast %cst_90 : f32 to vector<6x8xf32>
    %118 = arith.mulf %116, %117 : vector<6x8xf32>
    %c2_91 = arith.constant 2 : index
    %c0_92 = arith.constant 0 : index
    %c0_93 = arith.constant 0 : index
    %119 = vector.load %arg4[%c2_91, %c0_92, %c0_93] : memref<4x32x8xf32, #tpu.memory_space<vmem>>, vector<1x32x8xf32>
    %120 = vector.shape_cast %119 : vector<1x32x8xf32> to vector<32x8xf32>
    %cst_94 = arith.constant dense<0.000000e+00> : vector<6x8xf32>
    %121 = tpu.matmul %30, %120, %cst_94 {dimension_numbers = #tpu.dot_dimension_numbers<[1], [0], [0], [1], [0, 0, 1, 1], [], []>} : vector<6x32xf32>, vector<32x8xf32>, vector<6x8xf32> -> vector<6x8xf32>
    %c2_95 = arith.constant 2 : index
    %c0_96 = arith.constant 0 : index
    %c0_97 = arith.constant 0 : index
    %122 = vector.load %arg7[%c2_95, %c0_96, %c0_97] : memref<4x1x8xf32, #tpu.memory_space<vmem>>, vector<1x1x8xf32>
    %123 = vector.shape_cast %122 : vector<1x1x8xf32> to vector<1x8xf32>
    %124 = vector.broadcast %123 : vector<1x8xf32> to vector<6x8xf32>
    %125 = arith.addf %121, %124 : vector<6x8xf32>
    %c2_98 = arith.constant 2 : index
    %c0_99 = arith.constant 0 : index
    %c0_100 = arith.constant 0 : index
    %126 = vector.load %arg5[%c2_98, %c0_99, %c0_100] : memref<4x32x8xf32, #tpu.memory_space<vmem>>, vector<1x32x8xf32>
    %127 = vector.shape_cast %126 : vector<1x32x8xf32> to vector<32x8xf32>
    %cst_101 = arith.constant dense<0.000000e+00> : vector<6x8xf32>
    %128 = tpu.matmul %30, %127, %cst_101 {dimension_numbers = #tpu.dot_dimension_numbers<[1], [0], [0], [1], [0, 0, 1, 1], [], []>} : vector<6x32xf32>, vector<32x8xf32>, vector<6x8xf32> -> vector<6x8xf32>
    %c2_102 = arith.constant 2 : index
    %c0_103 = arith.constant 0 : index
    %c0_104 = arith.constant 0 : index
    %129 = vector.load %arg8[%c2_102, %c0_103, %c0_104] : memref<4x1x8xf32, #tpu.memory_space<vmem>>, vector<1x1x8xf32>
    %130 = vector.shape_cast %129 : vector<1x1x8xf32> to vector<1x8xf32>
    %131 = vector.broadcast %130 : vector<1x8xf32> to vector<6x8xf32>
    %132 = arith.addf %128, %131 : vector<6x8xf32>
    %cst_105 = arith.constant dense<0.000000e+00> : vector<6x6xf32>
    %133 = tpu.matmul %118, %125, %cst_105 {dimension_numbers = #tpu.dot_dimension_numbers<[1], [1], [0], [0], [0, 0, 1, 0], [], []>} : vector<6x8xf32>, vector<6x8xf32>, vector<6x6xf32> -> vector<6x6xf32>
    %cst_106 = arith.constant dense<0xFF800000> : vector<6xf32>
    %134 = vector.multi_reduction <maximumf>, %133, %cst_106 [1] : vector<6x6xf32> to vector<6xf32>
    %135 = vector.shape_cast %134 : vector<6xf32> to vector<6x1xf32>
    %136 = vector.broadcast %135 : vector<6x1xf32> to vector<6x6xf32>
    %137 = arith.subf %133, %136 : vector<6x6xf32>
    %138 = math.exp %137 : vector<6x6xf32>
    %cst_107 = arith.constant dense<0.000000e+00> : vector<6xf32>
    %139 = vector.multi_reduction <add>, %138, %cst_107 [1] : vector<6x6xf32> to vector<6xf32>
    %140 = vector.shape_cast %139 : vector<6xf32> to vector<6x1xf32>
    %141 = tpu.reciprocal %140 {approx = true} : vector<6x1xf32> -> vector<6x1xf32>
    %142 = vector.broadcast %141 : vector<6x1xf32> to vector<6x6xf32>
    %143 = arith.mulf %138, %142 : vector<6x6xf32>
    %cst_108 = arith.constant dense<0.000000e+00> : vector<6x8xf32>
    %144 = tpu.matmul %143, %132, %cst_108 {dimension_numbers = #tpu.dot_dimension_numbers<[1], [0], [0], [1], [0, 0, 1, 1], [], []>} : vector<6x6xf32>, vector<6x8xf32>, vector<6x8xf32> -> vector<6x8xf32>
    %c2_109 = arith.constant 2 : index
    %c0_110 = arith.constant 0 : index
    %c0_111 = arith.constant 0 : index
    %145 = vector.load %arg9[%c2_109, %c0_110, %c0_111] : memref<4x8x32xf32, #tpu.memory_space<vmem>>, vector<1x8x32xf32>
    %146 = vector.shape_cast %145 : vector<1x8x32xf32> to vector<8x32xf32>
    %cst_112 = arith.constant dense<0.000000e+00> : vector<6x32xf32>
    %147 = tpu.matmul %144, %146, %cst_112 {dimension_numbers = #tpu.dot_dimension_numbers<[1], [0], [0], [1], [0, 0, 1, 1], [], []>} : vector<6x8xf32>, vector<8x32xf32>, vector<6x32xf32> -> vector<6x32xf32>
    %148 = arith.addf %109, %147 : vector<6x32xf32>
    %c3 = arith.constant 3 : index
    %c0_113 = arith.constant 0 : index
    %c0_114 = arith.constant 0 : index
    %149 = vector.load %arg3[%c3, %c0_113, %c0_114] : memref<4x32x8xf32, #tpu.memory_space<vmem>>, vector<1x32x8xf32>
    %150 = vector.shape_cast %149 : vector<1x32x8xf32> to vector<32x8xf32>
    %cst_115 = arith.constant dense<0.000000e+00> : vector<6x8xf32>
    %151 = tpu.matmul %30, %150, %cst_115 {dimension_numbers = #tpu.dot_dimension_numbers<[1], [0], [0], [1], [0, 0, 1, 1], [], []>} : vector<6x32xf32>, vector<32x8xf32>, vector<6x8xf32> -> vector<6x8xf32>
    %c3_116 = arith.constant 3 : index
    %c0_117 = arith.constant 0 : index
    %c0_118 = arith.constant 0 : index
    %152 = vector.load %arg6[%c3_116, %c0_117, %c0_118] : memref<4x1x8xf32, #tpu.memory_space<vmem>>, vector<1x1x8xf32>
    %153 = vector.shape_cast %152 : vector<1x1x8xf32> to vector<1x8xf32>
    %154 = vector.broadcast %153 : vector<1x8xf32> to vector<6x8xf32>
    %155 = arith.addf %151, %154 : vector<6x8xf32>
    %cst_119 = arith.constant 0.353553385 : f32
    %156 = vector.broadcast %cst_119 : f32 to vector<6x8xf32>
    %157 = arith.mulf %155, %156 : vector<6x8xf32>
    %c3_120 = arith.constant 3 : index
    %c0_121 = arith.constant 0 : index
    %c0_122 = arith.constant 0 : index
    %158 = vector.load %arg4[%c3_120, %c0_121, %c0_122] : memref<4x32x8xf32, #tpu.memory_space<vmem>>, vector<1x32x8xf32>
    %159 = vector.shape_cast %158 : vector<1x32x8xf32> to vector<32x8xf32>
    %cst_123 = arith.constant dense<0.000000e+00> : vector<6x8xf32>
    %160 = tpu.matmul %30, %159, %cst_123 {dimension_numbers = #tpu.dot_dimension_numbers<[1], [0], [0], [1], [0, 0, 1, 1], [], []>} : vector<6x32xf32>, vector<32x8xf32>, vector<6x8xf32> -> vector<6x8xf32>
    %c3_124 = arith.constant 3 : index
    %c0_125 = arith.constant 0 : index
    %c0_126 = arith.constant 0 : index
    %161 = vector.load %arg7[%c3_124, %c0_125, %c0_126] : memref<4x1x8xf32, #tpu.memory_space<vmem>>, vector<1x1x8xf32>
    %162 = vector.shape_cast %161 : vector<1x1x8xf32> to vector<1x8xf32>
    %163 = vector.broadcast %162 : vector<1x8xf32> to vector<6x8xf32>
    %164 = arith.addf %160, %163 : vector<6x8xf32>
    %c3_127 = arith.constant 3 : index
    %c0_128 = arith.constant 0 : index
    %c0_129 = arith.constant 0 : index
    %165 = vector.load %arg5[%c3_127, %c0_128, %c0_129] : memref<4x32x8xf32, #tpu.memory_space<vmem>>, vector<1x32x8xf32>
    %166 = vector.shape_cast %165 : vector<1x32x8xf32> to vector<32x8xf32>
    %cst_130 = arith.constant dense<0.000000e+00> : vector<6x8xf32>
    %167 = tpu.matmul %30, %166, %cst_130 {dimension_numbers = #tpu.dot_dimension_numbers<[1], [0], [0], [1], [0, 0, 1, 1], [], []>} : vector<6x32xf32>, vector<32x8xf32>, vector<6x8xf32> -> vector<6x8xf32>
    %c3_131 = arith.constant 3 : index
    %c0_132 = arith.constant 0 : index
    %c0_133 = arith.constant 0 : index
    %168 = vector.load %arg8[%c3_131, %c0_132, %c0_133] : memref<4x1x8xf32, #tpu.memory_space<vmem>>, vector<1x1x8xf32>
    %169 = vector.shape_cast %168 : vector<1x1x8xf32> to vector<1x8xf32>
    %170 = vector.broadcast %169 : vector<1x8xf32> to vector<6x8xf32>
    %171 = arith.addf %167, %170 : vector<6x8xf32>
    %cst_134 = arith.constant dense<0.000000e+00> : vector<6x6xf32>
    %172 = tpu.matmul %157, %164, %cst_134 {dimension_numbers = #tpu.dot_dimension_numbers<[1], [1], [0], [0], [0, 0, 1, 0], [], []>} : vector<6x8xf32>, vector<6x8xf32>, vector<6x6xf32> -> vector<6x6xf32>
    %cst_135 = arith.constant dense<0xFF800000> : vector<6xf32>
    %173 = vector.multi_reduction <maximumf>, %172, %cst_135 [1] : vector<6x6xf32> to vector<6xf32>
    %174 = vector.shape_cast %173 : vector<6xf32> to vector<6x1xf32>
    %175 = vector.broadcast %174 : vector<6x1xf32> to vector<6x6xf32>
    %176 = arith.subf %172, %175 : vector<6x6xf32>
    %177 = math.exp %176 : vector<6x6xf32>
    %cst_136 = arith.constant dense<0.000000e+00> : vector<6xf32>
    %178 = vector.multi_reduction <add>, %177, %cst_136 [1] : vector<6x6xf32> to vector<6xf32>
    %179 = vector.shape_cast %178 : vector<6xf32> to vector<6x1xf32>
    %180 = tpu.reciprocal %179 {approx = true} : vector<6x1xf32> -> vector<6x1xf32>
    %181 = vector.broadcast %180 : vector<6x1xf32> to vector<6x6xf32>
    %182 = arith.mulf %177, %181 : vector<6x6xf32>
    %cst_137 = arith.constant dense<0.000000e+00> : vector<6x8xf32>
    %183 = tpu.matmul %182, %171, %cst_137 {dimension_numbers = #tpu.dot_dimension_numbers<[1], [0], [0], [1], [0, 0, 1, 1], [], []>} : vector<6x6xf32>, vector<6x8xf32>, vector<6x8xf32> -> vector<6x8xf32>
    %c3_138 = arith.constant 3 : index
    %c0_139 = arith.constant 0 : index
    %c0_140 = arith.constant 0 : index
    %184 = vector.load %arg9[%c3_138, %c0_139, %c0_140] : memref<4x8x32xf32, #tpu.memory_space<vmem>>, vector<1x8x32xf32>
    %185 = vector.shape_cast %184 : vector<1x8x32xf32> to vector<8x32xf32>
    %cst_141 = arith.constant dense<0.000000e+00> : vector<6x32xf32>
    %186 = tpu.matmul %183, %185, %cst_141 {dimension_numbers = #tpu.dot_dimension_numbers<[1], [0], [0], [1], [0, 0, 1, 1], [], []>} : vector<6x8xf32>, vector<8x32xf32>, vector<6x32xf32> -> vector<6x32xf32>
    %187 = arith.addf %148, %186 : vector<6x32xf32>
    %188 = arith.addf %10, %187 : vector<6x32xf32>
    %189 = vector.broadcast %8 : vector<1x32xf32> to vector<6x32xf32>
    %190 = arith.addf %188, %189 : vector<6x32xf32>
    %cst_142 = arith.constant dense<0.000000e+00> : vector<6xf32>
    %191 = vector.multi_reduction <add>, %190, %cst_142 [1] : vector<6x32xf32> to vector<6xf32>
    %192 = vector.shape_cast %191 : vector<6xf32> to vector<6x1xf32>
    %cst_143 = arith.constant 3.200000e+01 : f32
    %193 = vector.broadcast %cst_143 : f32 to vector<6x1xf32>
    %194 = arith.divf %192, %193 : vector<6x1xf32>
    %195 = vector.broadcast %194 : vector<6x1xf32> to vector<6x32xf32>
    %196 = arith.subf %190, %195 : vector<6x32xf32>
    %197 = arith.mulf %196, %196 : vector<6x32xf32>
    %cst_144 = arith.constant dense<0.000000e+00> : vector<6xf32>
    %198 = vector.multi_reduction <add>, %197, %cst_144 [1] : vector<6x32xf32> to vector<6xf32>
    %199 = vector.shape_cast %198 : vector<6xf32> to vector<6x1xf32>
    %cst_145 = arith.constant 3.200000e+01 : f32
    %200 = vector.broadcast %cst_145 : f32 to vector<6x1xf32>
    %201 = arith.divf %199, %200 : vector<6x1xf32>
    %cst_146 = arith.constant 9.99999997E-7 : f32
    %202 = vector.broadcast %cst_146 : f32 to vector<6x1xf32>
    %203 = arith.addf %201, %202 : vector<6x1xf32>
    %204 = math.rsqrt %203 : vector<6x1xf32>
    %205 = vector.broadcast %204 : vector<6x1xf32> to vector<6x32xf32>
    %206 = arith.mulf %196, %205 : vector<6x32xf32>
    %207 = vector.broadcast %2 : vector<1x32xf32> to vector<6x32xf32>
    %208 = arith.mulf %206, %207 : vector<6x32xf32>
    %209 = vector.broadcast %3 : vector<1x32xf32> to vector<6x32xf32>
    %210 = arith.addf %208, %209 : vector<6x32xf32>
    %cst_147 = arith.constant dense<0.000000e+00> : vector<6x128xf32>
    %211 = tpu.matmul %210, %4, %cst_147 {dimension_numbers = #tpu.dot_dimension_numbers<[1], [0], [0], [1], [0, 0, 1, 1], [], []>} : vector<6x32xf32>, vector<32x128xf32>, vector<6x128xf32> -> vector<6x128xf32>
    %212 = vector.broadcast %5 : vector<1x128xf32> to vector<6x128xf32>
    %213 = arith.addf %211, %212 : vector<6x128xf32>
    %cst_148 = arith.constant 5.000000e-01 : f32
    %214 = vector.broadcast %cst_148 : f32 to vector<6x128xf32>
    %215 = arith.mulf %214, %213 : vector<6x128xf32>
    %cst_149 = arith.constant 0.707106769 : f32
    %216 = vector.broadcast %cst_149 : f32 to vector<6x128xf32>
    %217 = arith.mulf %213, %216 : vector<6x128xf32>
    %218 = math.erf %217 : vector<6x128xf32>
    %cst_150 = arith.constant 1.000000e+00 : f32
    %219 = vector.broadcast %cst_150 : f32 to vector<6x128xf32>
    %220 = arith.addf %219, %218 : vector<6x128xf32>
    %221 = arith.mulf %215, %220 : vector<6x128xf32>
    %cst_151 = arith.constant dense<0.000000e+00> : vector<6x32xf32>
    %222 = tpu.matmul %221, %6, %cst_151 {dimension_numbers = #tpu.dot_dimension_numbers<[1], [0], [0], [1], [0, 0, 1, 1], [], []>} : vector<6x128xf32>, vector<128x32xf32>, vector<6x32xf32> -> vector<6x32xf32>
    %223 = vector.broadcast %7 : vector<1x32xf32> to vector<6x32xf32>
    %224 = arith.addf %222, %223 : vector<6x32xf32>
    %225 = arith.addf %190, %224 : vector<6x32xf32>
    %c0_152 = arith.constant 0 : index
    %c0_153 = arith.constant 0 : index
    %c0_154 = arith.constant 0 : index
    %226 = vector.load %arg17[%c0_152, %c0_153, %c0_154] : memref<2x6x32xf32, #tpu.memory_space<vmem>>, vector<1x6x32xf32>
    %227 = vector.shape_cast %226 : vector<1x6x32xf32> to vector<6x32xf32>
    %228 = vector.shape_cast %225 : vector<6x32xf32> to vector<1x6x32xf32>
    tpu.vector_store %arg17[%c0_152, %c0_153, %c0_154], %228 {strides = array<i32>} : memref<2x6x32xf32, #tpu.memory_space<vmem>>, vector<1x6x32xf32>,
    %c1_155 = arith.constant 1 : index
    %c0_156 = arith.constant 0 : index
    %c0_157 = arith.constant 0 : index
    %229 = vector.load %arg0[%c1_155, %c0_156, %c0_157] : memref<2x6x32xf32, #tpu.memory_space<vmem>>, vector<1x6x32xf32>
    %230 = vector.shape_cast %229 : vector<1x6x32xf32> to vector<6x32xf32>
    %cst_158 = arith.constant dense<0.000000e+00> : vector<6xf32>
    %231 = vector.multi_reduction <add>, %230, %cst_158 [1] : vector<6x32xf32> to vector<6xf32>
    %232 = vector.shape_cast %231 : vector<6xf32> to vector<6x1xf32>
    %cst_159 = arith.constant 3.200000e+01 : f32
    %233 = vector.broadcast %cst_159 : f32 to vector<6x1xf32>
    %234 = arith.divf %232, %233 : vector<6x1xf32>
    %235 = vector.broadcast %234 : vector<6x1xf32> to vector<6x32xf32>
    %236 = arith.subf %230, %235 : vector<6x32xf32>
    %237 = arith.mulf %236, %236 : vector<6x32xf32>
    %cst_160 = arith.constant dense<0.000000e+00> : vector<6xf32>
    %238 = vector.multi_reduction <add>, %237, %cst_160 [1] : vector<6x32xf32> to vector<6xf32>
    %239 = vector.shape_cast %238 : vector<6xf32> to vector<6x1xf32>
    %cst_161 = arith.constant 3.200000e+01 : f32
    %240 = vector.broadcast %cst_161 : f32 to vector<6x1xf32>
    %241 = arith.divf %239, %240 : vector<6x1xf32>
    %cst_162 = arith.constant 9.99999997E-7 : f32
    %242 = vector.broadcast %cst_162 : f32 to vector<6x1xf32>
    %243 = arith.addf %241, %242 : vector<6x1xf32>
    %244 = math.rsqrt %243 : vector<6x1xf32>
    %245 = vector.broadcast %244 : vector<6x1xf32> to vector<6x32xf32>
    %246 = arith.mulf %236, %245 : vector<6x32xf32>
    %247 = vector.broadcast %0 : vector<1x32xf32> to vector<6x32xf32>
    %248 = arith.mulf %246, %247 : vector<6x32xf32>
    %249 = vector.broadcast %1 : vector<1x32xf32> to vector<6x32xf32>
    %250 = arith.addf %248, %249 : vector<6x32xf32>
    %cst_163 = arith.constant 0.000000e+00 : f32
    %251 = vector.broadcast %cst_163 : f32 to vector<6x32xf32>
    %c0_164 = arith.constant 0 : index
    %c0_165 = arith.constant 0 : index
    %c0_166 = arith.constant 0 : index
    %252 = vector.load %arg3[%c0_164, %c0_165, %c0_166] : memref<4x32x8xf32, #tpu.memory_space<vmem>>, vector<1x32x8xf32>
    %253 = vector.shape_cast %252 : vector<1x32x8xf32> to vector<32x8xf32>
    %cst_167 = arith.constant dense<0.000000e+00> : vector<6x8xf32>
    %254 = tpu.matmul %250, %253, %cst_167 {dimension_numbers = #tpu.dot_dimension_numbers<[1], [0], [0], [1], [0, 0, 1, 1], [], []>} : vector<6x32xf32>, vector<32x8xf32>, vector<6x8xf32> -> vector<6x8xf32>
    %c0_168 = arith.constant 0 : index
    %c0_169 = arith.constant 0 : index
    %c0_170 = arith.constant 0 : index
    %255 = vector.load %arg6[%c0_168, %c0_169, %c0_170] : memref<4x1x8xf32, #tpu.memory_space<vmem>>, vector<1x1x8xf32>
    %256 = vector.shape_cast %255 : vector<1x1x8xf32> to vector<1x8xf32>
    %257 = vector.broadcast %256 : vector<1x8xf32> to vector<6x8xf32>
    %258 = arith.addf %254, %257 : vector<6x8xf32>
    %cst_171 = arith.constant 0.353553385 : f32
    %259 = vector.broadcast %cst_171 : f32 to vector<6x8xf32>
    %260 = arith.mulf %258, %259 : vector<6x8xf32>
    %c0_172 = arith.constant 0 : index
    %c0_173 = arith.constant 0 : index
    %c0_174 = arith.constant 0 : index
    %261 = vector.load %arg4[%c0_172, %c0_173, %c0_174] : memref<4x32x8xf32, #tpu.memory_space<vmem>>, vector<1x32x8xf32>
    %262 = vector.shape_cast %261 : vector<1x32x8xf32> to vector<32x8xf32>
    %cst_175 = arith.constant dense<0.000000e+00> : vector<6x8xf32>
    %263 = tpu.matmul %250, %262, %cst_175 {dimension_numbers = #tpu.dot_dimension_numbers<[1], [0], [0], [1], [0, 0, 1, 1], [], []>} : vector<6x32xf32>, vector<32x8xf32>, vector<6x8xf32> -> vector<6x8xf32>
    %c0_176 = arith.constant 0 : index
    %c0_177 = arith.constant 0 : index
    %c0_178 = arith.constant 0 : index
    %264 = vector.load %arg7[%c0_176, %c0_177, %c0_178] : memref<4x1x8xf32, #tpu.memory_space<vmem>>, vector<1x1x8xf32>
    %265 = vector.shape_cast %264 : vector<1x1x8xf32> to vector<1x8xf32>
    %266 = vector.broadcast %265 : vector<1x8xf32> to vector<6x8xf32>
    %267 = arith.addf %263, %266 : vector<6x8xf32>
    %c0_179 = arith.constant 0 : index
    %c0_180 = arith.constant 0 : index
    %c0_181 = arith.constant 0 : index
    %268 = vector.load %arg5[%c0_179, %c0_180, %c0_181] : memref<4x32x8xf32, #tpu.memory_space<vmem>>, vector<1x32x8xf32>
    %269 = vector.shape_cast %268 : vector<1x32x8xf32> to vector<32x8xf32>
    %cst_182 = arith.constant dense<0.000000e+00> : vector<6x8xf32>
    %270 = tpu.matmul %250, %269, %cst_182 {dimension_numbers = #tpu.dot_dimension_numbers<[1], [0], [0], [1], [0, 0, 1, 1], [], []>} : vector<6x32xf32>, vector<32x8xf32>, vector<6x8xf32> -> vector<6x8xf32>
    %c0_183 = arith.constant 0 : index
    %c0_184 = arith.constant 0 : index
    %c0_185 = arith.constant 0 : index
    %271 = vector.load %arg8[%c0_183, %c0_184, %c0_185] : memref<4x1x8xf32, #tpu.memory_space<vmem>>, vector<1x1x8xf32>
    %272 = vector.shape_cast %271 : vector<1x1x8xf32> to vector<1x8xf32>
    %273 = vector.broadcast %272 : vector<1x8xf32> to vector<6x8xf32>
    %274 = arith.addf %270, %273 : vector<6x8xf32>
    %cst_186 = arith.constant dense<0.000000e+00> : vector<6x6xf32>
    %275 = tpu.matmul %260, %267, %cst_186 {dimension_numbers = #tpu.dot_dimension_numbers<[1], [1], [0], [0], [0, 0, 1, 0], [], []>} : vector<6x8xf32>, vector<6x8xf32>, vector<6x6xf32> -> vector<6x6xf32>
    %cst_187 = arith.constant dense<0xFF800000> : vector<6xf32>
    %276 = vector.multi_reduction <maximumf>, %275, %cst_187 [1] : vector<6x6xf32> to vector<6xf32>
    %277 = vector.shape_cast %276 : vector<6xf32> to vector<6x1xf32>
    %278 = vector.broadcast %277 : vector<6x1xf32> to vector<6x6xf32>
    %279 = arith.subf %275, %278 : vector<6x6xf32>
    %280 = math.exp %279 : vector<6x6xf32>
    %cst_188 = arith.constant dense<0.000000e+00> : vector<6xf32>
    %281 = vector.multi_reduction <add>, %280, %cst_188 [1] : vector<6x6xf32> to vector<6xf32>
    %282 = vector.shape_cast %281 : vector<6xf32> to vector<6x1xf32>
    %283 = tpu.reciprocal %282 {approx = true} : vector<6x1xf32> -> vector<6x1xf32>
    %284 = vector.broadcast %283 : vector<6x1xf32> to vector<6x6xf32>
    %285 = arith.mulf %280, %284 : vector<6x6xf32>
    %cst_189 = arith.constant dense<0.000000e+00> : vector<6x8xf32>
    %286 = tpu.matmul %285, %274, %cst_189 {dimension_numbers = #tpu.dot_dimension_numbers<[1], [0], [0], [1], [0, 0, 1, 1], [], []>} : vector<6x6xf32>, vector<6x8xf32>, vector<6x8xf32> -> vector<6x8xf32>
    %c0_190 = arith.constant 0 : index
    %c0_191 = arith.constant 0 : index
    %c0_192 = arith.constant 0 : index
    %287 = vector.load %arg9[%c0_190, %c0_191, %c0_192] : memref<4x8x32xf32, #tpu.memory_space<vmem>>, vector<1x8x32xf32>
    %288 = vector.shape_cast %287 : vector<1x8x32xf32> to vector<8x32xf32>
    %cst_193 = arith.constant dense<0.000000e+00> : vector<6x32xf32>
    %289 = tpu.matmul %286, %288, %cst_193 {dimension_numbers = #tpu.dot_dimension_numbers<[1], [0], [0], [1], [0, 0, 1, 1], [], []>} : vector<6x8xf32>, vector<8x32xf32>, vector<6x32xf32> -> vector<6x32xf32>
    %290 = arith.addf %251, %289 : vector<6x32xf32>
    %c1_194 = arith.constant 1 : index
    %c0_195 = arith.constant 0 : index
    %c0_196 = arith.constant 0 : index
    %291 = vector.load %arg3[%c1_194, %c0_195, %c0_196] : memref<4x32x8xf32, #tpu.memory_space<vmem>>, vector<1x32x8xf32>
    %292 = vector.shape_cast %291 : vector<1x32x8xf32> to vector<32x8xf32>
    %cst_197 = arith.constant dense<0.000000e+00> : vector<6x8xf32>
    %293 = tpu.matmul %250, %292, %cst_197 {dimension_numbers = #tpu.dot_dimension_numbers<[1], [0], [0], [1], [0, 0, 1, 1], [], []>} : vector<6x32xf32>, vector<32x8xf32>, vector<6x8xf32> -> vector<6x8xf32>
    %c1_198 = arith.constant 1 : index
    %c0_199 = arith.constant 0 : index
    %c0_200 = arith.constant 0 : index
    %294 = vector.load %arg6[%c1_198, %c0_199, %c0_200] : memref<4x1x8xf32, #tpu.memory_space<vmem>>, vector<1x1x8xf32>
    %295 = vector.shape_cast %294 : vector<1x1x8xf32> to vector<1x8xf32>
    %296 = vector.broadcast %295 : vector<1x8xf32> to vector<6x8xf32>
    %297 = arith.addf %293, %296 : vector<6x8xf32>
    %cst_201 = arith.constant 0.353553385 : f32
    %298 = vector.broadcast %cst_201 : f32 to vector<6x8xf32>
    %299 = arith.mulf %297, %298 : vector<6x8xf32>
    %c1_202 = arith.constant 1 : index
    %c0_203 = arith.constant 0 : index
    %c0_204 = arith.constant 0 : index
    %300 = vector.load %arg4[%c1_202, %c0_203, %c0_204] : memref<4x32x8xf32, #tpu.memory_space<vmem>>, vector<1x32x8xf32>
    %301 = vector.shape_cast %300 : vector<1x32x8xf32> to vector<32x8xf32>
    %cst_205 = arith.constant dense<0.000000e+00> : vector<6x8xf32>
    %302 = tpu.matmul %250, %301, %cst_205 {dimension_numbers = #tpu.dot_dimension_numbers<[1], [0], [0], [1], [0, 0, 1, 1], [], []>} : vector<6x32xf32>, vector<32x8xf32>, vector<6x8xf32> -> vector<6x8xf32>
    %c1_206 = arith.constant 1 : index
    %c0_207 = arith.constant 0 : index
    %c0_208 = arith.constant 0 : index
    %303 = vector.load %arg7[%c1_206, %c0_207, %c0_208] : memref<4x1x8xf32, #tpu.memory_space<vmem>>, vector<1x1x8xf32>
    %304 = vector.shape_cast %303 : vector<1x1x8xf32> to vector<1x8xf32>
    %305 = vector.broadcast %304 : vector<1x8xf32> to vector<6x8xf32>
    %306 = arith.addf %302, %305 : vector<6x8xf32>
    %c1_209 = arith.constant 1 : index
    %c0_210 = arith.constant 0 : index
    %c0_211 = arith.constant 0 : index
    %307 = vector.load %arg5[%c1_209, %c0_210, %c0_211] : memref<4x32x8xf32, #tpu.memory_space<vmem>>, vector<1x32x8xf32>
    %308 = vector.shape_cast %307 : vector<1x32x8xf32> to vector<32x8xf32>
    %cst_212 = arith.constant dense<0.000000e+00> : vector<6x8xf32>
    %309 = tpu.matmul %250, %308, %cst_212 {dimension_numbers = #tpu.dot_dimension_numbers<[1], [0], [0], [1], [0, 0, 1, 1], [], []>} : vector<6x32xf32>, vector<32x8xf32>, vector<6x8xf32> -> vector<6x8xf32>
    %c1_213 = arith.constant 1 : index
    %c0_214 = arith.constant 0 : index
    %c0_215 = arith.constant 0 : index
    %310 = vector.load %arg8[%c1_213, %c0_214, %c0_215] : memref<4x1x8xf32, #tpu.memory_space<vmem>>, vector<1x1x8xf32>
    %311 = vector.shape_cast %310 : vector<1x1x8xf32> to vector<1x8xf32>
    %312 = vector.broadcast %311 : vector<1x8xf32> to vector<6x8xf32>
    %313 = arith.addf %309, %312 : vector<6x8xf32>
    %cst_216 = arith.constant dense<0.000000e+00> : vector<6x6xf32>
    %314 = tpu.matmul %299, %306, %cst_216 {dimension_numbers = #tpu.dot_dimension_numbers<[1], [1], [0], [0], [0, 0, 1, 0], [], []>} : vector<6x8xf32>, vector<6x8xf32>, vector<6x6xf32> -> vector<6x6xf32>
    %cst_217 = arith.constant dense<0xFF800000> : vector<6xf32>
    %315 = vector.multi_reduction <maximumf>, %314, %cst_217 [1] : vector<6x6xf32> to vector<6xf32>
    %316 = vector.shape_cast %315 : vector<6xf32> to vector<6x1xf32>
    %317 = vector.broadcast %316 : vector<6x1xf32> to vector<6x6xf32>
    %318 = arith.subf %314, %317 : vector<6x6xf32>
    %319 = math.exp %318 : vector<6x6xf32>
    %cst_218 = arith.constant dense<0.000000e+00> : vector<6xf32>
    %320 = vector.multi_reduction <add>, %319, %cst_218 [1] : vector<6x6xf32> to vector<6xf32>
    %321 = vector.shape_cast %320 : vector<6xf32> to vector<6x1xf32>
    %322 = tpu.reciprocal %321 {approx = true} : vector<6x1xf32> -> vector<6x1xf32>
    %323 = vector.broadcast %322 : vector<6x1xf32> to vector<6x6xf32>
    %324 = arith.mulf %319, %323 : vector<6x6xf32>
    %cst_219 = arith.constant dense<0.000000e+00> : vector<6x8xf32>
    %325 = tpu.matmul %324, %313, %cst_219 {dimension_numbers = #tpu.dot_dimension_numbers<[1], [0], [0], [1], [0, 0, 1, 1], [], []>} : vector<6x6xf32>, vector<6x8xf32>, vector<6x8xf32> -> vector<6x8xf32>
    %c1_220 = arith.constant 1 : index
    %c0_221 = arith.constant 0 : index
    %c0_222 = arith.constant 0 : index
    %326 = vector.load %arg9[%c1_220, %c0_221, %c0_222] : memref<4x8x32xf32, #tpu.memory_space<vmem>>, vector<1x8x32xf32>
    %327 = vector.shape_cast %326 : vector<1x8x32xf32> to vector<8x32xf32>
    %cst_223 = arith.constant dense<0.000000e+00> : vector<6x32xf32>
    %328 = tpu.matmul %325, %327, %cst_223 {dimension_numbers = #tpu.dot_dimension_numbers<[1], [0], [0], [1], [0, 0, 1, 1], [], []>} : vector<6x8xf32>, vector<8x32xf32>, vector<6x32xf32> -> vector<6x32xf32>
    %329 = arith.addf %290, %328 : vector<6x32xf32>
    %c2_224 = arith.constant 2 : index
    %c0_225 = arith.constant 0 : index
    %c0_226 = arith.constant 0 : index
    %330 = vector.load %arg3[%c2_224, %c0_225, %c0_226] : memref<4x32x8xf32, #tpu.memory_space<vmem>>, vector<1x32x8xf32>
    %331 = vector.shape_cast %330 : vector<1x32x8xf32> to vector<32x8xf32>
    %cst_227 = arith.constant dense<0.000000e+00> : vector<6x8xf32>
    %332 = tpu.matmul %250, %331, %cst_227 {dimension_numbers = #tpu.dot_dimension_numbers<[1], [0], [0], [1], [0, 0, 1, 1], [], []>} : vector<6x32xf32>, vector<32x8xf32>, vector<6x8xf32> -> vector<6x8xf32>
    %c2_228 = arith.constant 2 : index
    %c0_229 = arith.constant 0 : index
    %c0_230 = arith.constant 0 : index
    %333 = vector.load %arg6[%c2_228, %c0_229, %c0_230] : memref<4x1x8xf32, #tpu.memory_space<vmem>>, vector<1x1x8xf32>
    %334 = vector.shape_cast %333 : vector<1x1x8xf32> to vector<1x8xf32>
    %335 = vector.broadcast %334 : vector<1x8xf32> to vector<6x8xf32>
    %336 = arith.addf %332, %335 : vector<6x8xf32>
    %cst_231 = arith.constant 0.353553385 : f32
    %337 = vector.broadcast %cst_231 : f32 to vector<6x8xf32>
    %338 = arith.mulf %336, %337 : vector<6x8xf32>
    %c2_232 = arith.constant 2 : index
    %c0_233 = arith.constant 0 : index
    %c0_234 = arith.constant 0 : index
    %339 = vector.load %arg4[%c2_232, %c0_233, %c0_234] : memref<4x32x8xf32, #tpu.memory_space<vmem>>, vector<1x32x8xf32>
    %340 = vector.shape_cast %339 : vector<1x32x8xf32> to vector<32x8xf32>
    %cst_235 = arith.constant dense<0.000000e+00> : vector<6x8xf32>
    %341 = tpu.matmul %250, %340, %cst_235 {dimension_numbers = #tpu.dot_dimension_numbers<[1], [0], [0], [1], [0, 0, 1, 1], [], []>} : vector<6x32xf32>, vector<32x8xf32>, vector<6x8xf32> -> vector<6x8xf32>
    %c2_236 = arith.constant 2 : index
    %c0_237 = arith.constant 0 : index
    %c0_238 = arith.constant 0 : index
    %342 = vector.load %arg7[%c2_236, %c0_237, %c0_238] : memref<4x1x8xf32, #tpu.memory_space<vmem>>, vector<1x1x8xf32>
    %343 = vector.shape_cast %342 : vector<1x1x8xf32> to vector<1x8xf32>
    %344 = vector.broadcast %343 : vector<1x8xf32> to vector<6x8xf32>
    %345 = arith.addf %341, %344 : vector<6x8xf32>
    %c2_239 = arith.constant 2 : index
    %c0_240 = arith.constant 0 : index
    %c0_241 = arith.constant 0 : index
    %346 = vector.load %arg5[%c2_239, %c0_240, %c0_241] : memref<4x32x8xf32, #tpu.memory_space<vmem>>, vector<1x32x8xf32>
    %347 = vector.shape_cast %346 : vector<1x32x8xf32> to vector<32x8xf32>
    %cst_242 = arith.constant dense<0.000000e+00> : vector<6x8xf32>
    %348 = tpu.matmul %250, %347, %cst_242 {dimension_numbers = #tpu.dot_dimension_numbers<[1], [0], [0], [1], [0, 0, 1, 1], [], []>} : vector<6x32xf32>, vector<32x8xf32>, vector<6x8xf32> -> vector<6x8xf32>
    %c2_243 = arith.constant 2 : index
    %c0_244 = arith.constant 0 : index
    %c0_245 = arith.constant 0 : index
    %349 = vector.load %arg8[%c2_243, %c0_244, %c0_245] : memref<4x1x8xf32, #tpu.memory_space<vmem>>, vector<1x1x8xf32>
    %350 = vector.shape_cast %349 : vector<1x1x8xf32> to vector<1x8xf32>
    %351 = vector.broadcast %350 : vector<1x8xf32> to vector<6x8xf32>
    %352 = arith.addf %348, %351 : vector<6x8xf32>
    %cst_246 = arith.constant dense<0.000000e+00> : vector<6x6xf32>
    %353 = tpu.matmul %338, %345, %cst_246 {dimension_numbers = #tpu.dot_dimension_numbers<[1], [1], [0], [0], [0, 0, 1, 0], [], []>} : vector<6x8xf32>, vector<6x8xf32>, vector<6x6xf32> -> vector<6x6xf32>
    %cst_247 = arith.constant dense<0xFF800000> : vector<6xf32>
    %354 = vector.multi_reduction <maximumf>, %353, %cst_247 [1] : vector<6x6xf32> to vector<6xf32>
    %355 = vector.shape_cast %354 : vector<6xf32> to vector<6x1xf32>
    %356 = vector.broadcast %355 : vector<6x1xf32> to vector<6x6xf32>
    %357 = arith.subf %353, %356 : vector<6x6xf32>
    %358 = math.exp %357 : vector<6x6xf32>
    %cst_248 = arith.constant dense<0.000000e+00> : vector<6xf32>
    %359 = vector.multi_reduction <add>, %358, %cst_248 [1] : vector<6x6xf32> to vector<6xf32>
    %360 = vector.shape_cast %359 : vector<6xf32> to vector<6x1xf32>
    %361 = tpu.reciprocal %360 {approx = true} : vector<6x1xf32> -> vector<6x1xf32>
    %362 = vector.broadcast %361 : vector<6x1xf32> to vector<6x6xf32>
    %363 = arith.mulf %358, %362 : vector<6x6xf32>
    %cst_249 = arith.constant dense<0.000000e+00> : vector<6x8xf32>
    %364 = tpu.matmul %363, %352, %cst_249 {dimension_numbers = #tpu.dot_dimension_numbers<[1], [0], [0], [1], [0, 0, 1, 1], [], []>} : vector<6x6xf32>, vector<6x8xf32>, vector<6x8xf32> -> vector<6x8xf32>
    %c2_250 = arith.constant 2 : index
    %c0_251 = arith.constant 0 : index
    %c0_252 = arith.constant 0 : index
    %365 = vector.load %arg9[%c2_250, %c0_251, %c0_252] : memref<4x8x32xf32, #tpu.memory_space<vmem>>, vector<1x8x32xf32>
    %366 = vector.shape_cast %365 : vector<1x8x32xf32> to vector<8x32xf32>
    %cst_253 = arith.constant dense<0.000000e+00> : vector<6x32xf32>
    %367 = tpu.matmul %364, %366, %cst_253 {dimension_numbers = #tpu.dot_dimension_numbers<[1], [0], [0], [1], [0, 0, 1, 1], [], []>} : vector<6x8xf32>, vector<8x32xf32>, vector<6x32xf32> -> vector<6x32xf32>
    %368 = arith.addf %329, %367 : vector<6x32xf32>
    %c3_254 = arith.constant 3 : index
    %c0_255 = arith.constant 0 : index
    %c0_256 = arith.constant 0 : index
    %369 = vector.load %arg3[%c3_254, %c0_255, %c0_256] : memref<4x32x8xf32, #tpu.memory_space<vmem>>, vector<1x32x8xf32>
    %370 = vector.shape_cast %369 : vector<1x32x8xf32> to vector<32x8xf32>
    %cst_257 = arith.constant dense<0.000000e+00> : vector<6x8xf32>
    %371 = tpu.matmul %250, %370, %cst_257 {dimension_numbers = #tpu.dot_dimension_numbers<[1], [0], [0], [1], [0, 0, 1, 1], [], []>} : vector<6x32xf32>, vector<32x8xf32>, vector<6x8xf32> -> vector<6x8xf32>
    %c3_258 = arith.constant 3 : index
    %c0_259 = arith.constant 0 : index
    %c0_260 = arith.constant 0 : index
    %372 = vector.load %arg6[%c3_258, %c0_259, %c0_260] : memref<4x1x8xf32, #tpu.memory_space<vmem>>, vector<1x1x8xf32>
    %373 = vector.shape_cast %372 : vector<1x1x8xf32> to vector<1x8xf32>
    %374 = vector.broadcast %373 : vector<1x8xf32> to vector<6x8xf32>
    %375 = arith.addf %371, %374 : vector<6x8xf32>
    %cst_261 = arith.constant 0.353553385 : f32
    %376 = vector.broadcast %cst_261 : f32 to vector<6x8xf32>
    %377 = arith.mulf %375, %376 : vector<6x8xf32>
    %c3_262 = arith.constant 3 : index
    %c0_263 = arith.constant 0 : index
    %c0_264 = arith.constant 0 : index
    %378 = vector.load %arg4[%c3_262, %c0_263, %c0_264] : memref<4x32x8xf32, #tpu.memory_space<vmem>>, vector<1x32x8xf32>
    %379 = vector.shape_cast %378 : vector<1x32x8xf32> to vector<32x8xf32>
    %cst_265 = arith.constant dense<0.000000e+00> : vector<6x8xf32>
    %380 = tpu.matmul %250, %379, %cst_265 {dimension_numbers = #tpu.dot_dimension_numbers<[1], [0], [0], [1], [0, 0, 1, 1], [], []>} : vector<6x32xf32>, vector<32x8xf32>, vector<6x8xf32> -> vector<6x8xf32>
    %c3_266 = arith.constant 3 : index
    %c0_267 = arith.constant 0 : index
    %c0_268 = arith.constant 0 : index
    %381 = vector.load %arg7[%c3_266, %c0_267, %c0_268] : memref<4x1x8xf32, #tpu.memory_space<vmem>>, vector<1x1x8xf32>
    %382 = vector.shape_cast %381 : vector<1x1x8xf32> to vector<1x8xf32>
    %383 = vector.broadcast %382 : vector<1x8xf32> to vector<6x8xf32>
    %384 = arith.addf %380, %383 : vector<6x8xf32>
    %c3_269 = arith.constant 3 : index
    %c0_270 = arith.constant 0 : index
    %c0_271 = arith.constant 0 : index
    %385 = vector.load %arg5[%c3_269, %c0_270, %c0_271] : memref<4x32x8xf32, #tpu.memory_space<vmem>>, vector<1x32x8xf32>
    %386 = vector.shape_cast %385 : vector<1x32x8xf32> to vector<32x8xf32>
    %cst_272 = arith.constant dense<0.000000e+00> : vector<6x8xf32>
    %387 = tpu.matmul %250, %386, %cst_272 {dimension_numbers = #tpu.dot_dimension_numbers<[1], [0], [0], [1], [0, 0, 1, 1], [], []>} : vector<6x32xf32>, vector<32x8xf32>, vector<6x8xf32> -> vector<6x8xf32>
    %c3_273 = arith.constant 3 : index
    %c0_274 = arith.constant 0 : index
    %c0_275 = arith.constant 0 : index
    %388 = vector.load %arg8[%c3_273, %c0_274, %c0_275] : memref<4x1x8xf32, #tpu.memory_space<vmem>>, vector<1x1x8xf32>
    %389 = vector.shape_cast %388 : vector<1x1x8xf32> to vector<1x8xf32>
    %390 = vector.broadcast %389 : vector<1x8xf32> to vector<6x8xf32>
    %391 = arith.addf %387, %390 : vector<6x8xf32>
    %cst_276 = arith.constant dense<0.000000e+00> : vector<6x6xf32>
    %392 = tpu.matmul %377, %384, %cst_276 {dimension_numbers = #tpu.dot_dimension_numbers<[1], [1], [0], [0], [0, 0, 1, 0], [], []>} : vector<6x8xf32>, vector<6x8xf32>, vector<6x6xf32> -> vector<6x6xf32>
    %cst_277 = arith.constant dense<0xFF800000> : vector<6xf32>
    %393 = vector.multi_reduction <maximumf>, %392, %cst_277 [1] : vector<6x6xf32> to vector<6xf32>
    %394 = vector.shape_cast %393 : vector<6xf32> to vector<6x1xf32>
    %395 = vector.broadcast %394 : vector<6x1xf32> to vector<6x6xf32>
    %396 = arith.subf %392, %395 : vector<6x6xf32>
    %397 = math.exp %396 : vector<6x6xf32>
    %cst_278 = arith.constant dense<0.000000e+00> : vector<6xf32>
    %398 = vector.multi_reduction <add>, %397, %cst_278 [1] : vector<6x6xf32> to vector<6xf32>
    %399 = vector.shape_cast %398 : vector<6xf32> to vector<6x1xf32>
    %400 = tpu.reciprocal %399 {approx = true} : vector<6x1xf32> -> vector<6x1xf32>
    %401 = vector.broadcast %400 : vector<6x1xf32> to vector<6x6xf32>
    %402 = arith.mulf %397, %401 : vector<6x6xf32>
    %cst_279 = arith.constant dense<0.000000e+00> : vector<6x8xf32>
    %403 = tpu.matmul %402, %391, %cst_279 {dimension_numbers = #tpu.dot_dimension_numbers<[1], [0], [0], [1], [0, 0, 1, 1], [], []>} : vector<6x6xf32>, vector<6x8xf32>, vector<6x8xf32> -> vector<6x8xf32>
    %c3_280 = arith.constant 3 : index
    %c0_281 = arith.constant 0 : index
    %c0_282 = arith.constant 0 : index
    %404 = vector.load %arg9[%c3_280, %c0_281, %c0_282] : memref<4x8x32xf32, #tpu.memory_space<vmem>>, vector<1x8x32xf32>
    %405 = vector.shape_cast %404 : vector<1x8x32xf32> to vector<8x32xf32>
    %cst_283 = arith.constant dense<0.000000e+00> : vector<6x32xf32>
    %406 = tpu.matmul %403, %405, %cst_283 {dimension_numbers = #tpu.dot_dimension_numbers<[1], [0], [0], [1], [0, 0, 1, 1], [], []>} : vector<6x8xf32>, vector<8x32xf32>, vector<6x32xf32> -> vector<6x32xf32>
    %407 = arith.addf %368, %406 : vector<6x32xf32>
    %408 = arith.addf %230, %407 : vector<6x32xf32>
    %409 = vector.broadcast %8 : vector<1x32xf32> to vector<6x32xf32>
    %410 = arith.addf %408, %409 : vector<6x32xf32>
    %cst_284 = arith.constant dense<0.000000e+00> : vector<6xf32>
    %411 = vector.multi_reduction <add>, %410, %cst_284 [1] : vector<6x32xf32> to vector<6xf32>
    %412 = vector.shape_cast %411 : vector<6xf32> to vector<6x1xf32>
    %cst_285 = arith.constant 3.200000e+01 : f32
    %413 = vector.broadcast %cst_285 : f32 to vector<6x1xf32>
    %414 = arith.divf %412, %413 : vector<6x1xf32>
    %415 = vector.broadcast %414 : vector<6x1xf32> to vector<6x32xf32>
    %416 = arith.subf %410, %415 : vector<6x32xf32>
    %417 = arith.mulf %416, %416 : vector<6x32xf32>
    %cst_286 = arith.constant dense<0.000000e+00> : vector<6xf32>
    %418 = vector.multi_reduction <add>, %417, %cst_286 [1] : vector<6x32xf32> to vector<6xf32>
    %419 = vector.shape_cast %418 : vector<6xf32> to vector<6x1xf32>
    %cst_287 = arith.constant 3.200000e+01 : f32
    %420 = vector.broadcast %cst_287 : f32 to vector<6x1xf32>
    %421 = arith.divf %419, %420 : vector<6x1xf32>
    %cst_288 = arith.constant 9.99999997E-7 : f32
    %422 = vector.broadcast %cst_288 : f32 to vector<6x1xf32>
    %423 = arith.addf %421, %422 : vector<6x1xf32>
    %424 = math.rsqrt %423 : vector<6x1xf32>
    %425 = vector.broadcast %424 : vector<6x1xf32> to vector<6x32xf32>
    %426 = arith.mulf %416, %425 : vector<6x32xf32>
    %427 = vector.broadcast %2 : vector<1x32xf32> to vector<6x32xf32>
    %428 = arith.mulf %426, %427 : vector<6x32xf32>
    %429 = vector.broadcast %3 : vector<1x32xf32> to vector<6x32xf32>
    %430 = arith.addf %428, %429 : vector<6x32xf32>
    %cst_289 = arith.constant dense<0.000000e+00> : vector<6x128xf32>
    %431 = tpu.matmul %430, %4, %cst_289 {dimension_numbers = #tpu.dot_dimension_numbers<[1], [0], [0], [1], [0, 0, 1, 1], [], []>} : vector<6x32xf32>, vector<32x128xf32>, vector<6x128xf32> -> vector<6x128xf32>
    %432 = vector.broadcast %5 : vector<1x128xf32> to vector<6x128xf32>
    %433 = arith.addf %431, %432 : vector<6x128xf32>
    %cst_290 = arith.constant 5.000000e-01 : f32
    %434 = vector.broadcast %cst_290 : f32 to vector<6x128xf32>
    %435 = arith.mulf %434, %433 : vector<6x128xf32>
    %cst_291 = arith.constant 0.707106769 : f32
    %436 = vector.broadcast %cst_291 : f32 to vector<6x128xf32>
    %437 = arith.mulf %433, %436 : vector<6x128xf32>
    %438 = math.erf %437 : vector<6x128xf32>
    %cst_292 = arith.constant 1.000000e+00 : f32
    %439 = vector.broadcast %cst_292 : f32 to vector<6x128xf32>
    %440 = arith.addf %439, %438 : vector<6x128xf32>
    %441 = arith.mulf %435, %440 : vector<6x128xf32>
    %cst_293 = arith.constant dense<0.000000e+00> : vector<6x32xf32>
    %442 = tpu.matmul %441, %6, %cst_293 {dimension_numbers = #tpu.dot_dimension_numbers<[1], [0], [0], [1], [0, 0, 1, 1], [], []>} : vector<6x128xf32>, vector<128x32xf32>, vector<6x32xf32> -> vector<6x32xf32>
    %443 = vector.broadcast %7 : vector<1x32xf32> to vector<6x32xf32>
    %444 = arith.addf %442, %443 : vector<6x32xf32>
    %445 = arith.addf %410, %444 : vector<6x32xf32>
    %c1_294 = arith.constant 1 : index
    %c0_295 = arith.constant 0 : index
    %c0_296 = arith.constant 0 : index
    %446 = vector.load %arg17[%c1_294, %c0_295, %c0_296] : memref<2x6x32xf32, #tpu.memory_space<vmem>>, vector<1x6x32xf32>
    %447 = vector.shape_cast %446 : vector<1x6x32xf32> to vector<6x32xf32>
    %448 = vector.shape_cast %445 : vector<6x32xf32> to vector<1x6x32xf32>
    tpu.vector_store %arg17[%c1_294, %c0_295, %c0_296], %448 {strides = array<i32>} : memref<2x6x32xf32, #tpu.memory_space<vmem>>, vector<1x6x32xf32>,
    return
  }
}

module attributes {stable_mosaic.version = 11 : i64} {
  func.func @_lstm_phase_kernel(%arg0: memref<2x1x32xf32, #tpu.memory_space<vmem>>, %arg1: memref<4x32x32xf32, #tpu.memory_space<vmem>>, %arg2: memref<4x32x32xf32, #tpu.memory_space<vmem>>, %arg3: memref<4x1x32xf32, #tpu.memory_space<vmem>>, %arg4: memref<32x7xf32, #tpu.memory_space<vmem>>, %arg5: memref<1x7xf32, #tpu.memory_space<vmem>>, %arg6: memref<2x1x7xf32, #tpu.memory_space<vmem>>) attributes {dimension_semantics = [], scalar_prefetch = 0 : i64, scratch_operands = 0 : i64, tpu.core_type = #tpu.core_type<tc>} {
    %c0 = arith.constant 0 : index
    %c0_0 = arith.constant 0 : index
    %0 = vector.load %arg4[%c0, %c0_0] : memref<32x7xf32, #tpu.memory_space<vmem>>, vector<32x7xf32>
    %c0_1 = arith.constant 0 : index
    %c0_2 = arith.constant 0 : index
    %1 = vector.load %arg5[%c0_1, %c0_2] : memref<1x7xf32, #tpu.memory_space<vmem>>, vector<1x7xf32>
    %cst = arith.constant 0.000000e+00 : f32
    %2 = vector.broadcast %cst : f32 to vector<1x32xf32>
    %cst_3 = arith.constant 0.000000e+00 : f32
    %3 = vector.broadcast %cst_3 : f32 to vector<1x32xf32>
    %c0_4 = arith.constant 0 : index
    %c0_5 = arith.constant 0 : index
    %c0_6 = arith.constant 0 : index
    %4 = vector.load %arg0[%c0_4, %c0_5, %c0_6] : memref<2x1x32xf32, #tpu.memory_space<vmem>>, vector<1x1x32xf32>
    %5 = vector.shape_cast %4 : vector<1x1x32xf32> to vector<1x32xf32>
    %c0_7 = arith.constant 0 : index
    %c0_8 = arith.constant 0 : index
    %c0_9 = arith.constant 0 : index
    %6 = vector.load %arg1[%c0_7, %c0_8, %c0_9] : memref<4x32x32xf32, #tpu.memory_space<vmem>>, vector<1x32x32xf32>
    %7 = vector.shape_cast %6 : vector<1x32x32xf32> to vector<32x32xf32>
    %cst_10 = arith.constant dense<0.000000e+00> : vector<1x32xf32>
    %8 = tpu.matmul %5, %7, %cst_10 {dimension_numbers = #tpu.dot_dimension_numbers<[1], [0], [0], [1], [0, 0, 1, 1], [], []>} : vector<1x32xf32>, vector<32x32xf32>, vector<1x32xf32> -> vector<1x32xf32>
    %c0_11 = arith.constant 0 : index
    %c0_12 = arith.constant 0 : index
    %c0_13 = arith.constant 0 : index
    %9 = vector.load %arg2[%c0_11, %c0_12, %c0_13] : memref<4x32x32xf32, #tpu.memory_space<vmem>>, vector<1x32x32xf32>
    %10 = vector.shape_cast %9 : vector<1x32x32xf32> to vector<32x32xf32>
    %cst_14 = arith.constant dense<0.000000e+00> : vector<1x32xf32>
    %11 = tpu.matmul %2, %10, %cst_14 {dimension_numbers = #tpu.dot_dimension_numbers<[1], [0], [0], [1], [0, 0, 1, 1], [], []>} : vector<1x32xf32>, vector<32x32xf32>, vector<1x32xf32> -> vector<1x32xf32>
    %12 = arith.addf %8, %11 : vector<1x32xf32>
    %c0_15 = arith.constant 0 : index
    %c0_16 = arith.constant 0 : index
    %c0_17 = arith.constant 0 : index
    %13 = vector.load %arg3[%c0_15, %c0_16, %c0_17] : memref<4x1x32xf32, #tpu.memory_space<vmem>>, vector<1x1x32xf32>
    %14 = vector.shape_cast %13 : vector<1x1x32xf32> to vector<1x32xf32>
    %15 = arith.addf %12, %14 : vector<1x32xf32>
    %c1 = arith.constant 1 : index
    %c0_18 = arith.constant 0 : index
    %c0_19 = arith.constant 0 : index
    %16 = vector.load %arg1[%c1, %c0_18, %c0_19] : memref<4x32x32xf32, #tpu.memory_space<vmem>>, vector<1x32x32xf32>
    %17 = vector.shape_cast %16 : vector<1x32x32xf32> to vector<32x32xf32>
    %cst_20 = arith.constant dense<0.000000e+00> : vector<1x32xf32>
    %18 = tpu.matmul %5, %17, %cst_20 {dimension_numbers = #tpu.dot_dimension_numbers<[1], [0], [0], [1], [0, 0, 1, 1], [], []>} : vector<1x32xf32>, vector<32x32xf32>, vector<1x32xf32> -> vector<1x32xf32>
    %c1_21 = arith.constant 1 : index
    %c0_22 = arith.constant 0 : index
    %c0_23 = arith.constant 0 : index
    %19 = vector.load %arg2[%c1_21, %c0_22, %c0_23] : memref<4x32x32xf32, #tpu.memory_space<vmem>>, vector<1x32x32xf32>
    %20 = vector.shape_cast %19 : vector<1x32x32xf32> to vector<32x32xf32>
    %cst_24 = arith.constant dense<0.000000e+00> : vector<1x32xf32>
    %21 = tpu.matmul %2, %20, %cst_24 {dimension_numbers = #tpu.dot_dimension_numbers<[1], [0], [0], [1], [0, 0, 1, 1], [], []>} : vector<1x32xf32>, vector<32x32xf32>, vector<1x32xf32> -> vector<1x32xf32>
    %22 = arith.addf %18, %21 : vector<1x32xf32>
    %c1_25 = arith.constant 1 : index
    %c0_26 = arith.constant 0 : index
    %c0_27 = arith.constant 0 : index
    %23 = vector.load %arg3[%c1_25, %c0_26, %c0_27] : memref<4x1x32xf32, #tpu.memory_space<vmem>>, vector<1x1x32xf32>
    %24 = vector.shape_cast %23 : vector<1x1x32xf32> to vector<1x32xf32>
    %25 = arith.addf %22, %24 : vector<1x32xf32>
    %c2 = arith.constant 2 : index
    %c0_28 = arith.constant 0 : index
    %c0_29 = arith.constant 0 : index
    %26 = vector.load %arg1[%c2, %c0_28, %c0_29] : memref<4x32x32xf32, #tpu.memory_space<vmem>>, vector<1x32x32xf32>
    %27 = vector.shape_cast %26 : vector<1x32x32xf32> to vector<32x32xf32>
    %cst_30 = arith.constant dense<0.000000e+00> : vector<1x32xf32>
    %28 = tpu.matmul %5, %27, %cst_30 {dimension_numbers = #tpu.dot_dimension_numbers<[1], [0], [0], [1], [0, 0, 1, 1], [], []>} : vector<1x32xf32>, vector<32x32xf32>, vector<1x32xf32> -> vector<1x32xf32>
    %c2_31 = arith.constant 2 : index
    %c0_32 = arith.constant 0 : index
    %c0_33 = arith.constant 0 : index
    %29 = vector.load %arg2[%c2_31, %c0_32, %c0_33] : memref<4x32x32xf32, #tpu.memory_space<vmem>>, vector<1x32x32xf32>
    %30 = vector.shape_cast %29 : vector<1x32x32xf32> to vector<32x32xf32>
    %cst_34 = arith.constant dense<0.000000e+00> : vector<1x32xf32>
    %31 = tpu.matmul %2, %30, %cst_34 {dimension_numbers = #tpu.dot_dimension_numbers<[1], [0], [0], [1], [0, 0, 1, 1], [], []>} : vector<1x32xf32>, vector<32x32xf32>, vector<1x32xf32> -> vector<1x32xf32>
    %32 = arith.addf %28, %31 : vector<1x32xf32>
    %c2_35 = arith.constant 2 : index
    %c0_36 = arith.constant 0 : index
    %c0_37 = arith.constant 0 : index
    %33 = vector.load %arg3[%c2_35, %c0_36, %c0_37] : memref<4x1x32xf32, #tpu.memory_space<vmem>>, vector<1x1x32xf32>
    %34 = vector.shape_cast %33 : vector<1x1x32xf32> to vector<1x32xf32>
    %35 = arith.addf %32, %34 : vector<1x32xf32>
    %c3 = arith.constant 3 : index
    %c0_38 = arith.constant 0 : index
    %c0_39 = arith.constant 0 : index
    %36 = vector.load %arg1[%c3, %c0_38, %c0_39] : memref<4x32x32xf32, #tpu.memory_space<vmem>>, vector<1x32x32xf32>
    %37 = vector.shape_cast %36 : vector<1x32x32xf32> to vector<32x32xf32>
    %cst_40 = arith.constant dense<0.000000e+00> : vector<1x32xf32>
    %38 = tpu.matmul %5, %37, %cst_40 {dimension_numbers = #tpu.dot_dimension_numbers<[1], [0], [0], [1], [0, 0, 1, 1], [], []>} : vector<1x32xf32>, vector<32x32xf32>, vector<1x32xf32> -> vector<1x32xf32>
    %c3_41 = arith.constant 3 : index
    %c0_42 = arith.constant 0 : index
    %c0_43 = arith.constant 0 : index
    %39 = vector.load %arg2[%c3_41, %c0_42, %c0_43] : memref<4x32x32xf32, #tpu.memory_space<vmem>>, vector<1x32x32xf32>
    %40 = vector.shape_cast %39 : vector<1x32x32xf32> to vector<32x32xf32>
    %cst_44 = arith.constant dense<0.000000e+00> : vector<1x32xf32>
    %41 = tpu.matmul %2, %40, %cst_44 {dimension_numbers = #tpu.dot_dimension_numbers<[1], [0], [0], [1], [0, 0, 1, 1], [], []>} : vector<1x32xf32>, vector<32x32xf32>, vector<1x32xf32> -> vector<1x32xf32>
    %42 = arith.addf %38, %41 : vector<1x32xf32>
    %c3_45 = arith.constant 3 : index
    %c0_46 = arith.constant 0 : index
    %c0_47 = arith.constant 0 : index
    %43 = vector.load %arg3[%c3_45, %c0_46, %c0_47] : memref<4x1x32xf32, #tpu.memory_space<vmem>>, vector<1x1x32xf32>
    %44 = vector.shape_cast %43 : vector<1x1x32xf32> to vector<1x32xf32>
    %45 = arith.addf %42, %44 : vector<1x32xf32>
    %cst_48 = arith.constant 0.000000e+00 : f32
    %46 = vector.broadcast %cst_48 : f32 to vector<1x32xf32>
    %47 = arith.subf %46, %15 : vector<1x32xf32>
    %48 = math.exp %47 : vector<1x32xf32>
    %cst_49 = arith.constant 1.000000e+00 : f32
    %49 = vector.broadcast %cst_49 : f32 to vector<1x32xf32>
    %50 = arith.addf %49, %48 : vector<1x32xf32>
    %cst_50 = arith.constant 1.000000e+00 : f32
    %51 = vector.broadcast %cst_50 : f32 to vector<1x32xf32>
    %52 = arith.divf %51, %50 : vector<1x32xf32>
    %cst_51 = arith.constant 0.000000e+00 : f32
    %53 = vector.broadcast %cst_51 : f32 to vector<1x32xf32>
    %54 = arith.subf %53, %25 : vector<1x32xf32>
    %55 = math.exp %54 : vector<1x32xf32>
    %cst_52 = arith.constant 1.000000e+00 : f32
    %56 = vector.broadcast %cst_52 : f32 to vector<1x32xf32>
    %57 = arith.addf %56, %55 : vector<1x32xf32>
    %cst_53 = arith.constant 1.000000e+00 : f32
    %58 = vector.broadcast %cst_53 : f32 to vector<1x32xf32>
    %59 = arith.divf %58, %57 : vector<1x32xf32>
    %60 = math.tanh %35 : vector<1x32xf32>
    %cst_54 = arith.constant 0.000000e+00 : f32
    %61 = vector.broadcast %cst_54 : f32 to vector<1x32xf32>
    %62 = arith.subf %61, %45 : vector<1x32xf32>
    %63 = math.exp %62 : vector<1x32xf32>
    %cst_55 = arith.constant 1.000000e+00 : f32
    %64 = vector.broadcast %cst_55 : f32 to vector<1x32xf32>
    %65 = arith.addf %64, %63 : vector<1x32xf32>
    %cst_56 = arith.constant 1.000000e+00 : f32
    %66 = vector.broadcast %cst_56 : f32 to vector<1x32xf32>
    %67 = arith.divf %66, %65 : vector<1x32xf32>
    %68 = arith.mulf %59, %3 : vector<1x32xf32>
    %69 = arith.mulf %52, %60 : vector<1x32xf32>
    %70 = arith.addf %68, %69 : vector<1x32xf32>
    %71 = math.tanh %70 : vector<1x32xf32>
    %72 = arith.mulf %67, %71 : vector<1x32xf32>
    %cst_57 = arith.constant dense<0.000000e+00> : vector<1x7xf32>
    %73 = tpu.matmul %72, %0, %cst_57 {dimension_numbers = #tpu.dot_dimension_numbers<[1], [0], [0], [1], [0, 0, 1, 1], [], []>} : vector<1x32xf32>, vector<32x7xf32>, vector<1x7xf32> -> vector<1x7xf32>
    %74 = arith.addf %73, %1 : vector<1x7xf32>
    %c0_58 = arith.constant 0 : index
    %c0_59 = arith.constant 0 : index
    %c0_60 = arith.constant 0 : index
    %75 = vector.load %arg6[%c0_58, %c0_59, %c0_60] : memref<2x1x7xf32, #tpu.memory_space<vmem>>, vector<1x1x7xf32>
    %76 = vector.shape_cast %75 : vector<1x1x7xf32> to vector<1x7xf32>
    %77 = vector.shape_cast %74 : vector<1x7xf32> to vector<1x1x7xf32>
    tpu.vector_store %arg6[%c0_58, %c0_59, %c0_60], %77 {strides = array<i32>} : memref<2x1x7xf32, #tpu.memory_space<vmem>>, vector<1x1x7xf32>,
    %c1_61 = arith.constant 1 : index
    %c0_62 = arith.constant 0 : index
    %c0_63 = arith.constant 0 : index
    %78 = vector.load %arg0[%c1_61, %c0_62, %c0_63] : memref<2x1x32xf32, #tpu.memory_space<vmem>>, vector<1x1x32xf32>
    %79 = vector.shape_cast %78 : vector<1x1x32xf32> to vector<1x32xf32>
    %c0_64 = arith.constant 0 : index
    %c0_65 = arith.constant 0 : index
    %c0_66 = arith.constant 0 : index
    %80 = vector.load %arg1[%c0_64, %c0_65, %c0_66] : memref<4x32x32xf32, #tpu.memory_space<vmem>>, vector<1x32x32xf32>
    %81 = vector.shape_cast %80 : vector<1x32x32xf32> to vector<32x32xf32>
    %cst_67 = arith.constant dense<0.000000e+00> : vector<1x32xf32>
    %82 = tpu.matmul %79, %81, %cst_67 {dimension_numbers = #tpu.dot_dimension_numbers<[1], [0], [0], [1], [0, 0, 1, 1], [], []>} : vector<1x32xf32>, vector<32x32xf32>, vector<1x32xf32> -> vector<1x32xf32>
    %c0_68 = arith.constant 0 : index
    %c0_69 = arith.constant 0 : index
    %c0_70 = arith.constant 0 : index
    %83 = vector.load %arg2[%c0_68, %c0_69, %c0_70] : memref<4x32x32xf32, #tpu.memory_space<vmem>>, vector<1x32x32xf32>
    %84 = vector.shape_cast %83 : vector<1x32x32xf32> to vector<32x32xf32>
    %cst_71 = arith.constant dense<0.000000e+00> : vector<1x32xf32>
    %85 = tpu.matmul %72, %84, %cst_71 {dimension_numbers = #tpu.dot_dimension_numbers<[1], [0], [0], [1], [0, 0, 1, 1], [], []>} : vector<1x32xf32>, vector<32x32xf32>, vector<1x32xf32> -> vector<1x32xf32>
    %86 = arith.addf %82, %85 : vector<1x32xf32>
    %c0_72 = arith.constant 0 : index
    %c0_73 = arith.constant 0 : index
    %c0_74 = arith.constant 0 : index
    %87 = vector.load %arg3[%c0_72, %c0_73, %c0_74] : memref<4x1x32xf32, #tpu.memory_space<vmem>>, vector<1x1x32xf32>
    %88 = vector.shape_cast %87 : vector<1x1x32xf32> to vector<1x32xf32>
    %89 = arith.addf %86, %88 : vector<1x32xf32>
    %c1_75 = arith.constant 1 : index
    %c0_76 = arith.constant 0 : index
    %c0_77 = arith.constant 0 : index
    %90 = vector.load %arg1[%c1_75, %c0_76, %c0_77] : memref<4x32x32xf32, #tpu.memory_space<vmem>>, vector<1x32x32xf32>
    %91 = vector.shape_cast %90 : vector<1x32x32xf32> to vector<32x32xf32>
    %cst_78 = arith.constant dense<0.000000e+00> : vector<1x32xf32>
    %92 = tpu.matmul %79, %91, %cst_78 {dimension_numbers = #tpu.dot_dimension_numbers<[1], [0], [0], [1], [0, 0, 1, 1], [], []>} : vector<1x32xf32>, vector<32x32xf32>, vector<1x32xf32> -> vector<1x32xf32>
    %c1_79 = arith.constant 1 : index
    %c0_80 = arith.constant 0 : index
    %c0_81 = arith.constant 0 : index
    %93 = vector.load %arg2[%c1_79, %c0_80, %c0_81] : memref<4x32x32xf32, #tpu.memory_space<vmem>>, vector<1x32x32xf32>
    %94 = vector.shape_cast %93 : vector<1x32x32xf32> to vector<32x32xf32>
    %cst_82 = arith.constant dense<0.000000e+00> : vector<1x32xf32>
    %95 = tpu.matmul %72, %94, %cst_82 {dimension_numbers = #tpu.dot_dimension_numbers<[1], [0], [0], [1], [0, 0, 1, 1], [], []>} : vector<1x32xf32>, vector<32x32xf32>, vector<1x32xf32> -> vector<1x32xf32>
    %96 = arith.addf %92, %95 : vector<1x32xf32>
    %c1_83 = arith.constant 1 : index
    %c0_84 = arith.constant 0 : index
    %c0_85 = arith.constant 0 : index
    %97 = vector.load %arg3[%c1_83, %c0_84, %c0_85] : memref<4x1x32xf32, #tpu.memory_space<vmem>>, vector<1x1x32xf32>
    %98 = vector.shape_cast %97 : vector<1x1x32xf32> to vector<1x32xf32>
    %99 = arith.addf %96, %98 : vector<1x32xf32>
    %c2_86 = arith.constant 2 : index
    %c0_87 = arith.constant 0 : index
    %c0_88 = arith.constant 0 : index
    %100 = vector.load %arg1[%c2_86, %c0_87, %c0_88] : memref<4x32x32xf32, #tpu.memory_space<vmem>>, vector<1x32x32xf32>
    %101 = vector.shape_cast %100 : vector<1x32x32xf32> to vector<32x32xf32>
    %cst_89 = arith.constant dense<0.000000e+00> : vector<1x32xf32>
    %102 = tpu.matmul %79, %101, %cst_89 {dimension_numbers = #tpu.dot_dimension_numbers<[1], [0], [0], [1], [0, 0, 1, 1], [], []>} : vector<1x32xf32>, vector<32x32xf32>, vector<1x32xf32> -> vector<1x32xf32>
    %c2_90 = arith.constant 2 : index
    %c0_91 = arith.constant 0 : index
    %c0_92 = arith.constant 0 : index
    %103 = vector.load %arg2[%c2_90, %c0_91, %c0_92] : memref<4x32x32xf32, #tpu.memory_space<vmem>>, vector<1x32x32xf32>
    %104 = vector.shape_cast %103 : vector<1x32x32xf32> to vector<32x32xf32>
    %cst_93 = arith.constant dense<0.000000e+00> : vector<1x32xf32>
    %105 = tpu.matmul %72, %104, %cst_93 {dimension_numbers = #tpu.dot_dimension_numbers<[1], [0], [0], [1], [0, 0, 1, 1], [], []>} : vector<1x32xf32>, vector<32x32xf32>, vector<1x32xf32> -> vector<1x32xf32>
    %106 = arith.addf %102, %105 : vector<1x32xf32>
    %c2_94 = arith.constant 2 : index
    %c0_95 = arith.constant 0 : index
    %c0_96 = arith.constant 0 : index
    %107 = vector.load %arg3[%c2_94, %c0_95, %c0_96] : memref<4x1x32xf32, #tpu.memory_space<vmem>>, vector<1x1x32xf32>
    %108 = vector.shape_cast %107 : vector<1x1x32xf32> to vector<1x32xf32>
    %109 = arith.addf %106, %108 : vector<1x32xf32>
    %c3_97 = arith.constant 3 : index
    %c0_98 = arith.constant 0 : index
    %c0_99 = arith.constant 0 : index
    %110 = vector.load %arg1[%c3_97, %c0_98, %c0_99] : memref<4x32x32xf32, #tpu.memory_space<vmem>>, vector<1x32x32xf32>
    %111 = vector.shape_cast %110 : vector<1x32x32xf32> to vector<32x32xf32>
    %cst_100 = arith.constant dense<0.000000e+00> : vector<1x32xf32>
    %112 = tpu.matmul %79, %111, %cst_100 {dimension_numbers = #tpu.dot_dimension_numbers<[1], [0], [0], [1], [0, 0, 1, 1], [], []>} : vector<1x32xf32>, vector<32x32xf32>, vector<1x32xf32> -> vector<1x32xf32>
    %c3_101 = arith.constant 3 : index
    %c0_102 = arith.constant 0 : index
    %c0_103 = arith.constant 0 : index
    %113 = vector.load %arg2[%c3_101, %c0_102, %c0_103] : memref<4x32x32xf32, #tpu.memory_space<vmem>>, vector<1x32x32xf32>
    %114 = vector.shape_cast %113 : vector<1x32x32xf32> to vector<32x32xf32>
    %cst_104 = arith.constant dense<0.000000e+00> : vector<1x32xf32>
    %115 = tpu.matmul %72, %114, %cst_104 {dimension_numbers = #tpu.dot_dimension_numbers<[1], [0], [0], [1], [0, 0, 1, 1], [], []>} : vector<1x32xf32>, vector<32x32xf32>, vector<1x32xf32> -> vector<1x32xf32>
    %116 = arith.addf %112, %115 : vector<1x32xf32>
    %c3_105 = arith.constant 3 : index
    %c0_106 = arith.constant 0 : index
    %c0_107 = arith.constant 0 : index
    %117 = vector.load %arg3[%c3_105, %c0_106, %c0_107] : memref<4x1x32xf32, #tpu.memory_space<vmem>>, vector<1x1x32xf32>
    %118 = vector.shape_cast %117 : vector<1x1x32xf32> to vector<1x32xf32>
    %119 = arith.addf %116, %118 : vector<1x32xf32>
    %cst_108 = arith.constant 0.000000e+00 : f32
    %120 = vector.broadcast %cst_108 : f32 to vector<1x32xf32>
    %121 = arith.subf %120, %89 : vector<1x32xf32>
    %122 = math.exp %121 : vector<1x32xf32>
    %cst_109 = arith.constant 1.000000e+00 : f32
    %123 = vector.broadcast %cst_109 : f32 to vector<1x32xf32>
    %124 = arith.addf %123, %122 : vector<1x32xf32>
    %cst_110 = arith.constant 1.000000e+00 : f32
    %125 = vector.broadcast %cst_110 : f32 to vector<1x32xf32>
    %126 = arith.divf %125, %124 : vector<1x32xf32>
    %cst_111 = arith.constant 0.000000e+00 : f32
    %127 = vector.broadcast %cst_111 : f32 to vector<1x32xf32>
    %128 = arith.subf %127, %99 : vector<1x32xf32>
    %129 = math.exp %128 : vector<1x32xf32>
    %cst_112 = arith.constant 1.000000e+00 : f32
    %130 = vector.broadcast %cst_112 : f32 to vector<1x32xf32>
    %131 = arith.addf %130, %129 : vector<1x32xf32>
    %cst_113 = arith.constant 1.000000e+00 : f32
    %132 = vector.broadcast %cst_113 : f32 to vector<1x32xf32>
    %133 = arith.divf %132, %131 : vector<1x32xf32>
    %134 = math.tanh %109 : vector<1x32xf32>
    %cst_114 = arith.constant 0.000000e+00 : f32
    %135 = vector.broadcast %cst_114 : f32 to vector<1x32xf32>
    %136 = arith.subf %135, %119 : vector<1x32xf32>
    %137 = math.exp %136 : vector<1x32xf32>
    %cst_115 = arith.constant 1.000000e+00 : f32
    %138 = vector.broadcast %cst_115 : f32 to vector<1x32xf32>
    %139 = arith.addf %138, %137 : vector<1x32xf32>
    %cst_116 = arith.constant 1.000000e+00 : f32
    %140 = vector.broadcast %cst_116 : f32 to vector<1x32xf32>
    %141 = arith.divf %140, %139 : vector<1x32xf32>
    %142 = arith.mulf %133, %70 : vector<1x32xf32>
    %143 = arith.mulf %126, %134 : vector<1x32xf32>
    %144 = arith.addf %142, %143 : vector<1x32xf32>
    %145 = math.tanh %144 : vector<1x32xf32>
    %146 = arith.mulf %141, %145 : vector<1x32xf32>
    %cst_117 = arith.constant dense<0.000000e+00> : vector<1x7xf32>
    %147 = tpu.matmul %146, %0, %cst_117 {dimension_numbers = #tpu.dot_dimension_numbers<[1], [0], [0], [1], [0, 0, 1, 1], [], []>} : vector<1x32xf32>, vector<32x7xf32>, vector<1x7xf32> -> vector<1x7xf32>
    %148 = arith.addf %147, %1 : vector<1x7xf32>
    %c1_118 = arith.constant 1 : index
    %c0_119 = arith.constant 0 : index
    %c0_120 = arith.constant 0 : index
    %149 = vector.load %arg6[%c1_118, %c0_119, %c0_120] : memref<2x1x7xf32, #tpu.memory_space<vmem>>, vector<1x1x7xf32>
    %150 = vector.shape_cast %149 : vector<1x1x7xf32> to vector<1x7xf32>
    %151 = vector.shape_cast %148 : vector<1x7xf32> to vector<1x1x7xf32>
    tpu.vector_store %arg6[%c1_118, %c0_119, %c0_120], %151 {strides = array<i32>} : memref<2x1x7xf32, #tpu.memory_space<vmem>>, vector<1x1x7xf32>,
    return
  }
}

</mosaic_0001>

<bundles_post_ra>
// kernel: deit_lstm_forward.5
= control target key start
LH: loop header
LB: loop body
LE: loop exit
PB: predicated region body
PF: predicated region fallthrough
CT: control target
= control target key end

     0   :  { %vm333_vm0 = vcmask 261120   ;;  %s873_s1 = inlined_call_operand.vmem [shape: f32[768,32], index: 1, kind: input, shape index: {}]   ;;  %s874_s0 = inlined_call_operand.vmem [shape: f32[8,768], index: 0, kind: input, shape index: {}]   ;;  %s875_s2 = inlined_call_operand.vmem [shape: f32[1,32], index: 2, kind: input, shape index: {}]   ;;  %s876_s3 = inlined_call_operand.vmem [shape: f32[8,32], index: 3, kind: output, shape index: {}]  }
   0x1   :  { %v36_v0 = vld [vmem:[%s873_s1 + $0x80] sm:$0xff]  ;;  %v37_v1 = vld [vmem:[%s873_s1 + $0x88] sm:$0xff]  ;;  %v38_v11 = vld [vmem:[%s873_s1 + $0x90] sm:$0xff] }
   0x2   :  { %v20_v2 = vld [vmem:[%s873_s1] sm:$0xff]  ;;  %v445_v3 = vpack.c.bf16 %v37_v1, %v36_v0  ;;  %v21_v4 = vld [vmem:[%s873_s1 + $0x8] sm:$0xff]  ;;  %v39_v13 = vld [vmem:[%s873_s1 + $0x98] sm:$0xff] }
   0x3   :  { %v68_v5 = vld [vmem:[%s873_s1 + $0x180] sm:$0xff]  ;;  %v69_v6 = vld [vmem:[%s873_s1 + $0x188] sm:$0xff]  ;;  %v447_v7 = vpack.c.bf16 %v21_v4, %v20_v2  ;;  %v22_v14 = vld [vmem:[%s873_s1 + $0x10] sm:$0xff]  ;;  %v449_v16 = vpack.c.bf16 %v39_v13, %v38_v11 }
   0x4   :  { %v477_v8 = vpack.c.bf16 %v69_v6, %v68_v5  ;;  %v52_v9 = vld [vmem:[%s873_s1 + $0x100] sm:$0xff]  ;;  %v53_v10 = vld [vmem:[%s873_s1 + $0x108] sm:$0xff]  ;;  %446 = vmatprep.subr.bf16.mxu0 %v445_v3  ;;  %v23_v15 = vld [vmem:[%s873_s1 + $0x18] sm:$0xff] }
   0x5   :  { %v479_v12 = vpack.c.bf16 %v53_v10, %v52_v9  ;;  %448 = vmatpush3.bf16.msra.mxu0 %v447_v7  ;;  %v451_v17 = vpack.c.bf16 %v23_v15, %v22_v14  ;;  %v70_v18 = vld [vmem:[%s873_s1 + $0x190] sm:$0xff]  ;;  %v71_v19 = vld [vmem:[%s873_s1 + $0x198] sm:$0xff]  ;;  %v40_v23 = vld [vmem:[%s873_s1 + $0xa0] sm:$0xff] }
   0x6   :  { %478 = vmatprep.subr.bf16.mxu1 %v477_v8  ;;  %v54_v20 = vld [vmem:[%s873_s1 + $0x110] sm:$0xff]  ;;  %v481_v21 = vpack.c.bf16 %v71_v19, %v70_v18  ;;  %v55_v22 = vld [vmem:[%s873_s1 + $0x118] sm:$0xff]  ;;  %v41_v24 = vld [vmem:[%s873_s1 + $0xa8] sm:$0xff]  ;;  %450 = vmatprep.subr.bf16.mxu0 %v449_v16 }
   0x7   :  { %480 = vmatpush3.bf16.msra.mxu1 %v479_v12  ;;  %v483_v25 = vpack.c.bf16 %v55_v22, %v54_v20  ;;  %v453_v26 = vpack.c.bf16 %v41_v24, %v40_v23  ;;  %v24_v27 = vld [vmem:[%s873_s1 + $0x20] sm:$0xff]  ;;  %v25_v28 = vld [vmem:[%s873_s1 + $0x28] sm:$0xff]  ;;  %v42_v35 = vld [vmem:[%s873_s1 + $0xb0] sm:$0xff] }
   0x8   :  { %v72_v29 = vld [vmem:[%s873_s1 + $0x1a0] sm:$0xff]  ;;  %482 = vmatprep.subr.bf16.mxu1 %v481_v21  ;;  %v73_v30 = vld [vmem:[%s873_s1 + $0x1a8] sm:$0xff]  ;;  %v455_v33 = vpack.c.bf16 %v25_v28, %v24_v27  ;;  %v43_v36 = vld [vmem:[%s873_s1 + $0xb8] sm:$0xff] }
   0x9   :  { %v56_v31 = vld [vmem:[%s873_s1 + $0x120] sm:$0xff]  ;;  %v57_v32 = vld [vmem:[%s873_s1 + $0x128] sm:$0xff]  ;;  %452 = vmatpush3.bf16.msra.mxu0 %v451_v17  ;;  %v485_v34 = vpack.c.bf16 %v73_v30, %v72_v29  ;;  %v26_v37 = vld [vmem:[%s873_s1 + $0x30] sm:$0xff]  ;;  %v457_v39 = vpack.c.bf16 %v43_v36, %v42_v35 }
   0xa   :  { %454 = vmatprep.subr.bf16.mxu0 %v453_v26  ;;  %v487_v38 = vpack.c.bf16 %v57_v32, %v56_v31  ;;  %v27_v40 = vld [vmem:[%s873_s1 + $0x38] sm:$0xff]  ;;  %v74_v41 = vld [vmem:[%s873_s1 + $0x1b0] sm:$0xff]  ;;  %v44_v46 = vld [vmem:[%s873_s1 + $0xc0] sm:$0xff] }
   0xb   :  { %484 = vmatpush3.bf16.msra.mxu1 %v483_v25  ;;  %v75_v42 = vld [vmem:[%s873_s1 + $0x1b8] sm:$0xff]  ;;  %v58_v44 = vld [vmem:[%s873_s1 + $0x130] sm:$0xff]  ;;  %v45_v47 = vld [vmem:[%s873_s1 + $0xc8] sm:$0xff]  ;;  %v459_v48 = vpack.c.bf16 %v27_v40, %v26_v37 }
   0xc   :  { %486 = vmatprep.subr.bf16.mxu1 %v485_v34  ;;  %v489_v43 = vpack.c.bf16 %v75_v42, %v74_v41  ;;  %v59_v45 = vld [vmem:[%s873_s1 + $0x138] sm:$0xff]  ;;  %v76_v49 = vld [vmem:[%s873_s1 + $0x1c0] sm:$0xff]  ;;  %v77_v50 = vld [vmem:[%s873_s1 + $0x1c8] sm:$0xff]  ;;  %v461_v52 = vpack.c.bf16 %v45_v47, %v44_v46 }
   0xd   :  { %456 = vmatpush3.bf16.msra.mxu0 %v455_v33  ;;  %v491_v51 = vpack.c.bf16 %v59_v45, %v58_v44  ;;  %v28_v53 = vld [vmem:[%s873_s1 + $0x40] sm:$0xff]  ;;  %v29_v54 = vld [vmem:[%s873_s1 + $0x48] sm:$0xff]  ;;  %v493_v56 = vpack.c.bf16 %v77_v50, %v76_v49  ;;  %v46_v58 = vld [vmem:[%s873_s1 + $0xd0] sm:$0xff] }
   0xe   :  { %458 = vmatprep.subr.bf16.mxu0 %v457_v39  ;;  %v60_v55 = vld [vmem:[%s873_s1 + $0x140] sm:$0xff]  ;;  %v61_v57 = vld [vmem:[%s873_s1 + $0x148] sm:$0xff]  ;;  %v47_v59 = vld [vmem:[%s873_s1 + $0xd8] sm:$0xff]  ;;  %v463_v62 = vpack.c.bf16 %v29_v54, %v28_v53 }
   0xf   :  { %488 = vmatpush3.bf16.msra.mxu1 %v487_v38  ;;  %v78_v60 = vld [vmem:[%s873_s1 + $0x1d0] sm:$0xff]  ;;  %v79_v61 = vld [vmem:[%s873_s1 + $0x1d8] sm:$0xff]  ;;  %v495_v63 = vpack.c.bf16 %v61_v57, %v60_v55  ;;  %v465_v0 = vpack.c.bf16 %v47_v59, %v46_v58  ;;  %v48_v6 = vld [vmem:[%s873_s1 + $0xe0] sm:$0xff] }
  0x10   :  { %490 = vmatprep.subr.bf16.mxu1 %v489_v43  ;;  %v30_v1 = vld [vmem:[%s873_s1 + $0x50] sm:$0xff]  ;;  %v31_v2 = vld [vmem:[%s873_s1 + $0x58] sm:$0xff]  ;;  %v497_v4 = vpack.c.bf16 %v79_v61, %v78_v60  ;;  %v49_v7 = vld [vmem:[%s873_s1 + $0xe8] sm:$0xff] }
  0x11   :  { %460 = vmatpush3.bf16.msra.mxu0 %v459_v48  ;;  %v62_v3 = vld [vmem:[%s873_s1 + $0x150] sm:$0xff]  ;;  %v63_v5 = vld [vmem:[%s873_s1 + $0x158] sm:$0xff]  ;;  %v80_v8 = vld [vmem:[%s873_s1 + $0x1e0] sm:$0xff]  ;;  %v467_v10 = vpack.c.bf16 %v31_v2, %v30_v1  ;;  %v469_v14 = vpack.c.bf16 %v49_v7, %v48_v6 }
  0x12   :  { %462 = vmatprep.subr.bf16.mxu0 %v461_v52  ;;  %v81_v9 = vld [vmem:[%s873_s1 + $0x1e8] sm:$0xff]  ;;  %v32_v11 = vld [vmem:[%s873_s1 + $0x60] sm:$0xff]  ;;  %v499_v13 = vpack.c.bf16 %v63_v5, %v62_v3  ;;  %v50_v19 = vld [vmem:[%s873_s1 + $0xf0] sm:$0xff] }
  0x13   :  { %492 = vmatpush3.bf16.msra.mxu1 %v491_v51  ;;  %v15_v12 = vld [vmem:[%s874_s0 + $0x8] sm:$0xff]  ;;  %v64_v16 = vld [vmem:[%s873_s1 + $0x160] sm:$0xff]  ;;  %v501_v18 = vpack.c.bf16 %v81_v9, %v80_v8  ;;  %v51_v20 = vld [vmem:[%s873_s1 + $0xf8] sm:$0xff] }
  0x14   :  { %494 = vmatprep.subr.bf16.mxu1 %v493_v56  ;;  %v33_v15 = vld [vmem:[%s873_s1 + $0x68] sm:$0xff]  ;;  %187 = vmatprep.mubr.f32.mxu0 %v15_v12  ;;  %v17_v21 = vld [vmem:[%s874_s0 + $0x18] sm:$0xff]  ;;  %v82_v22 = vld [vmem:[%s873_s1 + $0x1f0] sm:$0xff]  ;;  %v473_v26 = vpack.c.bf16 %v51_v20, %v50_v19 }
  0x15   :  { %464 = vmatpush3.bf16.msra.mxu0 %v463_v62  ;;  %v65_v17 = vld [vmem:[%s873_s1 + $0x168] sm:$0xff]  ;;  %v83_v23 = vld [vmem:[%s873_s1 + $0x1f8] sm:$0xff]  ;;  %257 = vmatprep.mubr.f32.mxu1 %v17_v21  ;;  %v471_v24 = vpack.c.bf16 %v33_v15, %v32_v11  ;;  %v34_v27 = vld [vmem:[%s873_s1 + $0x70] sm:$0xff] }
  0x16   :  { %466 = vmatprep.subr.bf16.mxu0 %v465_v0  ;;  %v503_v25 = vpack.c.bf16 %v65_v17, %v64_v16  ;;  %v35_v28 = vld [vmem:[%s873_s1 + $0x78] sm:$0xff]  ;;  %v66_v29 = vld [vmem:[%s873_s1 + $0x170] sm:$0xff]  ;;  %v505_v30 = vpack.c.bf16 %v83_v23, %v82_v22  ;;  %v100_v32 = vld [vmem:[%s873_s1 + $0x280] sm:$0xff] }
  0x17   :  { %496 = vmatpush3.bf16.msra.mxu1 %v495_v63  ;;  %v67_v31 = vld [vmem:[%s873_s1 + $0x178] sm:$0xff]  ;;  %v101_v33 = vld [vmem:[%s873_s1 + $0x288] sm:$0xff]  ;;  %v475_v34 = vpack.c.bf16 %v35_v28, %v34_v27  ;;  %v84_v37 = vld [vmem:[%s873_s1 + $0x200] sm:$0xff] }
  0x18   :  { %498 = vmatprep.subr.bf16.mxu1 %v497_v4  ;;  %v507_v35 = vpack.c.bf16 %v67_v31, %v66_v29  ;;  %v509_v36 = vpack.c.bf16 %v101_v33, %v100_v32  ;;  %v85_v38 = vld [vmem:[%s873_s1 + $0x208] sm:$0xff]  ;;  %v102_v39 = vld [vmem:[%s873_s1 + $0x290] sm:$0xff]  ;;  %v103_v40 = vld [vmem:[%s873_s1 + $0x298] sm:$0xff] }
  0x19   :  { %468 = vmatpush3.bf16.msra.mxu0 %v467_v10  ;;  %v14_v41 = vld [vmem:[%s874_s0] sm:$0xff]  ;;  %v511_v42 = vpack.c.bf16 %v85_v38, %v84_v37  ;;  %v16_v43 = vld [vmem:[%s874_s0 + $0x10] sm:$0xff]  ;;  %v513_v44 = vpack.c.bf16 %v103_v40, %v102_v39  ;;  %v87_v46 = vld [vmem:[%s873_s1 + $0x218] sm:$0xff] }
  0x1a   :  { %470 = vmatprep.subr.bf16.mxu0 %v469_v14  ;;  %v86_v45 = vld [vmem:[%s873_s1 + $0x210] sm:$0xff]  ;;  %v104_v47 = vld [vmem:[%s873_s1 + $0x2a0] sm:$0xff]  ;;  %v105_v48 = vld [vmem:[%s873_s1 + $0x2a8] sm:$0xff] }
  0x1b   :  { %500 = vmatpush3.bf16.msra.mxu1 %v499_v13  ;;  %v19_v49 = vld [vmem:[%s874_s0 + $0x28] sm:$0xff]  ;;  %v515_v50 = vpack.c.bf16 %v87_v46, %v86_v45  ;;  %v517_v51 = vpack.c.bf16 %v105_v48, %v104_v47  ;;  %v88_v52 = vld [vmem:[%s873_s1 + $0x220] sm:$0xff]  ;;  %v106_v54 = vld [vmem:[%s873_s1 + $0x2b0] sm:$0xff] }
  0x1c   :  { %502 = vmatprep.subr.bf16.mxu1 %v501_v18  ;;  %v89_v53 = vld [vmem:[%s873_s1 + $0x228] sm:$0xff]  ;;  %v107_v55 = vld [vmem:[%s873_s1 + $0x2b8] sm:$0xff]  ;;  %v90_v58 = vld [vmem:[%s873_s1 + $0x230] sm:$0xff] }
  0x1d   :  { %472 = vmatpush3.bf16.msra.mxu0 %v471_v24  ;;  %v519_v56 = vpack.c.bf16 %v89_v53, %v88_v52  ;;  %v521_v57 = vpack.c.bf16 %v107_v55, %v106_v54  ;;  %v91_v59 = vld [vmem:[%s873_s1 + $0x238] sm:$0xff]  ;;  %v108_v60 = vld [vmem:[%s873_s1 + $0x2c0] sm:$0xff]  ;;  %v109_v61 = vld [vmem:[%s873_s1 + $0x2c8] sm:$0xff] }
  0x1e   :  { %474 = vmatprep.subr.bf16.mxu0 %v473_v26  ;;  %v523_v62 = vpack.c.bf16 %v91_v59, %v90_v58  ;;  %v525_v63 = vpack.c.bf16 %v109_v61, %v108_v60  ;;  %v92_v0 = vld [vmem:[%s873_s1 + $0x240] sm:$0xff]  ;;  %v93_v1 = vld [vmem:[%s873_s1 + $0x248] sm:$0xff]  ;;  %v110_v2 = vld [vmem:[%s873_s1 + $0x2d0] sm:$0xff] }
  0x1f   :  { %504 = vmatpush3.bf16.msra.mxu1 %v503_v25  ;;  %v111_v3 = vld [vmem:[%s873_s1 + $0x2d8] sm:$0xff]  ;;  %v527_v4 = vpack.c.bf16 %v93_v1, %v92_v0  ;;  %v94_v6 = vld [vmem:[%s873_s1 + $0x250] sm:$0xff]  ;;  %v112_v8 = vld [vmem:[%s873_s1 + $0x2e0] sm:$0xff] }
  0x20   :  { %506 = vmatprep.subr.bf16.mxu1 %v505_v30  ;;  %v529_v5 = vpack.c.bf16 %v111_v3, %v110_v2  ;;  %v95_v7 = vld [vmem:[%s873_s1 + $0x258] sm:$0xff]  ;;  %v113_v9 = vld [vmem:[%s873_s1 + $0x2e8] sm:$0xff]  ;;  %v96_v12 = vld [vmem:[%s873_s1 + $0x260] sm:$0xff] }
  0x21   :  { %476 = vmatpush3.bf16.msra.mxu0 %v475_v34  ;;  %v531_v10 = vpack.c.bf16 %v95_v7, %v94_v6  ;;  %v533_v11 = vpack.c.bf16 %v113_v9, %v112_v8  ;;  %v97_v13 = vld [vmem:[%s873_s1 + $0x268] sm:$0xff]  ;;  %v114_v14 = vld [vmem:[%s873_s1 + $0x2f0] sm:$0xff]  ;;  %v115_v15 = vld [vmem:[%s873_s1 + $0x2f8] sm:$0xff] }
  0x22   :  { %510 = vmatprep.subr.bf16.mxu0 %v509_v36  ;;  %v535_v16 = vpack.c.bf16 %v97_v13, %v96_v12  ;;  %v537_v17 = vpack.c.bf16 %v115_v15, %v114_v14  ;;  %v98_v18 = vld [vmem:[%s873_s1 + $0x270] sm:$0xff]  ;;  %v99_v19 = vld [vmem:[%s873_s1 + $0x278] sm:$0xff]  ;;  %v18_v21 = vld [vmem:[%s874_s0 + $0x20] sm:$0xff] }
  0x23   :  { %508 = vmatpush3.bf16.msra.mxu1 %v507_v35  ;;  %v539_v20 = vpack.c.bf16 %v99_v19, %v98_v18  ;;  %v339_v23 = vld [vmem:[%s875_s2] ss:$0 sm:$0xff] }
  0x24   :  { %188 = vmatmul.mubr.f32.vlgmr.msra.gmra.mrb[0].mxu0 %v14_v41 }
  0x25   :  { %512 = vmatpush3.bf16.msra.mxu0 %v511_v42  ;;  %327 = vmatprep.mubr.f32.mxu0 %v19_v49 }
  0x26   :  { %258 = vmatmul.mubr.f32.vlgmr.msra.gmra.mrb[0].mxu1 %v16_v43  ;;  %514 = vmatprep.subr.bf16.mxu0 %v513_v44 }
  0x29   :  { %516 = vmatpush3.bf16.msra.mxu0 %v515_v50 }
  0x2a   :  { %518 = vmatprep.subr.bf16.mxu0 %v517_v51 }
  0x2d   :  { %520 = vmatpush3.bf16.msra.mxu0 %v519_v56 }
  0x2e   :  { %522 = vmatprep.subr.bf16.mxu0 %v521_v57 }
  0x31   :  { %524 = vmatpush3.bf16.msra.mxu0 %v523_v62 }
  0x32   :  { %526 = vmatprep.subr.bf16.mxu0 %v525_v63 }
  0x35   :  { %528 = vmatpush3.bf16.msra.mxu0 %v527_v4 }
  0x36   :  { %530 = vmatprep.subr.bf16.mxu0 %v529_v5 }
  0x39   :  { %532 = vmatpush3.bf16.msra.mxu0 %v531_v10 }
  0x3a   :  { %534 = vmatprep.subr.bf16.mxu0 %v533_v11 }
  0x3d   :  { %536 = vmatpush3.bf16.msra.mxu0 %v535_v16 }
  0x3e   :  { %538 = vmatprep.subr.bf16.mxu0 %v537_v17 }
  0x41   :  { %540 = vmatpush3.bf16.msra.mxu0 %v539_v20 }
  0x44   :  { %328 = vmatmul.mubr.f32.vlgmr.msra.gmra.mrb[2].mxu0 %v18_v21 }
  0xf7   :  { %v372_v22 = vpop.f32.mrb[0].mxu0 }
  0xf8   :  { %v373_v24 = vpop.f32.mrb[1].mxu0 }
  0xf9   :  { %v407_v25 = vpop.f32.mrb[0].mxu1  ;;  %v374_v26 = vadd.f32 %v373_v24, %v372_v22 }
  0xfa   :  { %v408_v27 = vpop.f32.mrb[1].mxu1 }
  0xfb   :  { %v409_v28 = vadd.f32 %v408_v27, %v407_v25  ;;  %v190_v29 = vadd.f32 %v374_v26, %v339_v23 }
  0xfd   :  { %v260_v30 = vadd.f32 %v409_v28, %v190_v29 }
 0x117   :  { %v442_v31 = vpop.f32.mrb[2].mxu0 }
 0x118   :  { %v443_v32 = vpop.f32.mrb[3].mxu0 }
 0x119   :  { %v444_v33 = vadd.f32 %v443_v32, %v442_v31 }
 0x11b   :  { %v330_v34 = vadd.f32 %v444_v33, %v260_v30 }
 0x11d   :  { %334 = vst.msk [vmem:[%s876_s3] sm:$0xff] %vm333_vm0, %v330_v34 }

// kernel: deit_lstm_forward.8
= control target key start
LH: loop header
LB: loop body
LE: loop exit
PB: predicated region body
PF: predicated region fallthrough
CT: control target
= control target key end

     0   :  { %vm32_vm0 = vcmask 254976   ;;  %v313_v14 = vmov 0.0|0.0   ;;  %vm314_vm1 = vmmov 0   ;;  %v315_v22 = vmov 0.0   ;;  %s411_s0 = inlined_call_operand.vmem [shape: f32[2,32], index: 0, kind: input, shape index: {}]   ;;  %s412_s1 = inlined_call_operand.vmem [shape: f32[2,32], index: 1, kind: input, shape index: {}]   ;;  %s413_s4 = inlined_call_operand.vmem [shape: f32[32,32], index: 4, kind: input, shape index: {}]   ;;  %s414_s6 = inlined_call_operand.vmem [shape: f32[32,32], index: 6, kind: input, shape index: {}]   ;;  %s415_s2 = inlined_call_operand.vmem [shape: f32[1,32], index: 2, kind: input, shape index: {}]   ;;  %s416_s3 = inlined_call_operand.vmem [shape: f32[1,32], index: 3, kind: input, shape index: {}]   ;;  %s417_s5 = inlined_call_operand.vmem [shape: f32[1,32], index: 5, kind: input, shape index: {}]   ;;  %s418_s7 = inlined_call_operand.vmem [shape: f32[1,32], index: 7, kind: input, shape index: {}]   ;;  %s419_s8 = inlined_call_operand.vmem [shape: f32[2,32], index: 8, kind: output, shape index: {}]  }
   0x1   :  { %v29_v0 = vld [vmem:[%s411_s0] sm:$0x3]  ;;  %291 = vmatprep.subr.bf16.mxu1 %v313_v14  ;;  %v78_v16 = vld [vmem:[%s413_s4 + $0x8] sm:$0xff]  ;;  %297 = vmatprep.subr.bf16.mxu0 %v313_v14  ;;  %v79_v17 = vld [vmem:[%s413_s4 + $0x10] sm:$0xff]  ;;  %vm88_vm2 = vcmask 261120  }
   0x2   :  { %v61_v1 = vld [vmem:[%s412_s1] sm:$0x3]  ;;  %v33_v2 = vsel %vm32_vm0, %v29_v0, 0.0  ;;  %v80_v19 = vld [vmem:[%s413_s4 + $0x18] sm:$0xff]  ;;  %v163_v21 = vld [vmem:[%s414_s6 + $0x8] sm:$0xff]  ;;  %277 = vmatprep.mubr.msk.f32.mxu1 %vm314_vm1, %v315_v22  ;;  %288 = vmatprep.mubr.msk.f32.mxu0 %vm314_vm1, %v315_v22 }
   0x3   :  { %34 = vadd.xlane.f32.xlu0 %v33_v2  ;;  %v62_v3 = vsel %vm32_vm0, %v61_v1, 0.0  ;;  %v77_v15 = vld [vmem:[%s413_s4] sm:$0xff]  ;;  %v295_v24 = vpack.c.bf16 %v80_v19, %v79_v17  ;;  %v164_v25 = vld [vmem:[%s414_s6 + $0x10] sm:$0xff]  ;;  %v165_v26 = vld [vmem:[%s414_s6 + $0x18] sm:$0xff] }
   0x4   :  { %v292_v18 = vpack.c.bf16 %v78_v16, %v77_v15  ;;  %v162_v20 = vld [vmem:[%s414_s6] sm:$0xff]  ;;  %v301_v27 = vpack.c.bf16 %v165_v26, %v164_v25 }
   0x5   :  { %v298_v23 = vpack.c.bf16 %v163_v21, %v162_v20  ;;  %v253_v35 = vld [vmem:[%s415_s2] ss:$0 sm:$0xff] }
   0x6   :  { %293 = vmatpush3.bf16.msra.mxu1 %v292_v18  ;;  %v254_v37 = vld [vmem:[%s416_s3] ss:$0 sm:$0xff] }
   0x7   :  { %63 = vadd.xlane.f32.xlu0 %v62_v3  ;;  %294 = vmatprep.subr.bf16.mxu1 %v313_v14  ;;  %v255_v44 = vld [vmem:[%s417_s5] ss:$0 sm:$0xff] }
   0x8   :  { %299 = vmatpush3.bf16.msra.mxu0 %v298_v23  ;;  %v257_v46 = vld [vmem:[%s418_s7] ss:$0 sm:$0xff] }
   0x9   :  { %300 = vmatprep.subr.bf16.mxu0 %v313_v14 }
   0xa   :  { %296 = vmatpush3.bf16.msra.mxu1 %v295_v24 }
   0xc   :  { %302 = vmatpush3.bf16.msra.mxu0 %v301_v27 }
  0x90   :  { %v35_v4 = vpop.xlane.xlu0 %34 }
  0x91   :  { %v37_v5 = vmul.f32 0.03125, %v35_v4 }
  0x93   :  { %v38_v6 = vsub.f32 %v29_v0, %v37_v5 }
  0x94   :  { %v64_v7 = vpop.xlane.xlu0 %63 }
  0x95   :  { %v65_v8 = vmul.f32 0.03125, %v64_v7  ;;  %v39_v9 = vmul.f32 %v38_v6, %v38_v6 }
  0x97   :  { %v66_v10 = vsub.f32 %v61_v1, %v65_v8  ;;  %v40_v11 = vsel %vm32_vm0, %v39_v9, 0.0 }
  0x98   :  { %41 = vadd.xlane.f32.xlu1 %v40_v11 }
  0x99   :  { %v67_v12 = vmul.f32 %v66_v10, %v66_v10 }
  0x9b   :  { %v68_v13 = vsel %vm32_vm0, %v67_v12, 0.0 }
  0x9c   :  { %69 = vadd.xlane.f32.xlu1 %v68_v13 }
 0x125   :  { %v42_v28 = vpop.xlane.xlu1 %41 }
 0x126   :  { %v43_v29 = vmul.f32 0.03125, %v42_v28 }
 0x128   :  { %v44_v30 = vadd.f32 1e-06, %v43_v29 }
 0x129   :  { %v70_v31 = vpop.xlane.xlu1 %69 }
 0x12a   :  { %309 = vrsqrt.f32 %v44_v30  ;;  %v71_v32 = vmul.f32 0.03125, %v70_v31 }
 0x12c   :  { %v72_v33 = vadd.f32 1e-06, %v71_v32 }
 0x12e   :  { %311 = vrsqrt.f32 %v72_v33 }
 0x134   :  { %v310_v34 = vpop.eup %309 }
 0x135   :  { %v46_v36 = vmul.f32 %v310_v34, %v38_v6 }
 0x137   :  { %v53_v38 = vmul.f32 %v253_v35, %v46_v36 }
 0x138   :  { %v312_v39 = vpop.eup %311 }
 0x139   :  { %v60_v40 = vadd.f32 %v254_v37, %v53_v38  ;;  %v74_v41 = vmul.f32 %v312_v39, %v66_v10 }
 0x13b   :  { %278 = vmatmul.mubr.msk.f32.vlgmr.msra.gmra.mrb[0].mxu1 %vm88_vm2, %v60_v40  ;;  %v75_v42 = vmul.f32 %v253_v35, %v74_v41 }
 0x13d   :  { %v76_v43 = vadd.f32 %v254_v37, %v75_v42 }
 0x13f   :  { %289 = vmatmul.mubr.msk.f32.vlgmr.msra.gmra.mrb[0].mxu0 %vm88_vm2, %v76_v43 }
 0x20e   :  { %v158_v45 = vpop.f32.mrb[0].mxu1 }
 0x20f   :  { %v159_v47 = vadd.f32 %v255_v44, %v158_v45  ;;  %v279_v48 = vpop.f32.mrb[1].mxu1 }
 0x211   :  { %v304_v49 = vadd.f32 %v257_v46, %v159_v47 }
 0x212   :  { %v242_v50 = vpop.f32.mrb[0].mxu0 }
 0x213   :  { %v305_v51 = vadd.f32 %v304_v49, %v242_v50  ;;  %v290_v52 = vpop.f32.mrb[1].mxu0 }
 0x215   :  { %v247_v53 = vmul.f32 0.5, %v305_v51 }
 0x217   :  { %248 = vst.msk [vmem:[%s419_s8] sm:$0x3] %vm32_vm0, %v247_v53 }

// kernel: deit_lstm_forward.9
= control target key start
LH: loop header
LB: loop body
LE: loop exit
PB: predicated region body
PF: predicated region fallthrough
CT: control target
= control target key end

     0   :  { %v1992_v3 = vmov 0.0|0.0   ;;  %vm1993_vm0 = vmmov 0   ;;  %v1994_v11 = vmov 0.0   ;;  %vm38_vm1 = vcmask 261120   ;;  %s2364_s0 = inlined_call_operand.vmem [shape: f32[2,1,32], index: 0, kind: input, shape index: {}]   ;;  %s2365_s1 = inlined_call_operand.vmem [shape: f32[4,32,32], index: 1, kind: input, shape index: {}]   ;;  %s2366_s2 = inlined_call_operand.vmem [shape: f32[4,32,32], index: 2, kind: input, shape index: {}]   ;;  %s2367_s3 = inlined_call_operand.vmem [shape: f32[4,1,32], index: 3, kind: input, shape index: {}]   ;;  %s2368_s4 = inlined_call_operand.vmem [shape: f32[32,7], index: 4, kind: input, shape index: {}]   ;;  %s2369_s5 = inlined_call_operand.vmem [shape: f32[1,7], index: 5, kind: input, shape index: {}]   ;;  %s2370_s6 = inlined_call_operand.hbm [shape: f32[2,1,7], index: 6, kind: output, shape index: {}]  }
   0x1   :  { %v34_v0 = vld [vmem:[%s2366_s2] sm:$0xff]  ;;  %v35_v1 = vld [vmem:[%s2366_s2 + $0x8] sm:$0xff]  ;;  %1822 = vmatprep.subr.bf16.mxu0 %v1992_v3  ;;  %1828 = vmatprep.subr.bf16.mxu1 %v1992_v3  ;;  %v36_v6 = vld [vmem:[%s2366_s2 + $0x10] sm:$0xff] }
   0x2   :  { %v30_v2 = vld [vmem:[%s2365_s1] sm:$0xff]  ;;  %v2044_v4 = vpack.c.bf16 %v35_v1, %v34_v0  ;;  %v31_v5 = vld [vmem:[%s2365_s1 + $0x8] sm:$0xff]  ;;  %v37_v7 = vld [vmem:[%s2366_s2 + $0x18] sm:$0xff]  ;;  %1632 = vmatprep.mubr.msk.f32.mxu0 %vm1993_vm0, %v1994_v11  ;;  %1643 = vmatprep.mubr.msk.f32.mxu1 %vm1993_vm0, %v1994_v11 }
   0x3   :  { %v2055_v8 = vpack.c.bf16 %v31_v5, %v30_v2  ;;  %v32_v9 = vld [vmem:[%s2365_s1 + $0x10] sm:$0xff]  ;;  %v33_v10 = vld [vmem:[%s2365_s1 + $0x18] sm:$0xff]  ;;  %v2068_v12 = vpack.c.bf16 %v37_v7, %v36_v6  ;;  %v1470_v14 = vld [vmem:[%s2366_s2 + $0x20] sm:$0xff] }
   0x4   :  { %1824 = vmatpush3.bf16.msra.mxu0 %v2044_v4  ;;  %v2072_v13 = vpack.c.bf16 %v33_v10, %v32_v9  ;;  %v1471_v15 = vld [vmem:[%s2366_s2 + $0x28] sm:$0xff]  ;;  %v1466_v16 = vld [vmem:[%s2365_s1 + $0x20] sm:$0xff]  ;;  %v1472_v21 = vld [vmem:[%s2366_s2 + $0x30] sm:$0xff] }
   0x5   :  { %1830 = vmatpush3.bf16.msra.mxu1 %v2055_v8  ;;  %1825 = vmatprep.subr.bf16.mxu0 %v1992_v3  ;;  %v1467_v17 = vld [vmem:[%s2365_s1 + $0x28] sm:$0xff]  ;;  %v2088_v18 = vpack.c.bf16 %v1471_v15, %v1470_v14  ;;  %v2094_v19 = vld [vmem:[%s2364_s0] sm:$0x1]  ;;  %v1473_v22 = vld [vmem:[%s2366_s2 + $0x38] sm:$0xff] }
   0x6   :  { %1831 = vmatprep.subr.bf16.mxu1 %v1992_v3  ;;  %v2097_v20 = vpack.c.bf16 %v1467_v17, %v1466_v16  ;;  %v1468_v23 = vld [vmem:[%s2365_s1 + $0x30] sm:$0xff]  ;;  %v1469_v24 = vld [vmem:[%s2365_s1 + $0x38] sm:$0xff]  ;;  %v2116_v25 = vpack.c.bf16 %v1473_v22, %v1472_v21 }
   0x8   :  { %1827 = vmatpush3.bf16.msra.mxu0 %v2068_v12 }
   0x9   :  { %1833 = vmatpush3.bf16.msra.mxu1 %v2072_v13  ;;  %1834 = vmatprep.subr.bf16.mxu0 %v1992_v3 }
   0xa   :  { %1840 = vmatprep.subr.bf16.mxu1 %v1992_v3 }
   0xb   :  { %1633 = vmatmul.mubr.f32.vlgmr.msra.gmra.mrb[0].mxu0 %v1994_v11 }
   0xc   :  { %1644 = vmatmul.mubr.msk.f32.vlgmr.msra.gmra.mrb[0].mxu1 %vm38_vm1, %v2094_v19  ;;  %1836 = vmatpush3.bf16.msra.mxu0 %v2088_v18 }
   0xd   :  { %11 = vsyncpa [#allocation3], 0  ;;  %1842 = vmatpush3.bf16.msra.mxu1 %v2097_v20  ;;  %1837 = vmatprep.subr.bf16.mxu0 %v1992_v3  ;;  %v2120_v26 = vpack.c.bf16 %v1469_v24, %v1468_v23  ;;  %v1480_v27 = vld [vmem:[%s2366_s2 + $0x40] sm:$0xff]  ;;  %v1481_v28 = vld [vmem:[%s2366_s2 + $0x48] sm:$0xff]  ;;  %vm743_vm2 = vcmask 49152  }
   0xe   :  { %1843 = vmatprep.subr.bf16.mxu1 %v1992_v3  ;;  %1654 = vmatprep.mubr.msk.f32.mxu0 %vm1993_vm0, %v1994_v11  ;;  %v1476_v29 = vld [vmem:[%s2365_s1 + $0x40] sm:$0xff]  ;;  %v1477_v30 = vld [vmem:[%s2365_s1 + $0x48] sm:$0xff]  ;;  %v2140_v31 = vpack.c.bf16 %v1481_v28, %v1480_v27  ;;  %v1482_v33 = vld [vmem:[%s2366_s2 + $0x50] sm:$0xff] }
   0xf   :  { %1665 = vmatprep.mubr.msk.f32.mxu1 %vm1993_vm0, %v1994_v11  ;;  %v2144_v32 = vpack.c.bf16 %v1477_v30, %v1476_v29  ;;  %v1483_v34 = vld [vmem:[%s2366_s2 + $0x58] sm:$0xff]  ;;  %v1478_v35 = vld [vmem:[%s2365_s1 + $0x50] sm:$0xff]  ;;  %v1490_v39 = vld [vmem:[%s2366_s2 + $0x60] sm:$0xff] }
  0x10   :  { %1839 = vmatpush3.bf16.msra.mxu0 %v2116_v25  ;;  %v1479_v36 = vld [vmem:[%s2365_s1 + $0x58] sm:$0xff]  ;;  %v2163_v37 = vpack.c.bf16 %v1483_v34, %v1482_v33  ;;  %v1491_v40 = vld [vmem:[%s2366_s2 + $0x68] sm:$0xff]  ;;  %v1486_v41 = vld [vmem:[%s2365_s1 + $0x60] sm:$0xff] }
  0x11   :  { %1845 = vmatpush3.bf16.msra.mxu1 %v2120_v26  ;;  %1846 = vmatprep.subr.bf16.mxu0 %v1992_v3  ;;  %v2167_v38 = vpack.c.bf16 %v1479_v36, %v1478_v35  ;;  %v1487_v42 = vld [vmem:[%s2365_s1 + $0x68] sm:$0xff]  ;;  %v2187_v43 = vpack.c.bf16 %v1491_v40, %v1490_v39  ;;  %v1492_v45 = vld [vmem:[%s2366_s2 + $0x70] sm:$0xff]  ;;  %v1493_v46 = vld [vmem:[%s2366_s2 + $0x78] sm:$0xff] }
  0x12   :  { %1852 = vmatprep.subr.bf16.mxu1 %v1992_v3  ;;  %v2191_v44 = vpack.c.bf16 %v1487_v42, %v1486_v41  ;;  %v1488_v47 = vld [vmem:[%s2365_s1 + $0x70] sm:$0xff]  ;;  %v1489_v48 = vld [vmem:[%s2365_s1 + $0x78] sm:$0xff]  ;;  %v2210_v49 = vpack.c.bf16 %v1493_v46, %v1492_v45  ;;  %v24_v51 = vld [vmem:[%s2368_s4] sm:$0xff] }
  0x13   :  { %1655 = vmatmul.mubr.f32.vlgmr.msra.gmra.mrb[2].mxu0 %v1994_v11  ;;  %v2214_v50 = vpack.c.bf16 %v1489_v48, %v1488_v47  ;;  %v25_v52 = vld [vmem:[%s2368_s4 + $0x8] sm:$0xff]  ;;  %v26_v53 = vld [vmem:[%s2368_s4 + $0x10] sm:$0xff]  ;;  %v27_v55 = vld [vmem:[%s2368_s4 + $0x18] sm:$0xff] }
  0x14   :  { %1666 = vmatmul.mubr.msk.f32.vlgmr.msra.gmra.mrb[2].mxu1 %vm38_vm1, %v2094_v19  ;;  %1848 = vmatpush3.bf16.msra.mxu0 %v2140_v31  ;;  %v2245_v54 = vpack.c.bf16 %v25_v52, %v24_v51  ;;  %v2251_v56 = vpack.c.bf16 %v27_v55, %v26_v53  ;;  %v185_v59 = vld [vmem:[%s2367_s3] sm:$0x1]  ;;  %v1475_v5 = vld [vmem:[%s2367_s3 + $0x1] sm:$0x1]  ;;  %v1485_v17 = vld [vmem:[%s2367_s3 + $0x2] sm:$0x1] }
  0x15   :  { %1854 = vmatpush3.bf16.msra.mxu1 %v2144_v32  ;;  %1849 = vmatprep.subr.bf16.mxu0 %v1992_v3  ;;  %v1495_v30 = vld [vmem:[%s2367_s3 + $0x3] sm:$0x1] }
  0x16   :  { %1855 = vmatprep.subr.bf16.mxu1 %v1992_v3  ;;  %1676 = vmatprep.mubr.msk.f32.mxu0 %vm1993_vm0, %v1994_v11 }
  0x17   :  { %1687 = vmatprep.mubr.msk.f32.mxu1 %vm1993_vm0, %v1994_v11 }
  0x18   :  { %1851 = vmatpush3.bf16.msra.mxu0 %v2163_v37 }
  0x19   :  { %1857 = vmatpush3.bf16.msra.mxu1 %v2167_v38  ;;  %1858 = vmatprep.subr.bf16.mxu0 %v1992_v3 }
  0x1a   :  { %1864 = vmatprep.subr.bf16.mxu1 %v1992_v3 }
  0x1b   :  { %1677 = vmatmul.mubr.f32.vlgmr.msra.gmra.mrb[4].mxu0 %v1994_v11 }
  0x1c   :  { %1688 = vmatmul.mubr.msk.f32.vlgmr.msra.gmra.mrb[4].mxu1 %vm38_vm1, %v2094_v19  ;;  %1860 = vmatpush3.bf16.msra.mxu0 %v2187_v43 }
  0x1d   :  { %1866 = vmatpush3.bf16.msra.mxu1 %v2191_v44  ;;  %1861 = vmatprep.subr.bf16.mxu0 %v1992_v3 }
  0x1e   :  { %1867 = vmatprep.subr.bf16.mxu1 %v1992_v3  ;;  %1698 = vmatprep.mubr.msk.f32.mxu0 %vm1993_vm0, %v1994_v11 }
  0x1f   :  { %1709 = vmatprep.mubr.msk.f32.mxu1 %vm1993_vm0, %v1994_v11 }
  0x20   :  { %1863 = vmatpush3.bf16.msra.mxu0 %v2210_v49 }
  0x21   :  { %1869 = vmatpush3.bf16.msra.mxu1 %v2214_v50  ;;  %1870 = vmatprep.subr.bf16.mxu0 %v1992_v3 }
  0x22   :  { %1876 = vmatprep.subr.bf16.mxu1 %v1992_v3 }
  0x23   :  { %1699 = vmatmul.mubr.f32.vlgmr.msra.gmra.mrb[6].mxu0 %v1994_v11 }
  0x24   :  { %1710 = vmatmul.mubr.msk.f32.vlgmr.msra.gmra.mrb[6].mxu1 %vm38_vm1, %v2094_v19  ;;  %1720 = vmatprep.mubr.msk.f32.mxu0 %vm1993_vm0, %v1994_v11 }
  0x25   :  { %1878 = vmatpush3.bf16.msra.mxu1 %v2044_v4  ;;  %1731 = vmatprep.mubr.msk.f32.mxu1 %vm1993_vm0, %v1994_v11 }
  0x26   :  { %1879 = vmatprep.subr.bf16.mxu1 %v1992_v3  ;;  %1872 = vmatpush3.bf16.msra.mxu0 %v2245_v54 }
  0x27   :  { %1873 = vmatprep.subr.bf16.mxu0 %v1992_v3 }
  0x29   :  { %1881 = vmatpush3.bf16.msra.mxu1 %v2068_v12 }
  0x2a   :  { %1888 = vmatprep.subr.bf16.mxu1 %v1992_v3  ;;  %1875 = vmatpush3.bf16.msra.mxu0 %v2251_v56 }
  0x2b   :  { %1882 = vmatprep.subr.bf16.mxu0 %v1992_v3 }
  0xde   :  { %v108_v57 = vpop.f32.mrb[0].mxu0 }
  0xdf   :  { %v181_v58 = vpop.f32.mrb[0].mxu1  ;;  %v1634_v60 = vpop.f32.mrb[1].mxu0 }
  0xe0   :  { %v182_v61 = vadd.f32 %v181_v58, %v108_v57  ;;  %v1645_v62 = vpop.f32.mrb[1].mxu1 }
  0xe2   :  { %v186_v63 = vadd.f32 %v185_v59, %v182_v61 }
  0xe4   :  { %v646_v0 = vsub.f32 0.0, %v186_v63 }
  0xe6   :  { %v647_v1 = vmul.f32 1.442695, %v646_v0  ;;  %v263_v2 = vpop.f32.mrb[2].mxu0 }
  0xe7   :  { %v333_v4 = vpop.f32.mrb[2].mxu1  ;;  %v1656_v6 = vpop.f32.mrb[3].mxu0 }
  0xe8   :  { %1936 = vpow2.f32 %v647_v1  ;;  %v334_v7 = vadd.f32 %v333_v4, %v263_v2  ;;  %v1667_v9 = vpop.f32.mrb[3].mxu1 }
  0xea   :  { %v339_v10 = vadd.f32 %v1475_v5, %v334_v7  ;;  %v1521_v5 = vld [vmem:[%s2367_s3 + $0x2] sm:$0x1] }
  0xec   :  { %v652_v12 = vsub.f32 0.0, %v339_v10 }
  0xee   :  { %v653_v14 = vmul.f32 1.442695, %v652_v12  ;;  %v416_v15 = vpop.f32.mrb[4].mxu0 }
  0xef   :  { %v486_v16 = vpop.f32.mrb[4].mxu1  ;;  %v1678_v19 = vpop.f32.mrb[5].mxu0 }
  0xf0   :  { %1938 = vpow2.f32 %v653_v14  ;;  %v487_v21 = vadd.f32 %v486_v16, %v416_v15  ;;  %v1689_v22 = vpop.f32.mrb[5].mxu1 }
  0xf2   :  { %v1937_v23 = vpop.eup %1936  ;;  %v492_v24 = vadd.f32 %v1485_v17, %v487_v21  ;;  %v1532_v17 = vld [vmem:[%s2367_s3 + $0x3] sm:$0x1] }
  0xf3   :  { %v649_v27 = vadd.f32 1.0, %v1937_v23 }
  0xf4   :  { %1940 = vtanh.f32 %v492_v24 }
  0xf5   :  { %1942 = vrcp.f32 %v649_v27 }
  0xf6   :  { %v569_v28 = vpop.f32.mrb[6].mxu0 }
  0xf7   :  { %v639_v29 = vpop.f32.mrb[6].mxu1  ;;  %v1700_v33 = vpop.f32.mrb[7].mxu0 }
  0xf8   :  { %v640_v34 = vadd.f32 %v639_v29, %v569_v28  ;;  %v1711_v35 = vpop.f32.mrb[7].mxu1 }
  0xfa   :  { %v1939_v36 = vpop.eup %1938  ;;  %v645_v39 = vadd.f32 %v1495_v30, %v640_v34 }
  0xfb   :  { %v655_v40 = vadd.f32 1.0, %v1939_v36 }
  0xfc   :  { %v659_v41 = vsub.f32 0.0, %v645_v39 }
  0xfd   :  { %1944 = vrcp.f32 %v655_v40 }
  0xfe   :  { %v1941_v42 = vpop.eup %1940  ;;  %v660_v45 = vmul.f32 1.442695, %v659_v41 }
  0xff   :  { %v1943_v46 = vpop.eup %1942 }
 0x100   :  { %v666_v47 = vmul.f32 %v1943_v46, %v1941_v42  ;;  %1946 = vpow2.f32 %v660_v45 }
 0x107   :  { %v1945_v48 = vpop.eup %1944 }
 0x108   :  { %v665_v51 = vmul.f32 0.0, %v1945_v48 }
 0x10a   :  { %v1947_v52 = vpop.eup %1946  ;;  %v2268_v53 = vadd.f32 %v666_v47, %v665_v51 }
 0x10b   :  { %v662_v55 = vadd.f32 1.0, %v1947_v52 }
 0x10c   :  { %1948 = vtanh.f32 %v2268_v53 }
 0x10d   :  { %1950 = vrcp.f32 %v662_v55 }
 0x116   :  { %v1949_v57 = vpop.eup %1948 }
 0x117   :  { %v1951_v58 = vpop.eup %1950 }
 0x118   :  { %v669_v59 = vmul.f32 %v1951_v58, %v1949_v57 }
 0x11a   :  { %1721 = vmatmul.mubr.msk.f32.vlgmr.msra.gmra.mrb[8].mxu0 %vm38_vm1, %v669_v59  ;;  %1732 = vmatmul.mubr.msk.f32.vlgmr.msra.gmra.mrb[8].mxu1 %vm38_vm1, %v669_v59 }
 0x11b   :  { %1884 = vmatpush3.bf16.msra.mxu0 %v2055_v8  ;;  %1890 = vmatpush3.bf16.msra.mxu1 %v2088_v18  ;;  %v1497_v8 = vld [vmem:[%s2364_s0 + $0x1] sm:$0x1] }
 0x11c   :  { %1885 = vmatprep.subr.bf16.mxu0 %v1992_v3  ;;  %1891 = vmatprep.subr.bf16.mxu1 %v1992_v3 }
 0x11d   :  { %1742 = vmatprep.mubr.msk.f32.mxu0 %vm1993_vm0, %v1994_v11  ;;  %1753 = vmatprep.mubr.msk.f32.mxu1 %vm1993_vm0, %v1994_v11 }
 0x11f   :  { %1887 = vmatpush3.bf16.msra.mxu0 %v2072_v13  ;;  %1893 = vmatpush3.bf16.msra.mxu1 %v2116_v25  ;;  %v2332_v13 = vld [vmem:[%s2369_s5] sm:$0x1] }
 0x120   :  { %1894 = vmatprep.subr.bf16.mxu0 %v1992_v3  ;;  %1900 = vmatprep.subr.bf16.mxu1 %v1992_v3 }
 0x122   :  { %1743 = vmatmul.mubr.msk.f32.vlgmr.msra.gmra.mrb[10].mxu0 %vm38_vm1, %v1497_v8  ;;  %1754 = vmatmul.mubr.msk.f32.vlgmr.msra.gmra.mrb[10].mxu1 %vm38_vm1, %v669_v59 }
 0x123   :  { %1896 = vmatpush3.bf16.msra.mxu0 %v2097_v20  ;;  %1902 = vmatpush3.bf16.msra.mxu1 %v2140_v31  ;;  %v898_v31 = vld [vmem:[%s2367_s3] sm:$0x1] }
 0x124   :  { %1897 = vmatprep.subr.bf16.mxu0 %v1992_v3  ;;  %1903 = vmatprep.subr.bf16.mxu1 %v1992_v3 }
 0x125   :  { %1764 = vmatprep.mubr.msk.f32.mxu0 %vm1993_vm0, %v1994_v11  ;;  %1775 = vmatprep.mubr.msk.f32.mxu1 %vm1993_vm0, %v1994_v11 }
 0x127   :  { %1899 = vmatpush3.bf16.msra.mxu0 %v2120_v26  ;;  %1905 = vmatpush3.bf16.msra.mxu1 %v2163_v37 }
 0x128   :  { %1906 = vmatprep.subr.bf16.mxu0 %v1992_v3  ;;  %1912 = vmatprep.subr.bf16.mxu1 %v1992_v3 }
 0x12a   :  { %1765 = vmatmul.mubr.msk.f32.vlgmr.msra.gmra.mrb[12].mxu0 %vm38_vm1, %v1497_v8  ;;  %1776 = vmatmul.mubr.msk.f32.vlgmr.msra.gmra.mrb[12].mxu1 %vm38_vm1, %v669_v59 }
 0x12b   :  { %1908 = vmatpush3.bf16.msra.mxu0 %v2144_v32  ;;  %1914 = vmatpush3.bf16.msra.mxu1 %v2187_v43 }
 0x12c   :  { %1909 = vmatprep.subr.bf16.mxu0 %v1992_v3  ;;  %1915 = vmatprep.subr.bf16.mxu1 %v1992_v3 }
 0x12d   :  { %1786 = vmatprep.mubr.msk.f32.mxu0 %vm1993_vm0, %v1994_v11  ;;  %1797 = vmatprep.mubr.msk.f32.mxu1 %vm1993_vm0, %v1994_v11 }
 0x12f   :  { %1911 = vmatpush3.bf16.msra.mxu0 %v2167_v38  ;;  %1917 = vmatpush3.bf16.msra.mxu1 %v2210_v49 }
 0x130   :  { %1918 = vmatprep.subr.bf16.mxu0 %v1992_v3  ;;  %1924 = vmatprep.subr.bf16.mxu1 %v1992_v3 }
 0x132   :  { %1787 = vmatmul.mubr.msk.f32.vlgmr.msra.gmra.mrb[14].mxu0 %vm38_vm1, %v1497_v8  ;;  %1798 = vmatmul.mubr.msk.f32.vlgmr.msra.gmra.mrb[14].mxu1 %vm38_vm1, %v669_v59 }
 0x133   :  { %1920 = vmatpush3.bf16.msra.mxu0 %v2191_v44  ;;  %1808 = vmatprep.mubr.msk.f32.mxu0 %vm1993_vm0, %v1994_v11 }
 0x134   :  { %1921 = vmatprep.subr.bf16.mxu0 %v1992_v3  ;;  %1926 = vmatpush3.bf16.msra.mxu1 %v2245_v54 }
 0x135   :  { %1927 = vmatprep.subr.bf16.mxu1 %v1992_v3  ;;  %1819 = vmatprep.mubr.msk.f32.mxu1 %vm1993_vm0, %v1994_v11 }
 0x137   :  { %1923 = vmatpush3.bf16.msra.mxu0 %v2214_v50 }
 0x138   :  { %1929 = vmatpush3.bf16.msra.mxu1 %v2251_v56  ;;  %v1510_v56 = vld [vmem:[%s2367_s3 + $0x1] sm:$0x1]  ;;  %s1995_s3 = smov [#allocation2]  }
 0x139   :  { %s1454_s14 = sshll.u32 %s1995_s3, 4  ;;  %s1455_s14 = int_to_ptr.vmem [resolvable:$true] %s1454_s14 }
 0x13a   :  { %1809 = vmatmul.mubr.msk.f32.vlgmr.msra.gmra.mrb[16].mxu0 %vm38_vm1, %v1497_v8  ;;  %s1968_s1 = scalar_lea.vmem %s1455_s14, 32  ;;  %p1973_p1 = scmp.lt.s32.totalorder %s1455_s14, %s1455_s14 }
 0x13b   :  { %p1969_p0 = scmp.ne.s32.totalorder %s1455_s14, %s1968_s1  ;;  %p1974_p2 = scmp.lt.s32.totalorder %s1968_s1, %s1968_s1 }
 0x13d   :  { %p1975_p3 = por %p1974_p2, %p1973_p1 }
 0x13f   :  { %p1976_p4 = pnand %p1975_p3, %p1969_p0 }
 0x1ed   :  { %v739_v18 = vpop.f32.mrb[8].mxu0  ;;  %v821_v20 = vpop.f32.mrb[8].mxu1 }
 0x1ee   :  { %v740_v25 = vadd.f32 %v739_v18, %v2332_v13  ;;  %v1722_v3 = vpop.f32.mrb[9].mxu0  ;;  %v1733_v26 = vpop.f32.mrb[9].mxu1 }
 0x1f0   :  { %744 = vst.msk [vmem:[#allocation2] sm:$0x1] %vm743_vm2, %v740_v25 }
 0x1f5   :  { %v894_v11 = vpop.f32.mrb[10].mxu0  ;;  %v974_v32 = vpop.f32.mrb[10].mxu1 }
 0x1f6   :  { %v895_v37 = vadd.f32 %v894_v11, %v821_v20  ;;  %v1744_v38 = vpop.f32.mrb[11].mxu0  ;;  %v1755_v43 = vpop.f32.mrb[11].mxu1 }
 0x1f8   :  { %v899_v44 = vadd.f32 %v898_v31, %v895_v37 }
 0x1fa   :  { %v1350_v49 = vsub.f32 0.0, %v899_v44 }
 0x1fc   :  { %v1351_v50 = vmul.f32 1.442695, %v1350_v49 }
 0x1fd   :  { %v1044_v54 = vpop.f32.mrb[12].mxu0  ;;  %v1124_v60 = vpop.f32.mrb[12].mxu1 }
 0x1fe   :  { %1952 = vpow2.f32 %v1351_v50  ;;  %v1045_v61 = vadd.f32 %v1044_v54, %v974_v32  ;;  %v1766_v62 = vpop.f32.mrb[13].mxu0  ;;  %v1777_v63 = vpop.f32.mrb[13].mxu1 }
 0x200   :  { %v1049_v0 = vadd.f32 %v1510_v56, %v1045_v61 }
 0x202   :  { %v1356_v1 = vsub.f32 0.0, %v1049_v0 }
 0x204   :  { %v1357_v2 = vmul.f32 1.442695, %v1356_v1 }
 0x205   :  { %v1194_v4 = vpop.f32.mrb[14].mxu0  ;;  %v1274_v6 = vpop.f32.mrb[14].mxu1 }
 0x206   :  { %1954 = vpow2.f32 %v1357_v2  ;;  %v1195_v7 = vadd.f32 %v1194_v4, %v1124_v60  ;;  %v1788_v9 = vpop.f32.mrb[15].mxu0  ;;  %v1799_v10 = vpop.f32.mrb[15].mxu1 }
 0x208   :  { %v1953_v12 = vpop.eup %1952  ;;  %v1199_v14 = vadd.f32 %v1521_v5, %v1195_v7 }
 0x209   :  { %v1353_v15 = vadd.f32 1.0, %v1953_v12 }
 0x20a   :  { %1956 = vtanh.f32 %v1199_v14 }
 0x20b   :  { %1958 = vrcp.f32 %v1353_v15 }
 0x20d   :  { %v1344_v16 = vpop.f32.mrb[16].mxu0 }
 0x20e   :  { %v1345_v19 = vadd.f32 %v1344_v16, %v1274_v6  ;;  %v1810_v21 = vpop.f32.mrb[17].mxu0 }
 0x210   :  { %v1955_v22 = vpop.eup %1954  ;;  %v1349_v23 = vadd.f32 %v1532_v17, %v1345_v19 }
 0x211   :  { %v1359_v24 = vadd.f32 1.0, %v1955_v22 }
 0x212   :  { %v1363_v27 = vsub.f32 0.0, %v1349_v23 }
 0x213   :  { %1960 = vrcp.f32 %v1359_v24 }
 0x214   :  { %v1957_v28 = vpop.eup %1956  ;;  %v1364_v29 = vmul.f32 1.442695, %v1363_v27 }
 0x215   :  { %v1959_v30 = vpop.eup %1958 }
 0x216   :  { %v1370_v33 = vmul.f32 %v1959_v30, %v1957_v28  ;;  %1962 = vpow2.f32 %v1364_v29 }
 0x21d   :  { %v1961_v34 = vpop.eup %1960 }
 0x21e   :  { %v1369_v35 = vmul.f32 %v1961_v34, %v2268_v53 }
 0x220   :  { %v1963_v36 = vpop.eup %1962  ;;  %v1371_v39 = vadd.f32 %v1370_v33, %v1369_v35 }
 0x221   :  { %v1366_v40 = vadd.f32 1.0, %v1963_v36 }
 0x222   :  { %1964 = vtanh.f32 %v1371_v39 }
 0x223   :  { %1966 = vrcp.f32 %v1366_v40 }
 0x22c   :  { %v1965_v41 = vpop.eup %1964 }
 0x22d   :  { %v1967_v42 = vpop.eup %1966 }
 0x22e   :  { %v1373_v45 = vmul.f32 %v1967_v42, %v1965_v41 }
 0x230   :  { %1820 = vmatmul.mubr.msk.f32.vlgmr.msra.gmra.mrb[16].mxu1 %vm38_vm1, %v1373_v45 }
 0x303   :  { %v1443_v46 = vpop.f32.mrb[16].mxu1 }
 0x304   :  { %v1444_v47 = vadd.f32 %v1443_v46, %v2332_v13  ;;  %v1821_v48 = vpop.f32.mrb[17].mxu1 }
 0x306   :  { %1448 = vst.msk [vmem:[#allocation2 + $0x1] sm:$0x1] %vm743_vm2, %v1444_v47 }
 0x307   :  { %1979 = shalt.err (!%p1976_p4)
}
 0x308   :  { %s1980_s16 = scalar_lea.hbm %s2370_s6, 32 }
 0x309   :  { %p1981_p5 = scmp.ne.s32.totalorder %s2370_s6, %s1980_s16  ;;  %p1984_p6 = scmp.lt.u32.totalorder %s1980_s16, %s2370_s6 }
 0x30b   :  { %p1986_p7 = pnand %p1984_p6, %p1981_p5 }
 0x30d   :  { %1989 = shalt.err (!%p1986_p7)
}
 0x30e   :  { %s1996_s21 = smov 16   ;;  %s1997_s22 = smov 1  }
 0x30f   :  { %1460 = dma.vmem_to_hbm [thread:$0]  %s1455_s14, 32, %s2370_s6, [#allocation3], %s1996_s21, %s1996_s21, %s1997_s22  }
 0x310   :  { %1990 = dma.done.wait [#allocation3], 32  }
 0x311   :  { %1991 = vsyncadd [#allocation3], 4294967264 }
 0x312   :  { %1464 = vsyncpa [#allocation3], 1 }

// kernel: deit_lstm_forward.6
= control target key start
LH: loop header
LB: loop body
LE: loop exit
PB: predicated region body
PF: predicated region fallthrough
CT: control target
= control target key end

     0   :  { %vm84_vm0 = vcmask 259072   ;;  %v6477_v10 = vmov 0.0|0.0   ;;  %vm5518_vm1 = vmmov 0   ;;  %v6479_v14 = vmov 0.0   ;;  %s6457_s0 = inlined_call_operand.vmem [shape: f32[2,6,32], index: 0, kind: input, shape index: {}]   ;;  %s6458_s3 = inlined_call_operand.vmem [shape: f32[4,32,8], index: 3, kind: input, shape index: {}]   ;;  %s6459_s1 = inlined_call_operand.vmem [shape: f32[1,32], index: 1, kind: input, shape index: {}]   ;;  %s6460_s4 = inlined_call_operand.vmem [shape: f32[4,32,8], index: 4, kind: input, shape index: {}]   ;;  %s6461_s2 = inlined_call_operand.vmem [shape: f32[1,32], index: 2, kind: input, shape index: {}]   ;;  %s6462_s5 = inlined_call_operand.vmem [shape: f32[4,32,8], index: 5, kind: input, shape index: {}]   ;;  %s6463_s6 = inlined_call_operand.vmem [shape: f32[4,1,8], index: 6, kind: input, shape index: {}]   ;;  %s6464_s7 = inlined_call_operand.vmem [shape: f32[4,1,8], index: 7, kind: input, shape index: {}]   ;;  %s6465_s8 = inlined_call_operand.vmem [shape: f32[4,1,8], index: 8, kind: input, shape index: {}]   ;;  %s6466_s9 = inlined_call_operand.vmem [shape: f32[4,8,32], index: 9, kind: input, shape index: {}]   ;;  %s6467_s10 = inlined_call_operand.vmem [shape: f32[1,32], index: 10, kind: input, shape index: {}]   ;;  %s6468_s13 = inlined_call_operand.vmem [shape: f32[32,128], index: 13, kind: input, shape index: {}]   ;;  %s6469_s15 = inlined_call_operand.vmem [shape: f32[128,32], index: 15, kind: input, shape index: {}]   ;;  %s6470_s11 = inlined_call_operand.vmem [shape: f32[1,32], index: 11, kind: input, shape index: {}]   ;;  %s6471_s12 = inlined_call_operand.vmem [shape: f32[1,32], index: 12, kind: input, shape index: {}]   ;;  %s6472_s14 = inlined_call_operand.vmem [shape: f32[1,128], index: 14, kind: input, shape index: {}]   ;;  %s6473_s16 = inlined_call_operand.vmem [shape: f32[1,32], index: 16, kind: input, shape index: {}]   ;;  %s6474_s17 = inlined_call_operand.vmem [shape: f32[2,6,32], index: 17, kind: output, shape index: {}]  }
   0x1   :  { %6484 = sst [smem:[#allocation5_spill]] %s6457_s0  ;;  %5266 = vmatprep.subr.bf16.mxu0 %v6477_v10  ;;  %4798 = vmatprep.mubr.msk.f32.mxu0 %vm5518_vm1, %v6479_v14  ;;  %v5648_v19 = vld [vmem:[%s6459_s1] ss:$0 sm:$0xff]  ;;  %v200_v22 = vld [vmem:[%s6460_s4 + $0x8] sm:$0xff]  ;;  %vm124_vm2 = vcmask 261120   ;;  %v201_v27 = vld [vmem:[%s6460_s4 + $0x10] sm:$0xff] }
   0x2   :  { %6485 = sst [smem:[#allocation6_spill]] %s6458_s3  ;;  %s6486_s26 = sld [smem:[#allocation5_spill]]  ;;  %4828 = vmatprep.subr.mxu1 %v6479_v14  ;;  %4830 = vmatprep.mubr.msk.f32.mxu1 %vm5518_vm1, %v6479_v14  ;;  %v199_v21 = vld [vmem:[%s6460_s4] sm:$0xff]  ;;  %v202_v28 = vld [vmem:[%s6460_s4 + $0x18] sm:$0xff]  ;;  %v281_v31 = vld [vmem:[%s6462_s5 + $0x8] sm:$0xff]  ;;  %vm361_vm3 = vcmask 64512  }
   0x3   :  { %s6487_s29 = sld [smem:[#allocation6_spill]]  ;;  %v5659_v23 = vld [vmem:[%s6461_s2] ss:$0 sm:$0xff]  ;;  %v5662_v25 = vpack.c.bf16 %v200_v22, %v199_v21  ;;  %v5676_v29 = vpack.c.bf16 %v202_v28, %v201_v27  ;;  %v282_v33 = vld [vmem:[%s6462_s5 + $0x10] sm:$0xff]  ;;  %v283_v34 = vld [vmem:[%s6462_s5 + $0x18] sm:$0xff]  ;;  %vm454_vm4 = vcmask 1045504  }
   0x4   :  { %v280_v30 = vld [vmem:[%s6462_s5] sm:$0xff]  ;;  %v5700_v35 = vpack.c.bf16 %v283_v34, %v282_v33  ;;  %v4410_v54 = vld [vmem:[%s6462_s5 + $0x28] sm:$0xff]  ;;  %v4411_v58 = vld [vmem:[%s6462_s5 + $0x30] sm:$0xff]  ;;  %vm438_vm5 = vcmask 46080   ;;  %vm450_vm6 = vcmask 48128  }
   0x5   :  { %v5688_v32 = vpack.c.bf16 %v281_v31, %v280_v30  ;;  %v5714_v38 = vld [vmem:[%s6463_s6] ss:$0 sm:$0xff]  ;;  %v4412_v59 = vld [vmem:[%s6462_s5 + $0x38] sm:$0xff]  ;;  %v4404_v21 = vld [vmem:[%s6460_s4 + $0x30] sm:$0xff] }
   0x6   :  { %v5719_v39 = vld [vmem:[%s6464_s7] ss:$0 sm:$0xff]  ;;  %v5773_v60 = vpack.c.bf16 %v4412_v59, %v4411_v58  ;;  %v4405_v22 = vld [vmem:[%s6460_s4 + $0x38] sm:$0xff]  ;;  %v5816_v30 = vld [vmem:[%s6463_s6 + $0x1] ss:$0 sm:$0xff] }
   0x7   :  { %v5743_v50 = vld [vmem:[%s6465_s8] ss:$0 sm:$0xff]  ;;  %v5821_v31 = vld [vmem:[%s6464_s7 + $0x1] ss:$0 sm:$0xff] }
   0x8   :  { %v5613_v0 = vld [vmem:[%s6486_s26] sm:$0x3f] }
   0x9   :  { %v85_v1 = vsel %vm84_vm0, %v5613_v0, 0.0  ;;  %v113_v7 = vld [vmem:[%s6487_s29] sm:$0xff]  ;;  %v114_v8 = vld [vmem:[%s6487_s29 + $0x8] sm:$0xff]  ;;  %v115_v11 = vld [vmem:[%s6487_s29 + $0x10] sm:$0xff] }
   0xa   :  { %86 = vadd.xlane.f32.xlu0 %v85_v1  ;;  %v5625_v9 = vpack.c.bf16 %v114_v8, %v113_v7  ;;  %v116_v12 = vld [vmem:[%s6487_s29 + $0x18] sm:$0xff]  ;;  %v4395_v42 = vld [vmem:[%s6487_s29 + $0x20] sm:$0xff]  ;;  %v4396_v43 = vld [vmem:[%s6487_s29 + $0x28] sm:$0xff] }
   0xb   :  { %v5636_v13 = vpack.c.bf16 %v116_v12, %v115_v11  ;;  %v5730_v46 = vpack.c.bf16 %v4396_v43, %v4395_v42  ;;  %v4397_v48 = vld [vmem:[%s6487_s29 + $0x30] sm:$0xff]  ;;  %v4398_v49 = vld [vmem:[%s6487_s29 + $0x38] sm:$0xff]  ;;  %v4409_v53 = vld [vmem:[%s6462_s5 + $0x20] sm:$0xff] }
   0xc   :  { %5268 = vmatpush3.bf16.msra.mxu0 %v5625_v9  ;;  %v5746_v51 = vpack.c.bf16 %v4398_v49, %v4397_v48  ;;  %v5760_v57 = vpack.c.bf16 %v4410_v54, %v4409_v53  ;;  %v5843_v54 = vld [vmem:[%s6466_s9 + $0x8] sm:$0xff]  ;;  %v5850_v59 = vld [vmem:[%s6466_s9] sm:$0xff] }
   0xd   :  { %5269 = vmatprep.subr.bf16.mxu0 %v6477_v10 }
  0x10   :  { %5271 = vmatpush3.bf16.msra.mxu0 %v5636_v13 }
  0x11   :  { %5272 = vmatprep.subr.bf16.mxu0 %v6477_v10 }
  0x97   :  { %v87_v2 = vpop.xlane.xlu0 %86 }
  0x98   :  { %v89_v3 = vmul.f32 0.03125, %v87_v2 }
  0x9a   :  { %v90_v4 = vsub.f32 %v5613_v0, %v89_v3 }
  0x9c   :  { %v91_v5 = vmul.f32 %v90_v4, %v90_v4 }
  0x9e   :  { %v92_v6 = vsel %vm84_vm0, %v91_v5, 0.0 }
  0x9f   :  { %93 = vadd.xlane.f32.xlu0 %v92_v6 }
 0x12c   :  { %v94_v15 = vpop.xlane.xlu0 %93 }
 0x12d   :  { %v95_v16 = vmul.f32 0.03125, %v94_v15  ;;  %v4402_v15 = vld [vmem:[%s6460_s4 + $0x20] sm:$0xff] }
 0x12f   :  { %v96_v17 = vadd.f32 1e-06, %v95_v16  ;;  %v4403_v16 = vld [vmem:[%s6460_s4 + $0x28] sm:$0xff] }
 0x131   :  { %5473 = vrsqrt.f32 %v96_v17 }
 0x13b   :  { %v5474_v18 = vpop.eup %5473 }
 0x13c   :  { %v98_v20 = vmul.f32 %v5474_v18, %v90_v4  ;;  %v5792_v18 = vpack.c.bf16 %v4403_v16, %v4402_v15  ;;  %v4437_v16 = vld [vmem:[%s6462_s5 + $0x40] sm:$0xff] }
 0x13e   :  { %v105_v24 = vmul.f32 %v5648_v19, %v98_v20 }
 0x140   :  { %v5665_v26 = vadd.f32 %v5659_v23, %v105_v24  ;;  %v5802_v24 = vpack.c.bf16 %v4405_v22, %v4404_v21 }
 0x142   :  { %4799 = vmatmul.mubr.msk.f32.vlgmr.msra.gmra.mrb[0].mxu0 %vm124_vm2, %v5665_v26 }
 0x143   :  { %5274 = vmatpush3.bf16.msra.mxu0 %v5662_v25  ;;  %4809 = vmatprep.mubr.msk.f32.mxu0 %vm5518_vm1, %v6479_v14 }
 0x144   :  { %5275 = vmatprep.subr.bf16.mxu0 %v6477_v10 }
 0x147   :  { %5277 = vmatpush3.bf16.msra.mxu0 %v5676_v29 }
 0x148   :  { %5278 = vmatprep.subr.bf16.mxu0 %v6477_v10 }
 0x14a   :  { %4810 = vmatmul.mubr.msk.f32.vlgmr.msra.gmra.mrb[2].mxu0 %vm124_vm2, %v5665_v26 }
 0x14b   :  { %5280 = vmatpush3.bf16.msra.mxu0 %v5688_v32  ;;  %4820 = vmatprep.mubr.msk.f32.mxu0 %vm5518_vm1, %v6479_v14 }
 0x14c   :  { %5281 = vmatprep.subr.bf16.mxu0 %v6477_v10 }
 0x14f   :  { %5283 = vmatpush3.bf16.msra.mxu0 %v5700_v35 }
 0x150   :  { %4823 = vmatprep.subr.mxu0 %v6479_v14 }
 0x152   :  { %4821 = vmatmul.mubr.msk.f32.vlgmr.msra.gmra.mrb[4].mxu0 %vm124_vm2, %v5665_v26 }
 0x153   :  { %4825 = vmatprep.mubr.msk.f32.mxu0 %vm5518_vm1, %v6479_v14 }
 0x215   :  { %v194_v36 = vpop.f32.mrb[0].mxu0 }
 0x216   :  { %v4800_v37 = vpop.f32.mrb[1].mxu0  ;;  %v195_v40 = vadd.f32 %v5714_v38, %v194_v36 }
 0x218   :  { %v198_v47 = vmul.f32 0.35355338, %v195_v40  ;;  %v5828_v40 = vld [vmem:[%s6465_s8 + $0x1] ss:$0 sm:$0xff] }
 0x21d   :  { %v276_v41 = vpop.f32.mrb[2].mxu0 }
 0x21e   :  { %v277_v44 = vadd.f32 %v5719_v39, %v276_v41  ;;  %v4811_v45 = vpop.f32.mrb[3].mxu0 }
 0x220   :  { %4824 = vmatpush3.xpose.msk.msra.mxu0 %vm361_vm3, %v277_v44 }
 0x221   :  { %5284 = vmatprep.subr.bf16.mxu0 %v6477_v10 }
 0x223   :  { %4826 = vmatmul.mubr.msk.f32.vlgmr.msra.gmra.mrb[6].mxu0 %vm361_vm3, %v198_v47 }
 0x224   :  { %5286 = vmatpush3.bf16.msra.mxu0 %v5730_v46  ;;  %4841 = vmatprep.mubr.msk.f32.mxu0 %vm5518_vm1, %v6479_v14 }
 0x225   :  { %v357_v52 = vpop.f32.mrb[4].mxu0  ;;  %5287 = vmatprep.subr.bf16.mxu0 %v6477_v10 }
 0x226   :  { %v358_v55 = vadd.f32 %v5743_v50, %v357_v52  ;;  %v4822_v56 = vpop.f32.mrb[5].mxu0 }
 0x228   :  { %4829 = vmatpush3.msk.msra.mxu1 %vm454_vm4, %v358_v55  ;;  %5289 = vmatpush3.bf16.msra.mxu0 %v5746_v51 }
 0x229   :  { %5296 = vmatprep.subr.bf16.mxu0 %v6477_v10  ;;  %5290 = vmatprep.subr.bf16.mxu1 %v6477_v10 }
 0x22b   :  { %4842 = vmatmul.mubr.msk.f32.vlgmr.msra.gmra.mrb[8].mxu0 %vm124_vm2, %v5665_v26 }
 0x22c   :  { %5298 = vmatpush3.bf16.msra.mxu0 %v5760_v57  ;;  %4863 = vmatprep.mubr.msk.f32.mxu0 %vm5518_vm1, %v6479_v14 }
 0x22d   :  { %5299 = vmatprep.subr.bf16.mxu0 %v6477_v10 }
 0x230   :  { %5301 = vmatpush3.bf16.msra.mxu0 %v5773_v60 }
 0x231   :  { %4876 = vmatprep.subr.mxu0 %v6479_v14 }
 0x233   :  { %4864 = vmatmul.mubr.msk.f32.vlgmr.msra.gmra.mrb[10].mxu0 %vm124_vm2, %v5665_v26 }
 0x234   :  { %4878 = vmatprep.mubr.msk.f32.mxu0 %vm5518_vm1, %v6479_v14  ;;  %4877 = vmatpush3.msra.mxu0 %v5843_v54 }
 0x235   :  { %5302 = vmatprep.subr.bf16.mxu0 %v6477_v10 }
 0x2f6   :  { %v434_v61 = vpop.f32.mrb[6].mxu0 }
 0x2f7   :  { %v4827_v62 = vpop.f32.mrb[7].mxu0  ;;  %v439_v63 = vsel %vm438_vm5, %v434_v61, -inf }
 0x2f8   :  { %440 = vmax.xlane.f32.xlu1 %v439_v63  ;;  %v4431_v62 = vld [vmem:[%s6460_s4 + $0x48] sm:$0xff] }
 0x2fe   :  { %v608_v1 = vpop.f32.mrb[8].mxu0 }
 0x2ff   :  { %v4843_v2 = vpop.f32.mrb[9].mxu0  ;;  %v609_v33 = vadd.f32 %v5816_v30, %v608_v1  ;;  %v4432_v1 = vld [vmem:[%s6460_s4 + $0x50] sm:$0xff] }
 0x300   :  { %v4433_v2 = vld [vmem:[%s6460_s4 + $0x58] sm:$0xff] }
 0x301   :  { %v612_v41 = vmul.f32 0.35355338, %v609_v33  ;;  %v5927_v33 = vld [vmem:[%s6464_s7 + $0x2] ss:$0 sm:$0xff] }
 0x306   :  { %v775_v3 = vpop.f32.mrb[10].mxu0 }
 0x307   :  { %v4865_v4 = vpop.f32.mrb[11].mxu0  ;;  %v776_v42 = vadd.f32 %v5828_v40, %v775_v3  ;;  %v5873_v3 = vpack.c.bf16 %v4433_v2, %v4432_v1 }
 0x308   :  { %v4423_v4 = vld [vmem:[%s6487_s29 + $0x40] sm:$0xff] }
 0x385   :  { %v441_v5 = vpop.xlane.xlu1 %440 }
 0x386   :  { %v442_v6 = vsub.f32 %v434_v61, %v441_v5  ;;  %v4430_v61 = vld [vmem:[%s6460_s4 + $0x40] sm:$0xff]  ;;  %v4424_v5 = vld [vmem:[%s6487_s29 + $0x48] sm:$0xff] }
 0x387   :  { %v5862_v63 = vpack.c.bf16 %v4431_v62, %v4430_v61 }
 0x388   :  { %v443_v7 = vmul.f32 1.442695, %v442_v6  ;;  %v5890_v6 = vpack.c.bf16 %v4424_v5, %v4423_v4 }
 0x38a   :  { %5475 = vpow2.f32 %v443_v7  ;;  %v4425_v7 = vld [vmem:[%s6487_s29 + $0x50] sm:$0xff] }
 0x394   :  { %v5476_v8 = vpop.eup %5475 }
 0x395   :  { %v445_v11 = vsel %vm438_vm5, %v5476_v8, 0.0 }
 0x396   :  { %446 = vadd.xlane.f32.xlu1 %v445_v11 }
 0x423   :  { %v447_v12 = vpop.xlane.xlu1 %446 }
 0x424   :  { %5477 = vrcp.f32 %v447_v12 }
 0x42e   :  { %v5478_v17 = vpop.eup %5477 }
 0x42f   :  { %v449_v20 = vmul.f32 %v5478_v17, %v5476_v8  ;;  %v4426_v8 = vld [vmem:[%s6487_s29 + $0x58] sm:$0xff]  ;;  %v4438_v17 = vld [vmem:[%s6462_s5 + $0x48] sm:$0xff] }
 0x430   :  { %v5900_v15 = vpack.c.bf16 %v4426_v8, %v4425_v7  ;;  %v5912_v22 = vpack.c.bf16 %v4438_v17, %v4437_v16  ;;  %v4450_v16 = vld [vmem:[%s6487_s29 + $0x60] sm:$0xff]  ;;  %v4451_v17 = vld [vmem:[%s6487_s29 + $0x68] sm:$0xff] }
 0x431   :  { %4831 = vmatmul.mubr.msk.f32.vlgmr.msra.gmra.mrb[0].mxu1 %vm450_vm6, %v449_v20 }
 0x432   :  { %5292 = vmatpush3.bf16.msra.mxu1 %v5792_v18  ;;  %4852 = vmatprep.mubr.msk.f32.mxu1 %vm5518_vm1, %v6479_v14 }
 0x433   :  { %5293 = vmatprep.subr.bf16.mxu1 %v6477_v10 }
 0x436   :  { %5295 = vmatpush3.bf16.msra.mxu1 %v5802_v24 }
 0x437   :  { %4866 = vmatprep.subr.mxu1 %v6479_v14 }
 0x439   :  { %4853 = vmatmul.mubr.msk.f32.vlgmr.msra.gmra.mrb[2].mxu1 %vm124_vm2, %v5665_v26 }
 0x43a   :  { %4868 = vmatprep.mubr.msk.f32.mxu1 %vm5518_vm1, %v6479_v14 }
 0x504   :  { %v524_v27 = vpop.f32.mrb[0].mxu1 }
 0x505   :  { %v4832_v28 = vpop.f32.mrb[1].mxu1 }
 0x506   :  { %v4440_v28 = vld [vmem:[%s6462_s5 + $0x58] sm:$0xff] }
 0x50c   :  { %v692_v34 = vpop.f32.mrb[2].mxu1 }
 0x50d   :  { %v693_v36 = vadd.f32 %v5821_v31, %v692_v34  ;;  %v4854_v37 = vpop.f32.mrb[3].mxu1 }
 0x50f   :  { %4867 = vmatpush3.xpose.msk.msra.mxu1 %vm361_vm3, %v693_v36 }
 0x510   :  { %4871 = vmatprep.subr.mxu1 %v6479_v14 }
 0x512   :  { %4869 = vmatmul.mubr.msk.f32.vlgmr.msra.gmra.mrb[4].mxu1 %vm361_vm3, %v612_v41 }
 0x513   :  { %4872 = vmatpush3.msk.msra.mxu1 %vm454_vm4, %v776_v42  ;;  %4873 = vmatprep.mubr.msk.f32.mxu1 %vm5518_vm1, %v6479_v14 }
 0x514   :  { %4881 = vmatprep.subr.mxu1 %v6479_v14 }
 0x5e5   :  { %v851_v43 = vpop.f32.mrb[4].mxu1 }
 0x5e6   :  { %v4870_v44 = vpop.f32.mrb[5].mxu1  ;;  %v855_v45 = vsel %vm438_vm5, %v851_v43, -inf }
 0x5e7   :  { %856 = vmax.xlane.f32.xlu0 %v855_v45  ;;  %v5948_v45 = vld [vmem:[%s6463_s6 + $0x2] ss:$0 sm:$0xff] }
 0x674   :  { %v857_v47 = vpop.xlane.xlu0 %856 }
 0x675   :  { %v858_v48 = vsub.f32 %v851_v43, %v857_v47 }
 0x677   :  { %v859_v49 = vmul.f32 1.442695, %v858_v48 }
 0x679   :  { %5479 = vpow2.f32 %v859_v49 }
 0x683   :  { %v5480_v52 = vpop.eup %5479 }
 0x684   :  { %v861_v53 = vsel %vm438_vm5, %v5480_v52, 0.0 }
 0x685   :  { %862 = vadd.xlane.f32.xlu1 %v861_v53  ;;  %v5955_v53 = vld [vmem:[%s6465_s8 + $0x2] ss:$0 sm:$0xff] }
 0x712   :  { %v863_v55 = vpop.xlane.xlu1 %862 }
 0x713   :  { %5481 = vrcp.f32 %v863_v55 }
 0x71d   :  { %v5482_v56 = vpop.eup %5481 }
 0x71e   :  { %v865_v58 = vmul.f32 %v5482_v56, %v5480_v52 }
 0x720   :  { %4874 = vmatmul.mubr.msk.f32.vlgmr.msra.gmra.mrb[6].mxu1 %vm450_vm6, %v865_v58 }
 0x721   :  { %4882 = vmatpush3.msra.mxu1 %v5850_v59  ;;  %4883 = vmatprep.mubr.msk.f32.mxu1 %vm5518_vm1, %v6479_v14 }
 0x722   :  { %5308 = vmatprep.subr.bf16.mxu1 %v6477_v10 }
 0x724   :  { %4884 = vmatmul.mubr.msk.f32.vlgmr.msra.gmra.mrb[8].mxu1 %vm361_vm3, %v524_v27  ;;  %v4439_v27 = vld [vmem:[%s6462_s5 + $0x50] sm:$0xff] }
 0x725   :  { %5310 = vmatpush3.bf16.msra.mxu1 %v5862_v63  ;;  %4905 = vmatprep.mubr.msk.f32.mxu1 %vm5518_vm1, %v6479_v14  ;;  %v5929_v34 = vpack.c.bf16 %v4440_v28, %v4439_v27  ;;  %v4452_v28 = vld [vmem:[%s6487_s29 + $0x70] sm:$0xff] }
 0x726   :  { %5311 = vmatprep.subr.bf16.mxu1 %v6477_v10 }
 0x729   :  { %5313 = vmatpush3.bf16.msra.mxu1 %v5873_v3 }
 0x72a   :  { %4919 = vmatprep.subr.mxu1 %v6479_v14 }
 0x72c   :  { %4906 = vmatmul.mubr.msk.f32.vlgmr.msra.gmra.mrb[10].mxu1 %vm124_vm2, %v5665_v26 }
 0x72d   :  { %4921 = vmatprep.mubr.msk.f32.mxu1 %vm5518_vm1, %v6479_v14 }
 0x7f3   :  { %v938_v11 = vpop.f32.mrb[6].mxu1 }
 0x7f4   :  { %v4875_v12 = vpop.f32.mrb[7].mxu1  ;;  %4879 = vmatmul.mubr.msk.f32.vlgmr.msra.gmra.mrb[12].mxu0 %vm361_vm3, %v938_v11  ;;  %v5967_v11 = vld [vmem:[%s6466_s9 + $0x10] sm:$0xff] }
 0x7f5   :  { %5304 = vmatpush3.bf16.msra.mxu0 %v5890_v6  ;;  %4894 = vmatprep.mubr.msk.f32.mxu0 %vm5518_vm1, %v6479_v14 }
 0x7f6   :  { %5305 = vmatprep.subr.bf16.mxu0 %v6477_v10 }
 0x7f7   :  { %v1086_v20 = vpop.f32.mrb[8].mxu1 }
 0x7f8   :  { %v4885_v21 = vpop.f32.mrb[9].mxu1 }
 0x7f9   :  { %5307 = vmatpush3.bf16.msra.mxu0 %v5900_v15  ;;  %v5977_v21 = vpack.c.bf16 %v4451_v17, %v4450_v16 }
 0x7fa   :  { %5314 = vmatprep.subr.bf16.mxu0 %v6477_v10 }
 0x7fc   :  { %4895 = vmatmul.mubr.msk.f32.vlgmr.msra.gmra.mrb[14].mxu0 %vm124_vm2, %v5665_v26 }
 0x7fd   :  { %5316 = vmatpush3.bf16.msra.mxu0 %v5912_v22  ;;  %4916 = vmatprep.mubr.msk.f32.mxu0 %vm5518_vm1, %v6479_v14 }
 0x7fe   :  { %5317 = vmatprep.subr.bf16.mxu0 %v6477_v10 }
 0x7ff   :  { %v1253_v36 = vpop.f32.mrb[10].mxu1 }
 0x800   :  { %v1254_v37 = vadd.f32 %v5927_v33, %v1253_v36  ;;  %v4907_v41 = vpop.f32.mrb[11].mxu1  ;;  %v4453_v36 = vld [vmem:[%s6487_s29 + $0x78] sm:$0xff] }
 0x801   :  { %5319 = vmatpush3.bf16.msra.mxu0 %v5929_v34  ;;  %v4464_v41 = vld [vmem:[%s6462_s5 + $0x60] sm:$0xff] }
 0x802   :  { %4920 = vmatpush3.xpose.msk.msra.mxu1 %vm361_vm3, %v1254_v37  ;;  %4929 = vmatprep.subr.mxu0 %v6479_v14  ;;  %v5987_v37 = vpack.c.bf16 %v4453_v36, %v4452_v28 }
 0x803   :  { %4924 = vmatprep.subr.mxu1 %v6479_v14 }
 0x804   :  { %4917 = vmatmul.mubr.msk.f32.vlgmr.msra.gmra.mrb[16].mxu0 %vm124_vm2, %v5665_v26 }
 0x805   :  { %4931 = vmatprep.mubr.msk.f32.mxu0 %vm5518_vm1, %v6479_v14  ;;  %4930 = vmatpush3.msra.mxu0 %v5967_v11 }
 0x806   :  { %5326 = vmatprep.subr.bf16.mxu0 %v6477_v10 }
 0x8c7   :  { %v1013_v42 = vpop.f32.mrb[12].mxu0 }
 0x8c8   :  { %v5943_v43 = vadd.f32 %v1086_v20, %v1013_v42  ;;  %v4880_v44 = vpop.f32.mrb[13].mxu0  ;;  %v4465_v42 = vld [vmem:[%s6462_s5 + $0x68] sm:$0xff] }
 0x8c9   :  { %v5999_v44 = vpack.c.bf16 %v4465_v42, %v4464_v41 }
 0x8cf   :  { %v1169_v47 = vpop.f32.mrb[14].mxu0 }
 0x8d0   :  { %v1170_v48 = vadd.f32 %v5948_v45, %v1169_v47  ;;  %v4896_v49 = vpop.f32.mrb[15].mxu0  ;;  %v4466_v47 = vld [vmem:[%s6462_s5 + $0x70] sm:$0xff] }
 0x8d2   :  { %v1173_v52 = vmul.f32 0.35355338, %v1170_v48  ;;  %v4467_v48 = vld [vmem:[%s6462_s5 + $0x78] sm:$0xff] }
 0x8d3   :  { %v6011_v49 = vpack.c.bf16 %v4467_v48, %v4466_v47 }
 0x8d4   :  { %4922 = vmatmul.mubr.msk.f32.vlgmr.msra.gmra.mrb[12].mxu1 %vm361_vm3, %v1173_v52  ;;  %v4457_v52 = vld [vmem:[%s6460_s4 + $0x60] sm:$0xff] }
 0x8d5   :  { %4926 = vmatprep.mubr.msk.f32.mxu1 %vm5518_vm1, %v6479_v14 }
 0x8d7   :  { %v1336_v55 = vpop.f32.mrb[16].mxu0 }
 0x8d8   :  { %v1337_v56 = vadd.f32 %v5955_v53, %v1336_v55  ;;  %v4918_v58 = vpop.f32.mrb[17].mxu0  ;;  %v4458_v55 = vld [vmem:[%s6460_s4 + $0x68] sm:$0xff] }
 0x8d9   :  { %v4459_v58 = vld [vmem:[%s6460_s4 + $0x70] sm:$0xff] }
 0x8da   :  { %4925 = vmatpush3.msk.msra.mxu1 %vm454_vm4, %v1337_v56  ;;  %v6028_v56 = vpack.c.bf16 %v4458_v55, %v4457_v52 }
 0x8db   :  { %5320 = vmatprep.subr.bf16.mxu1 %v6477_v10 }
 0x9a7   :  { %v1412_v61 = vpop.f32.mrb[12].mxu1 }
 0x9a8   :  { %v4923_v62 = vpop.f32.mrb[13].mxu1  ;;  %v1416_v1 = vsel %vm438_vm5, %v1412_v61, -inf }
 0x9a9   :  { %1417 = vmax.xlane.f32.xlu0 %v1416_v1 }
 0xa36   :  { %v1418_v2 = vpop.xlane.xlu0 %1417 }
 0xa37   :  { %v1419_v4 = vsub.f32 %v1412_v61, %v1418_v2  ;;  %v4460_v61 = vld [vmem:[%s6460_s4 + $0x78] sm:$0xff] }
 0xa38   :  { %v6038_v2 = vpack.c.bf16 %v4460_v61, %v4459_v58 }
 0xa39   :  { %v1420_v5 = vmul.f32 1.442695, %v1419_v4 }
 0xa3b   :  { %5483 = vpow2.f32 %v1420_v5 }
 0xa45   :  { %v5484_v7 = vpop.eup %5483 }
 0xa46   :  { %v1422_v8 = vsel %vm438_vm5, %v5484_v7, 0.0 }
 0xa47   :  { %1423 = vadd.xlane.f32.xlu1 %v1422_v8 }
 0xad4   :  { %v1424_v12 = vpop.xlane.xlu1 %1423 }
 0xad5   :  { %5485 = vrcp.f32 %v1424_v12 }
 0xadf   :  { %v5486_v20 = vpop.eup %5485 }
 0xae0   :  { %v1426_v27 = vmul.f32 %v5486_v20, %v5484_v7  ;;  %v6053_v20 = vld [vmem:[%s6463_s6 + $0x3] ss:$0 sm:$0xff] }
 0xae2   :  { %4927 = vmatmul.mubr.msk.f32.vlgmr.msra.gmra.mrb[14].mxu1 %vm450_vm6, %v1426_v27  ;;  %v6058_v27 = vld [vmem:[%s6464_s7 + $0x3] ss:$0 sm:$0xff] }
 0xae3   :  { %5322 = vmatpush3.bf16.msra.mxu1 %v5977_v21  ;;  %4942 = vmatprep.mubr.msk.f32.mxu1 %vm5518_vm1, %v6479_v14 }
 0xae4   :  { %5323 = vmatprep.subr.bf16.mxu1 %v6477_v10 }
 0xae7   :  { %5325 = vmatpush3.bf16.msra.mxu1 %v5987_v37 }
 0xae8   :  { %5332 = vmatprep.subr.bf16.mxu1 %v6477_v10 }
 0xaea   :  { %4943 = vmatmul.mubr.msk.f32.vlgmr.msra.gmra.mrb[16].mxu1 %vm124_vm2, %v5665_v26 }
 0xaeb   :  { %5334 = vmatpush3.bf16.msra.mxu1 %v5999_v44  ;;  %4964 = vmatprep.mubr.msk.f32.mxu1 %vm5518_vm1, %v6479_v14 }
 0xaec   :  { %5335 = vmatprep.subr.bf16.mxu1 %v6477_v10 }
 0xaef   :  { %5337 = vmatpush3.bf16.msra.mxu1 %v6011_v49 }
 0xaf0   :  { %4977 = vmatprep.subr.mxu1 %v6479_v14 }
 0xaf2   :  { %4965 = vmatmul.mubr.msk.f32.vlgmr.msra.gmra.mrb[18].mxu1 %vm124_vm2, %v5665_v26 }
 0xaf3   :  { %4979 = vmatprep.mubr.msk.f32.mxu1 %vm5518_vm1, %v6479_v14 }
 0xbb5   :  { %v1499_v62 = vpop.f32.mrb[14].mxu1 }
 0xbb6   :  { %v4928_v1 = vpop.f32.mrb[15].mxu1  ;;  %4932 = vmatmul.mubr.msk.f32.vlgmr.msra.gmra.mrb[18].mxu0 %vm361_vm3, %v1499_v62 }
 0xbb7   :  { %5328 = vmatpush3.bf16.msra.mxu0 %v6028_v56  ;;  %4953 = vmatprep.mubr.msk.f32.mxu0 %vm5518_vm1, %v6479_v14 }
 0xbb8   :  { %5329 = vmatprep.subr.bf16.mxu0 %v6477_v10 }
 0xbbb   :  { %5331 = vmatpush3.bf16.msra.mxu0 %v6038_v2 }
 0xbbc   :  { %4967 = vmatprep.subr.mxu0 %v6479_v14 }
 0xbbd   :  { %v1658_v4 = vpop.f32.mrb[16].mxu1 }
 0xbbe   :  { %v4944_v5 = vpop.f32.mrb[17].mxu1  ;;  %4954 = vmatmul.mubr.msk.f32.vlgmr.msra.gmra.mrb[20].mxu0 %vm124_vm2, %v5665_v26  ;;  %v1659_v26 = vadd.f32 %v6053_v20, %v1658_v4 }
 0xbbf   :  { %4969 = vmatprep.mubr.msk.f32.mxu0 %vm5518_vm1, %v6479_v14  ;;  %v6080_v5 = vld [vmem:[%s6466_s9 + $0x18] sm:$0xff] }
 0xbc0   :  { %v1662_v42 = vmul.f32 0.35355338, %v1659_v26  ;;  %4978 = vmatpush3.msra.mxu1 %v6080_v5 }
 0xbc1   :  { %5344 = vmatprep.subr.bf16.mxu1 %v6477_v10 }
 0xbc5   :  { %v1825_v7 = vpop.f32.mrb[18].mxu1 }
 0xbc6   :  { %v4966_v8 = vpop.f32.mrb[19].mxu1 }
 0xc89   :  { %v1574_v12 = vpop.f32.mrb[18].mxu0 }
 0xc8a   :  { %v1578_v16 = vadd.f32 %v1574_v12, %v5943_v43  ;;  %v4933_v17 = vpop.f32.mrb[19].mxu0  ;;  %v6065_v43 = vld [vmem:[%s6465_s8 + $0x3] ss:$0 sm:$0xff] }
 0xc8b   :  { %v1826_v47 = vadd.f32 %v6065_v43, %v1825_v7  ;;  %v6090_v17 = vld [vmem:[%s6486_s26 + $0x8] sm:$0x3f] }
 0xc8c   :  { %v2267_v26 = vsel %vm84_vm0, %v6090_v17, 0.0 }
 0xc91   :  { %v1742_v28 = vpop.f32.mrb[20].mxu0 }
 0xc92   :  { %v1743_v36 = vadd.f32 %v6058_v27, %v1742_v28  ;;  %v4955_v41 = vpop.f32.mrb[21].mxu0 }
 0xc94   :  { %4968 = vmatpush3.xpose.msk.msra.mxu0 %vm361_vm3, %v1743_v36 }
 0xc95   :  { %4972 = vmatprep.subr.mxu0 %v6479_v14 }
 0xc97   :  { %4970 = vmatmul.mubr.msk.f32.vlgmr.msra.gmra.mrb[22].mxu0 %vm361_vm3, %v1662_v42 }
 0xc98   :  { %4973 = vmatpush3.msk.msra.mxu0 %vm454_vm4, %v1826_v47  ;;  %4974 = vmatprep.mubr.msk.f32.mxu0 %vm5518_vm1, %v6479_v14 }
 0xc99   :  { %5338 = vmatprep.subr.bf16.mxu0 %v6477_v10 }
 0xd6a   :  { %v1901_v48 = vpop.f32.mrb[22].mxu0 }
 0xd6b   :  { %v4971_v52 = vpop.f32.mrb[23].mxu0  ;;  %v1905_v55 = vsel %vm438_vm5, %v1901_v48, -inf }
 0xd6c   :  { %1906 = vmax.xlane.f32.xlu0 %v1905_v55 }
 0xdf9   :  { %v1907_v58 = vpop.xlane.xlu0 %1906 }
 0xdfa   :  { %v1908_v61 = vsub.f32 %v1901_v48, %v1907_v58 }
 0xdfc   :  { %v1909_v62 = vmul.f32 1.442695, %v1908_v61 }
 0xdfe   :  { %5487 = vpow2.f32 %v1909_v62  ;;  %v6102_v62 = vld [vmem:[%s6467_s10] ss:$0 sm:$0xff] }
 0xdff   :  { %6488 = vst [vmem:[#allocation2_spill] sm:$0xff] %v6102_v62 }
 0xe08   :  { %v5488_v1 = vpop.eup %5487 }
 0xe09   :  { %v1911_v4 = vsel %vm438_vm5, %v5488_v1, 0.0 }
 0xe0a   :  { %1912 = vadd.xlane.f32.xlu1 %v1911_v4 }
 0xe0e   :  { %2268 = vadd.xlane.f32.xlu1 %v2267_v26 }
 0xe97   :  { %v1913_v7 = vpop.xlane.xlu1 %1912 }
 0xe98   :  { %5489 = vrcp.f32 %v1913_v7 }
 0xe9b   :  { %v2269_v41 = vpop.xlane.xlu1 %2268 }
 0xe9c   :  { %v2270_v42 = vmul.f32 0.03125, %v2269_v41 }
 0xe9e   :  { %v2271_v47 = vsub.f32 %v6090_v17, %v2270_v42  ;;  %v62_v42 = vld [vmem:[%s6468_s13 + $0x10] sm:$0xff] }
 0xea0   :  { %v2272_v48 = vmul.f32 %v2271_v47, %v2271_v47 }
 0xea2   :  { %v5490_v8 = vpop.eup %5489  ;;  %v2273_v52 = vsel %vm84_vm0, %v2272_v48, 0.0  ;;  %v63_v48 = vld [vmem:[%s6468_s13 + $0x18] sm:$0xff] }
 0xea3   :  { %v1915_v12 = vmul.f32 %v5490_v8, %v5488_v1  ;;  %2274 = vadd.xlane.f32.xlu1 %v2273_v52  ;;  %v6128_v52 = vpack.c.bf16 %v63_v48, %v62_v42 }
 0xea5   :  { %4975 = vmatmul.mubr.msk.f32.vlgmr.msra.gmra.mrb[24].mxu0 %vm450_vm6, %v1915_v12 }
 0xea6   :  { %4990 = vmatprep.mubr.msk.f32.mxu0 %vm5518_vm1, %v6479_v14 }
 0xf78   :  { %v1988_v28 = vpop.f32.mrb[24].mxu0 }
 0xf79   :  { %v4976_v36 = vpop.f32.mrb[25].mxu0  ;;  %4980 = vmatmul.mubr.msk.f32.vlgmr.msra.gmra.mrb[20].mxu1 %vm361_vm3, %v1988_v28 }
 0xf7a   :  { %5025 = vmatprep.mubr.msk.f32.mxu1 %vm5518_vm1, %v6479_v14  ;;  %v60_v36 = vld [vmem:[%s6468_s13] sm:$0xff] }
0x104c   :  { %v2063_v55 = vpop.f32.mrb[20].mxu1 }
0x104d   :  { %v2067_v58 = vadd.f32 %v2063_v55, %v1578_v16  ;;  %v4981_v61 = vpop.f32.mrb[21].mxu1  ;;  %v65_v55 = vld [vmem:[%s6469_s15] sm:$0xff] }
0x104e   :  { %v67_v61 = vld [vmem:[%s6469_s15 + $0x10] sm:$0xff] }
0x104f   :  { %v2068_v1 = vadd.f32 %v2067_v58, %v5613_v0  ;;  %v61_v0 = vld [vmem:[%s6468_s13 + $0x8] sm:$0xff] }
0x1050   :  { %v6118_v41 = vpack.c.bf16 %v61_v0, %v60_v36  ;;  %v66_v58 = vld [vmem:[%s6469_s15 + $0x8] sm:$0xff]  ;;  %v2275_v36 = vpop.xlane.xlu1 %2274 }
0x1051   :  { %v6106_v4 = vadd.f32 %v6102_v62, %v2068_v1  ;;  %v6141_v1 = vpack.c.bf16 %v66_v58, %v65_v55  ;;  %v2276_v0 = vmul.f32 0.03125, %v2275_v36 }
0x1052   :  { %5340 = vmatpush3.bf16.msra.mxu0 %v6118_v41 }
0x1053   :  { %v2076_v7 = vsel %vm84_vm0, %v6106_v4, 0.0  ;;  %5341 = vmatprep.subr.bf16.mxu0 %v6477_v10  ;;  %5346 = vmatpush3.bf16.msra.mxu1 %v6141_v1  ;;  %v2277_v55 = vadd.f32 1e-06, %v2276_v0 }
0x1054   :  { %2077 = vadd.xlane.f32.xlu0 %v2076_v7  ;;  %v68_v7 = vld [vmem:[%s6469_s15 + $0x18] sm:$0xff]  ;;  %5347 = vmatprep.subr.bf16.mxu1 %v6477_v10 }
0x1056   :  { %5343 = vmatpush3.bf16.msra.mxu0 %v6128_v52 }
0x1057   :  { %5368 = vmatprep.subr.bf16.mxu0 %v6477_v10 }
0x10e1   :  { %v2078_v8 = vpop.xlane.xlu0 %2077 }
0x10e2   :  { %v2079_v12 = vmul.f32 0.03125, %v2078_v8  ;;  %v6147_v8 = vpack.c.bf16 %v68_v7, %v67_v61  ;;  %v6165_v7 = vld [vmem:[%s6470_s11] ss:$0 sm:$0xff] }
0x10e3   :  { %6489 = vst [vmem:[#allocation3_spill] sm:$0xff] %v6165_v7 }
0x10e4   :  { %v2080_v26 = vsub.f32 %v6106_v4, %v2079_v12  ;;  %v69_v12 = vld [vmem:[%s6469_s15 + $0x20] sm:$0xff]  ;;  %5349 = vmatpush3.bf16.msra.mxu1 %v6147_v8 }
0x10e5   :  { %5350 = vmatprep.subr.bf16.mxu1 %v6477_v10 }
0x10e6   :  { %v2081_v16 = vmul.f32 %v2080_v26, %v2080_v26 }
0x10e8   :  { %v2082_v28 = vsel %vm84_vm0, %v2081_v16, 0.0  ;;  %v70_v16 = vld [vmem:[%s6469_s15 + $0x28] sm:$0xff] }
0x10e9   :  { %2083 = vadd.xlane.f32.xlu0 %v2082_v28  ;;  %v6157_v28 = vpack.c.bf16 %v70_v16, %v69_v12 }
0x10eb   :  { %5352 = vmatpush3.bf16.msra.mxu1 %v6157_v28 }
0x10ec   :  { %5353 = vmatprep.subr.bf16.mxu1 %v6477_v10  ;;  %v6170_v10 = vld [vmem:[%s6471_s12] ss:$0 sm:$0xff] }
0x10ed   :  { %6490 = vst [vmem:[#allocation4_spill] sm:$0xff] %v6170_v10 }
0x1176   :  { %v2084_v42 = vpop.xlane.xlu0 %2083 }
0x1177   :  { %v2085_v48 = vmul.f32 0.03125, %v2084_v42 }
0x1179   :  { %v2086_v58 = vadd.f32 1e-06, %v2085_v48  ;;  %v6491_v48 = vmov 0.0|0.0  }
0x117b   :  { %5491 = vrsqrt.f32 %v2086_v58  ;;  %v77_v58 = vld [vmem:[%s6469_s15 + $0x60] sm:$0xff] }
0x117c   :  { %5493 = vrsqrt.f32 %v2277_v55 }
0x1185   :  { %v5492_v61 = vpop.eup %5491 }
0x1186   :  { %v2088_v12 = vmul.f32 %v5492_v61, %v2080_v26  ;;  %v5494_v16 = vpop.eup %5493  ;;  %v78_v61 = vld [vmem:[%s6469_s15 + $0x68] sm:$0xff] }
0x1187   :  { %v2279_v42 = vmul.f32 %v5494_v16, %v2271_v47  ;;  %v79_v16 = vld [vmem:[%s6469_s15 + $0x70] sm:$0xff] }
0x1188   :  { %v2095_v36 = vmul.f32 %v6165_v7, %v2088_v12  ;;  %v6241_v12 = vpack.c.bf16 %v78_v61, %v77_v58 }
0x1189   :  { %v2280_v26 = vmul.f32 %v5648_v19, %v2279_v42 }
0x118a   :  { %v2102_v0 = vadd.f32 %v6170_v10, %v2095_v36  ;;  %v80_v36 = vld [vmem:[%s6469_s15 + $0x78] sm:$0xff] }
0x118b   :  { %v6182_v55 = vadd.f32 %v5659_v23, %v2280_v26  ;;  %v73_v23 = vld [vmem:[%s6469_s15 + $0x40] sm:$0xff]  ;;  %v6251_v42 = vpack.c.bf16 %v80_v36, %v79_v16 }
0x118c   :  { %4991 = vmatmul.mubr.msk.f32.vlgmr.msra.gmra.mrb[26].mxu0 %vm124_vm2, %v2102_v0  ;;  %v6258_v0 = vld [vmem:[%s6472_s14] ss:$0 sm:$0xff] }
0x118d   :  { %5370 = vmatpush3.bf16.msra.mxu0 %v5625_v9  ;;  %5036 = vmatprep.mubr.msk.f32.mxu0 %vm5518_vm1, %v6479_v14  ;;  %v71_v9 = vld [vmem:[%s6469_s15 + $0x30] sm:$0xff] }
0x118e   :  { %5371 = vmatprep.subr.bf16.mxu0 %v6491_v48 }
0x1191   :  { %5373 = vmatpush3.bf16.msra.mxu0 %v5636_v13  ;;  %v72_v13 = vld [vmem:[%s6469_s15 + $0x38] sm:$0xff] }
0x1192   :  { %5374 = vmatprep.subr.bf16.mxu0 %v6491_v48  ;;  %v6211_v19 = vpack.c.bf16 %v72_v13, %v71_v9 }
0x1194   :  { %5037 = vmatmul.mubr.msk.f32.vlgmr.msra.gmra.mrb[28].mxu0 %vm124_vm2, %v6182_v55  ;;  %5355 = vmatpush3.bf16.msra.mxu1 %v6211_v19 }
0x1195   :  { %5376 = vmatpush3.bf16.msra.mxu0 %v5662_v25  ;;  %5047 = vmatprep.mubr.msk.f32.mxu0 %vm5518_vm1, %v6479_v14  ;;  %v74_v25 = vld [vmem:[%s6469_s15 + $0x48] sm:$0xff] }
0x1196   :  { %5377 = vmatprep.subr.bf16.mxu0 %v6491_v48  ;;  %5356 = vmatprep.subr.bf16.mxu1 %v6491_v48 }
0x1199   :  { %5379 = vmatpush3.bf16.msra.mxu0 %v5676_v29  ;;  %v6221_v29 = vpack.c.bf16 %v74_v25, %v73_v23 }
0x119a   :  { %5380 = vmatprep.subr.bf16.mxu0 %v6491_v48 }
0x119b   :  { %5358 = vmatpush3.bf16.msra.mxu1 %v6221_v29 }
0x119c   :  { %5048 = vmatmul.mubr.msk.f32.vlgmr.msra.gmra.mrb[30].mxu0 %vm124_vm2, %v6182_v55  ;;  %5359 = vmatprep.subr.bf16.mxu1 %v6491_v48 }
0x119d   :  { %5382 = vmatpush3.bf16.msra.mxu0 %v5688_v32  ;;  %5058 = vmatprep.mubr.msk.f32.mxu0 %vm5518_vm1, %v6479_v14  ;;  %v75_v32 = vld [vmem:[%s6469_s15 + $0x50] sm:$0xff] }
0x119e   :  { %5383 = vmatprep.subr.bf16.mxu0 %v6491_v48 }
0x11a1   :  { %5385 = vmatpush3.bf16.msra.mxu0 %v5700_v35  ;;  %v76_v35 = vld [vmem:[%s6469_s15 + $0x58] sm:$0xff] }
0x11a2   :  { %5061 = vmatprep.subr.mxu0 %v6479_v14  ;;  %v6231_v47 = vpack.c.bf16 %v76_v35, %v75_v32 }
0x11a4   :  { %5059 = vmatmul.mubr.msk.f32.vlgmr.msra.gmra.mrb[32].mxu0 %vm124_vm2, %v6182_v55  ;;  %5361 = vmatpush3.bf16.msra.mxu1 %v6231_v47 }
0x11a5   :  { %5063 = vmatprep.mubr.msk.f32.mxu0 %vm5518_vm1, %v6479_v14  ;;  %5362 = vmatprep.subr.bf16.mxu1 %v6491_v48 }
0x11a8   :  { %5364 = vmatpush3.bf16.msra.mxu1 %v6241_v12 }
0x11a9   :  { %5365 = vmatprep.subr.bf16.mxu1 %v6491_v48 }
0x11ac   :  { %5367 = vmatpush3.bf16.msra.mxu1 %v6251_v42 }
0x11ad   :  { %5066 = vmatprep.subr.mxu1 %v6479_v14 }
0x125f   :  { %v2178_v26 = vpop.f32.mrb[26].mxu0 }
0x1260   :  { %v2179_v9 = vadd.f32 %v6258_v0, %v2178_v26  ;;  %v4992_v13 = vpop.f32.mrb[27].mxu0  ;;  %v6492_v26 = vmov 0.0  }
0x1262   :  { %v2183_v23 = vmul.f32 0.70710677, %v2179_v9  ;;  %v2182_v58 = vmul.f32 0.5, %v2179_v9 }
0x1264   :  { %5495 = verf.f32 %v2183_v23 }
0x1267   :  { %v2362_v25 = vpop.f32.mrb[28].mxu0 }
0x1268   :  { %v5038_v32 = vpop.f32.mrb[29].mxu0  ;;  %v2363_v16 = vadd.f32 %v5714_v38, %v2362_v25 }
0x126a   :  { %v2366_v62 = vmul.f32 0.35355338, %v2363_v16 }
0x126e   :  { %v5496_v35 = vpop.eup %5495 }
0x126f   :  { %v2185_v61 = vadd.f32 1.0, %v5496_v35  ;;  %v2444_v36 = vpop.f32.mrb[30].mxu0 }
0x1270   :  { %v2445_v14 = vadd.f32 %v5719_v39, %v2444_v36  ;;  %v5049_v10 = vpop.f32.mrb[31].mxu0  ;;  %v6294_v39 = vld [vmem:[%s6473_s16] ss:$0 sm:$0xff] }
0x1271   :  { %v2186_v7 = vmul.f32 %v2185_v61, %v2182_v58 }
0x1272   :  { %5062 = vmatpush3.xpose.msk.msra.mxu0 %vm361_vm3, %v2445_v14 }
0x1273   :  { %5026 = vmatmul.mubr.f32.vlgmr.msra.gmra.mrb[22].mxu1 %v2186_v7  ;;  %5386 = vmatprep.subr.bf16.mxu0 %v6491_v48 }
0x1274   :  { %5068 = vmatprep.mubr.msk.f32.mxu1 %vm5518_vm1, %v6492_v26 }
0x1275   :  { %5064 = vmatmul.mubr.msk.f32.vlgmr.msra.gmra.mrb[34].mxu0 %vm361_vm3, %v2366_v62 }
0x1276   :  { %5388 = vmatpush3.bf16.msra.mxu0 %v5730_v46  ;;  %5079 = vmatprep.mubr.msk.f32.mxu0 %vm5518_vm1, %v6492_v26 }
0x1277   :  { %v2525_v38 = vpop.f32.mrb[32].mxu0  ;;  %5389 = vmatprep.subr.bf16.mxu0 %v6491_v48 }
0x1278   :  { %v2526_v10 = vadd.f32 %v5743_v50, %v2525_v38  ;;  %v5060_v14 = vpop.f32.mrb[33].mxu0 }
0x127a   :  { %5067 = vmatpush3.msk.msra.mxu1 %vm454_vm4, %v2526_v10  ;;  %5391 = vmatpush3.bf16.msra.mxu0 %v5746_v51 }
0x127b   :  { %5398 = vmatprep.subr.bf16.mxu0 %v6491_v48  ;;  %5392 = vmatprep.subr.bf16.mxu1 %v6491_v48 }
0x127d   :  { %5080 = vmatmul.mubr.msk.f32.vlgmr.msra.gmra.mrb[36].mxu0 %vm124_vm2, %v6182_v55 }
0x127e   :  { %5400 = vmatpush3.bf16.msra.mxu0 %v5760_v57  ;;  %5101 = vmatprep.mubr.msk.f32.mxu0 %vm5518_vm1, %v6492_v26 }
0x127f   :  { %5401 = vmatprep.subr.bf16.mxu0 %v6491_v48 }
0x1282   :  { %5403 = vmatpush3.bf16.msra.mxu0 %v5773_v60 }
0x1283   :  { %5114 = vmatprep.subr.mxu0 %v6492_v26 }
0x1285   :  { %5102 = vmatmul.mubr.msk.f32.vlgmr.msra.gmra.mrb[38].mxu0 %vm124_vm2, %v6182_v55 }
0x1286   :  { %5115 = vmatpush3.msra.mxu0 %v5843_v54  ;;  %5116 = vmatprep.mubr.msk.f32.mxu0 %vm5518_vm1, %v6492_v26 }
0x1287   :  { %5404 = vmatprep.subr.bf16.mxu0 %v6491_v48 }
0x1346   :  { %v2259_v46 = vpop.f32.mrb[22].mxu1 }
0x1347   :  { %v2260_v50 = vadd.f32 %v6294_v39, %v2259_v46  ;;  %v5027_v51 = vpop.f32.mrb[23].mxu1 }
0x1348   :  { %v2601_v57 = vpop.f32.mrb[34].mxu0 }
0x1349   :  { %v2263_v60 = vadd.f32 %v2260_v50, %v6106_v4  ;;  %v5065_v62 = vpop.f32.mrb[35].mxu0  ;;  %v2605_v54 = vsel %vm438_vm5, %v2601_v57, -inf }
0x134a   :  { %2606 = vmax.xlane.f32.xlu0 %v2605_v54 }
0x134b   :  { %2264 = vst.msk [vmem:[%s6474_s17] sm:$0x3f] %vm84_vm0, %v2263_v60 }
0x1350   :  { %v2770_v7 = vpop.f32.mrb[36].mxu0 }
0x1351   :  { %v5081_v9 = vpop.f32.mrb[37].mxu0  ;;  %v2771_v14 = vadd.f32 %v5816_v30, %v2770_v7 }
0x1353   :  { %v2774_v51 = vmul.f32 0.35355338, %v2771_v14 }
0x1358   :  { %v2933_v13 = vpop.f32.mrb[38].mxu0 }
0x1359   :  { %v5103_v23 = vpop.f32.mrb[39].mxu0 }
0x13d7   :  { %v2607_v25 = vpop.xlane.xlu0 %2606 }
0x13d8   :  { %v2608_v32 = vsub.f32 %v2601_v57, %v2607_v25 }
0x13da   :  { %v2609_v35 = vmul.f32 1.442695, %v2608_v32 }
0x13dc   :  { %5497 = vpow2.f32 %v2609_v35 }
0x13e6   :  { %v5498_v58 = vpop.eup %5497 }
0x13e7   :  { %v2611_v4 = vsel %vm438_vm5, %v5498_v58, 0.0 }
0x13e8   :  { %2612 = vadd.xlane.f32.xlu1 %v2611_v4 }
0x1475   :  { %v2613_v61 = vpop.xlane.xlu1 %2612 }
0x1476   :  { %5499 = vrcp.f32 %v2613_v61 }
0x1480   :  { %v5500_v16 = vpop.eup %5499 }
0x1481   :  { %v2615_v36 = vmul.f32 %v5500_v16, %v5498_v58 }
0x1483   :  { %5069 = vmatmul.mubr.msk.f32.vlgmr.msra.gmra.mrb[24].mxu1 %vm450_vm6, %v2615_v36 }
0x1484   :  { %5394 = vmatpush3.bf16.msra.mxu1 %v5792_v18  ;;  %5090 = vmatprep.mubr.msk.f32.mxu1 %vm5518_vm1, %v6492_v26 }
0x1485   :  { %5395 = vmatprep.subr.bf16.mxu1 %v6491_v48 }
0x1488   :  { %5397 = vmatpush3.bf16.msra.mxu1 %v5802_v24  ;;  %v2934_v24 = vadd.f32 %v5828_v40, %v2933_v13 }
0x1489   :  { %5104 = vmatprep.subr.mxu1 %v6492_v26 }
0x148b   :  { %5091 = vmatmul.mubr.msk.f32.vlgmr.msra.gmra.mrb[26].mxu1 %vm124_vm2, %v6182_v55 }
0x148c   :  { %5106 = vmatprep.mubr.msk.f32.mxu1 %vm5518_vm1, %v6492_v26 }
0x1556   :  { %v2688_v38 = vpop.f32.mrb[24].mxu1 }
0x1557   :  { %v5070_v10 = vpop.f32.mrb[25].mxu1 }
0x155e   :  { %v2852_v18 = vpop.f32.mrb[26].mxu1 }
0x155f   :  { %v2853_v46 = vadd.f32 %v5821_v31, %v2852_v18  ;;  %v5092_v50 = vpop.f32.mrb[27].mxu1 }
0x1561   :  { %5105 = vmatpush3.xpose.msk.msra.mxu1 %vm361_vm3, %v2853_v46 }
0x1562   :  { %5109 = vmatprep.subr.mxu1 %v6492_v26 }
0x1564   :  { %5107 = vmatmul.mubr.msk.f32.vlgmr.msra.gmra.mrb[28].mxu1 %vm361_vm3, %v2774_v51 }
0x1565   :  { %5110 = vmatpush3.msk.msra.mxu1 %vm454_vm4, %v2934_v24  ;;  %5111 = vmatprep.mubr.msk.f32.mxu1 %vm5518_vm1, %v6492_v26 }
0x1566   :  { %5119 = vmatprep.subr.mxu1 %v6492_v26 }
0x1637   :  { %v3009_v30 = vpop.f32.mrb[28].mxu1 }
0x1638   :  { %v5108_v57 = vpop.f32.mrb[29].mxu1  ;;  %v3013_v31 = vsel %vm438_vm5, %v3009_v30, -inf }
0x1639   :  { %3014 = vmax.xlane.f32.xlu0 %v3013_v31 }
0x16c6   :  { %v3015_v60 = vpop.xlane.xlu0 %3014 }
0x16c7   :  { %v3016_v62 = vsub.f32 %v3009_v30, %v3015_v60 }
0x16c9   :  { %v3017_v54 = vmul.f32 1.442695, %v3016_v62 }
0x16cb   :  { %5501 = vpow2.f32 %v3017_v54 }
0x16d5   :  { %v5502_v7 = vpop.eup %5501 }
0x16d6   :  { %v3019_v40 = vsel %vm438_vm5, %v5502_v7, 0.0 }
0x16d7   :  { %3020 = vadd.xlane.f32.xlu1 %v3019_v40 }
0x1764   :  { %v3021_v9 = vpop.xlane.xlu1 %3020 }
0x1765   :  { %5503 = vrcp.f32 %v3021_v9 }
0x176f   :  { %v5504_v13 = vpop.eup %5503 }
0x1770   :  { %v3023_v23 = vmul.f32 %v5504_v13, %v5502_v7 }
0x1772   :  { %5112 = vmatmul.mubr.msk.f32.vlgmr.msra.gmra.mrb[30].mxu1 %vm450_vm6, %v3023_v23 }
0x1773   :  { %5120 = vmatpush3.msra.mxu1 %v5850_v59  ;;  %5121 = vmatprep.mubr.msk.f32.mxu1 %vm5518_vm1, %v6492_v26 }
0x1774   :  { %5410 = vmatprep.subr.bf16.mxu1 %v6491_v48 }
0x1776   :  { %5122 = vmatmul.mubr.msk.f32.vlgmr.msra.gmra.mrb[32].mxu1 %vm361_vm3, %v2688_v38 }
0x1777   :  { %5412 = vmatpush3.bf16.msra.mxu1 %v5862_v63  ;;  %5143 = vmatprep.mubr.msk.f32.mxu1 %vm5518_vm1, %v6492_v26 }
0x1778   :  { %5413 = vmatprep.subr.bf16.mxu1 %v6491_v48 }
0x177b   :  { %5415 = vmatpush3.bf16.msra.mxu1 %v5873_v3 }
0x177c   :  { %5157 = vmatprep.subr.mxu1 %v6492_v26 }
0x177e   :  { %5144 = vmatmul.mubr.msk.f32.vlgmr.msra.gmra.mrb[34].mxu1 %vm124_vm2, %v6182_v55 }
0x177f   :  { %5159 = vmatprep.mubr.msk.f32.mxu1 %vm5518_vm1, %v6492_v26 }
0x1845   :  { %v3096_v59 = vpop.f32.mrb[30].mxu1 }
0x1846   :  { %v5113_v25 = vpop.f32.mrb[31].mxu1  ;;  %5117 = vmatmul.mubr.msk.f32.vlgmr.msra.gmra.mrb[40].mxu0 %vm361_vm3, %v3096_v59 }
0x1847   :  { %5406 = vmatpush3.bf16.msra.mxu0 %v5890_v6  ;;  %5132 = vmatprep.mubr.msk.f32.mxu0 %vm5518_vm1, %v6492_v26 }
0x1848   :  { %5407 = vmatprep.subr.bf16.mxu0 %v6491_v48 }
0x1849   :  { %v3243_v63 = vpop.f32.mrb[32].mxu1 }
0x184a   :  { %v5123_v3 = vpop.f32.mrb[33].mxu1 }
0x184b   :  { %5409 = vmatpush3.bf16.msra.mxu0 %v5900_v15 }
0x184c   :  { %5416 = vmatprep.subr.bf16.mxu0 %v6491_v48 }
0x184e   :  { %5133 = vmatmul.mubr.msk.f32.vlgmr.msra.gmra.mrb[42].mxu0 %vm124_vm2, %v6182_v55 }
0x184f   :  { %5418 = vmatpush3.bf16.msra.mxu0 %v5912_v22  ;;  %5154 = vmatprep.mubr.msk.f32.mxu0 %vm5518_vm1, %v6492_v26 }
0x1850   :  { %5419 = vmatprep.subr.bf16.mxu0 %v6491_v48 }
0x1851   :  { %v3406_v6 = vpop.f32.mrb[34].mxu1 }
0x1852   :  { %v3407_v32 = vadd.f32 %v5927_v33, %v3406_v6  ;;  %v5145_v35 = vpop.f32.mrb[35].mxu1 }
0x1853   :  { %5421 = vmatpush3.bf16.msra.mxu0 %v5929_v34 }
0x1854   :  { %5158 = vmatpush3.xpose.msk.msra.mxu1 %vm361_vm3, %v3407_v32  ;;  %5167 = vmatprep.subr.mxu0 %v6492_v26 }
0x1855   :  { %5162 = vmatprep.subr.mxu1 %v6492_v26 }
0x1856   :  { %5155 = vmatmul.mubr.msk.f32.vlgmr.msra.gmra.mrb[44].mxu0 %vm124_vm2, %v6182_v55 }
0x1857   :  { %5168 = vmatpush3.msra.mxu0 %v5967_v11  ;;  %5169 = vmatprep.mubr.msk.f32.mxu0 %vm5518_vm1, %v6492_v26 }
0x1858   :  { %5428 = vmatprep.subr.bf16.mxu0 %v6491_v48 }
0x1919   :  { %v3170_v15 = vpop.f32.mrb[40].mxu0 }
0x191a   :  { %v3244_v22 = vadd.f32 %v3243_v63, %v3170_v15  ;;  %v5118_v33 = vpop.f32.mrb[41].mxu0 }
0x1921   :  { %v3324_v34 = vpop.f32.mrb[42].mxu0 }
0x1922   :  { %v3325_v58 = vadd.f32 %v5948_v45, %v3324_v34  ;;  %v5134_v4 = vpop.f32.mrb[43].mxu0 }
0x1923   :  { %v6494_v4 = vld [vmem:[#allocation3_spill] sm:$0xff] }
0x1924   :  { %v3328_v61 = vmul.f32 0.35355338, %v3325_v58 }
0x1926   :  { %5160 = vmatmul.mubr.msk.f32.vlgmr.msra.gmra.mrb[36].mxu1 %vm361_vm3, %v3328_v61  ;;  %v6495_v61 = vld [vmem:[#allocation4_spill] sm:$0xff] }
0x1927   :  { %5164 = vmatprep.mubr.msk.f32.mxu1 %vm5518_vm1, %v6492_v26 }
0x1929   :  { %v3487_v16 = vpop.f32.mrb[44].mxu0 }
0x192a   :  { %v3488_v11 = vadd.f32 %v5955_v53, %v3487_v16  ;;  %v5156_v36 = vpop.f32.mrb[45].mxu0 }
0x192c   :  { %5163 = vmatpush3.msk.msra.mxu1 %vm454_vm4, %v3488_v11 }
0x192d   :  { %5422 = vmatprep.subr.bf16.mxu1 %v6491_v48 }
0x19f9   :  { %v3563_v38 = vpop.f32.mrb[36].mxu1 }
0x19fa   :  { %v5161_v10 = vpop.f32.mrb[37].mxu1  ;;  %v3567_v14 = vsel %vm438_vm5, %v3563_v38, -inf }
0x19fb   :  { %3568 = vmax.xlane.f32.xlu0 %v3567_v14 }
0x1a88   :  { %v3569_v45 = vpop.xlane.xlu0 %3568 }
0x1a89   :  { %v3570_v18 = vsub.f32 %v3563_v38, %v3569_v45 }
0x1a8b   :  { %v3571_v46 = vmul.f32 1.442695, %v3570_v18 }
0x1a8d   :  { %5505 = vpow2.f32 %v3571_v46 }
0x1a97   :  { %v5506_v50 = vpop.eup %5505 }
0x1a98   :  { %v3573_v51 = vsel %vm438_vm5, %v5506_v50, 0.0 }
0x1a99   :  { %3574 = vadd.xlane.f32.xlu1 %v3573_v51 }
0x1b26   :  { %v3575_v24 = vpop.xlane.xlu1 %3574 }
0x1b27   :  { %5507 = vrcp.f32 %v3575_v24 }
0x1b31   :  { %v5508_v53 = vpop.eup %5507 }
0x1b32   :  { %v3577_v30 = vmul.f32 %v5508_v53, %v5506_v50 }
0x1b34   :  { %5165 = vmatmul.mubr.msk.f32.vlgmr.msra.gmra.mrb[38].mxu1 %vm450_vm6, %v3577_v30 }
0x1b35   :  { %5424 = vmatpush3.bf16.msra.mxu1 %v5977_v21  ;;  %5180 = vmatprep.mubr.msk.f32.mxu1 %vm5518_vm1, %v6492_v26 }
0x1b36   :  { %5425 = vmatprep.subr.bf16.mxu1 %v6491_v48 }
0x1b39   :  { %5427 = vmatpush3.bf16.msra.mxu1 %v5987_v37 }
0x1b3a   :  { %5434 = vmatprep.subr.bf16.mxu1 %v6491_v48 }
0x1b3c   :  { %5181 = vmatmul.mubr.msk.f32.vlgmr.msra.gmra.mrb[40].mxu1 %vm124_vm2, %v6182_v55 }
0x1b3d   :  { %5436 = vmatpush3.bf16.msra.mxu1 %v5999_v44  ;;  %5202 = vmatprep.mubr.msk.f32.mxu1 %vm5518_vm1, %v6492_v26 }
0x1b3e   :  { %5437 = vmatprep.subr.bf16.mxu1 %v6491_v48 }
0x1b41   :  { %5439 = vmatpush3.bf16.msra.mxu1 %v6011_v49 }
0x1b42   :  { %5215 = vmatprep.subr.mxu1 %v6492_v26 }
0x1b44   :  { %5203 = vmatmul.mubr.msk.f32.vlgmr.msra.gmra.mrb[42].mxu1 %vm124_vm2, %v6182_v55 }
0x1b45   :  { %5216 = vmatpush3.msra.mxu1 %v6080_v5  ;;  %5217 = vmatprep.mubr.msk.f32.mxu1 %vm5518_vm1, %v6492_v26 }
0x1b46   :  { %5446 = vmatprep.subr.bf16.mxu1 %v6491_v48 }
0x1c07   :  { %v3650_v21 = vpop.f32.mrb[38].mxu1 }
0x1c08   :  { %v5166_v37 = vpop.f32.mrb[39].mxu1  ;;  %5170 = vmatmul.mubr.msk.f32.vlgmr.msra.gmra.mrb[46].mxu0 %vm361_vm3, %v3650_v21 }
0x1c09   :  { %5430 = vmatpush3.bf16.msra.mxu0 %v6028_v56  ;;  %5191 = vmatprep.mubr.msk.f32.mxu0 %vm5518_vm1, %v6492_v26 }
0x1c0a   :  { %5431 = vmatprep.subr.bf16.mxu0 %v6491_v48 }
0x1c0d   :  { %5433 = vmatpush3.bf16.msra.mxu0 %v6038_v2 }
0x1c0e   :  { %5205 = vmatprep.subr.mxu0 %v6492_v26 }
0x1c0f   :  { %v3806_v44 = vpop.f32.mrb[40].mxu1 }
0x1c10   :  { %v5182_v49 = vpop.f32.mrb[41].mxu1  ;;  %5192 = vmatmul.mubr.msk.f32.vlgmr.msra.gmra.mrb[48].mxu0 %vm124_vm2, %v6182_v55  ;;  %v3807_v62 = vadd.f32 %v6053_v20, %v3806_v44 }
0x1c11   :  { %5207 = vmatprep.mubr.msk.f32.mxu0 %vm5518_vm1, %v6492_v26 }
0x1c12   :  { %v3810_v40 = vmul.f32 0.35355338, %v3807_v62 }
0x1c17   :  { %v3969_v5 = vpop.f32.mrb[42].mxu1 }
0x1c18   :  { %v5204_v57 = vpop.f32.mrb[43].mxu1  ;;  %v3970_v55 = vadd.f32 %v6065_v43, %v3969_v5 }
0x1cdb   :  { %v3724_v56 = vpop.f32.mrb[46].mxu0 }
0x1cdc   :  { %v3728_v31 = vadd.f32 %v3724_v56, %v3244_v22  ;;  %v5171_v60 = vpop.f32.mrb[47].mxu0 }
0x1ce3   :  { %v3888_v54 = vpop.f32.mrb[48].mxu0 }
0x1ce4   :  { %v3889_v2 = vadd.f32 %v6058_v27, %v3888_v54  ;;  %v5193_v7 = vpop.f32.mrb[49].mxu0 }
0x1ce6   :  { %5206 = vmatpush3.xpose.msk.msra.mxu0 %vm361_vm3, %v3889_v2 }
0x1ce7   :  { %5210 = vmatprep.subr.mxu0 %v6492_v26 }
0x1ce9   :  { %5208 = vmatmul.mubr.msk.f32.vlgmr.msra.gmra.mrb[50].mxu0 %vm361_vm3, %v3810_v40 }
0x1cea   :  { %5211 = vmatpush3.msk.msra.mxu0 %vm454_vm4, %v3970_v55  ;;  %5212 = vmatprep.mubr.msk.f32.mxu0 %vm5518_vm1, %v6492_v26 }
0x1ceb   :  { %5440 = vmatprep.subr.bf16.mxu0 %v6491_v48 }
0x1dbc   :  { %v4045_v20 = vpop.f32.mrb[50].mxu0 }
0x1dbd   :  { %v5209_v9 = vpop.f32.mrb[51].mxu0  ;;  %v4049_v27 = vsel %vm438_vm5, %v4045_v20, -inf }
0x1dbe   :  { %4050 = vmax.xlane.f32.xlu0 %v4049_v27 }
0x1e4b   :  { %v4051_v13 = vpop.xlane.xlu0 %4050 }
0x1e4c   :  { %v4052_v23 = vsub.f32 %v4045_v20, %v4051_v13 }
0x1e4e   :  { %v4053_v59 = vmul.f32 1.442695, %v4052_v23 }
0x1e50   :  { %5509 = vpow2.f32 %v4053_v59 }
0x1e5a   :  { %v5510_v25 = vpop.eup %5509 }
0x1e5b   :  { %v4055_v43 = vsel %vm438_vm5, %v5510_v25, 0.0 }
0x1e5c   :  { %4056 = vadd.xlane.f32.xlu1 %v4055_v43 }
0x1ee9   :  { %v4057_v63 = vpop.xlane.xlu1 %4056 }
0x1eea   :  { %5511 = vrcp.f32 %v4057_v63 }
0x1ef4   :  { %v5512_v3 = vpop.eup %5511 }
0x1ef5   :  { %v4059_v6 = vmul.f32 %v5512_v3, %v5510_v25 }
0x1ef7   :  { %5213 = vmatmul.mubr.msk.f32.vlgmr.msra.gmra.mrb[52].mxu0 %vm450_vm6, %v4059_v6 }
0x1ef8   :  { %5442 = vmatpush3.bf16.msra.mxu0 %v6118_v41  ;;  %5228 = vmatprep.mubr.msk.f32.mxu0 %vm5518_vm1, %v6492_v26 }
0x1ef9   :  { %5443 = vmatprep.subr.bf16.mxu0 %v6491_v48 }
0x1efc   :  { %5445 = vmatpush3.bf16.msra.mxu0 %v6128_v52 }
0x1fca   :  { %v4132_v32 = vpop.f32.mrb[52].mxu0 }
0x1fcb   :  { %v5214_v35 = vpop.f32.mrb[53].mxu0  ;;  %5218 = vmatmul.mubr.msk.f32.vlgmr.msra.gmra.mrb[44].mxu1 %vm361_vm3, %v4132_v32 }
0x1fcc   :  { %5448 = vmatpush3.bf16.msra.mxu1 %v6141_v1  ;;  %5263 = vmatprep.mubr.msk.f32.mxu1 %vm5518_vm1, %v6492_v26 }
0x1fcd   :  { %5449 = vmatprep.subr.bf16.mxu1 %v6491_v48 }
0x1fd0   :  { %5451 = vmatpush3.bf16.msra.mxu1 %v6147_v8 }
0x1fd1   :  { %5452 = vmatprep.subr.bf16.mxu1 %v6491_v48 }
0x1fd4   :  { %5454 = vmatpush3.bf16.msra.mxu1 %v6157_v28  ;;  %v6493_v28 = vld [vmem:[#allocation2_spill] sm:$0xff] }
0x1fd5   :  { %5455 = vmatprep.subr.bf16.mxu1 %v6491_v48 }
0x1fd8   :  { %5457 = vmatpush3.bf16.msra.mxu1 %v6211_v19 }
0x1fd9   :  { %5458 = vmatprep.subr.bf16.mxu1 %v6491_v48 }
0x1fdc   :  { %5460 = vmatpush3.bf16.msra.mxu1 %v6221_v29 }
0x1fdd   :  { %5461 = vmatprep.subr.bf16.mxu1 %v6491_v48 }
0x1fe0   :  { %5463 = vmatpush3.bf16.msra.mxu1 %v6231_v47 }
0x1fe1   :  { %5464 = vmatprep.subr.bf16.mxu1 %v6491_v48 }
0x1fe4   :  { %5466 = vmatpush3.bf16.msra.mxu1 %v6241_v12 }
0x1fe5   :  { %5467 = vmatprep.subr.bf16.mxu1 %v6491_v48 }
0x1fe8   :  { %5469 = vmatpush3.bf16.msra.mxu1 %v6251_v42 }
0x209e   :  { %v4206_v41 = vpop.f32.mrb[44].mxu1 }
0x209f   :  { %v4210_v52 = vadd.f32 %v4206_v41, %v3728_v31  ;;  %v5219_v1 = vpop.f32.mrb[45].mxu1 }
0x20a1   :  { %v4211_v8 = vadd.f32 %v6090_v17, %v4210_v52 }
0x20a3   :  { %v4212_v19 = vadd.f32 %v6493_v28, %v4211_v8 }
0x20a5   :  { %v4213_v29 = vsel %vm84_vm0, %v4212_v19, 0.0 }
0x20a6   :  { %4214 = vadd.xlane.f32.xlu0 %v4213_v29 }
0x2133   :  { %v4215_v26 = vpop.xlane.xlu0 %4214 }
0x2134   :  { %v4216_v47 = vmul.f32 0.03125, %v4215_v26 }
0x2136   :  { %v4217_v15 = vsub.f32 %v4212_v19, %v4216_v47 }
0x2138   :  { %v4218_v22 = vmul.f32 %v4217_v15, %v4217_v15 }
0x213a   :  { %v4219_v12 = vsel %vm84_vm0, %v4218_v22, 0.0 }
0x213b   :  { %4220 = vadd.xlane.f32.xlu1 %v4219_v12 }
0x21c8   :  { %v4221_v48 = vpop.xlane.xlu1 %4220 }
0x21c9   :  { %v4222_v33 = vmul.f32 0.03125, %v4221_v48 }
0x21cb   :  { %v4223_v42 = vadd.f32 1e-06, %v4222_v33 }
0x21cd   :  { %5513 = vrsqrt.f32 %v4223_v42 }
0x21d7   :  { %v5514_v34 = vpop.eup %5513 }
0x21d8   :  { %v4225_v58 = vmul.f32 %v5514_v34, %v4217_v15 }
0x21da   :  { %v4226_v17 = vmul.f32 %v6494_v4, %v4225_v58 }
0x21dc   :  { %v4227_v16 = vadd.f32 %v6495_v61, %v4226_v17 }
0x21de   :  { %5229 = vmatmul.mubr.msk.f32.vlgmr.msra.gmra.mrb[54].mxu0 %vm124_vm2, %v4227_v16 }
0x22b1   :  { %v4297_v11 = vpop.f32.mrb[54].mxu0 }
0x22b2   :  { %v4298_v36 = vadd.f32 %v6258_v0, %v4297_v11  ;;  %v5230_v38 = vpop.f32.mrb[55].mxu0 }
0x22b4   :  { %v4302_v10 = vmul.f32 0.70710677, %v4298_v36  ;;  %v4301_v45 = vmul.f32 0.5, %v4298_v36 }
0x22b6   :  { %5515 = verf.f32 %v4302_v10 }
0x22c0   :  { %v5516_v14 = vpop.eup %5515 }
0x22c1   :  { %v4304_v18 = vadd.f32 1.0, %v5516_v14 }
0x22c3   :  { %v4305_v46 = vmul.f32 %v4304_v18, %v4301_v45 }
0x22c5   :  { %5264 = vmatmul.mubr.f32.vlgmr.msra.gmra.mrb[46].mxu1 %v4305_v46 }
0x2398   :  { %v4372_v50 = vpop.f32.mrb[46].mxu1 }
0x2399   :  { %v4373_v51 = vadd.f32 %v6294_v39, %v4372_v50  ;;  %v5265_v24 = vpop.f32.mrb[47].mxu1 }
0x239b   :  { %v4376_v53 = vadd.f32 %v4373_v51, %v4212_v19 }
0x239d   :  { %4577 = vst.msk [vmem:[%s6474_s17 + $0x8] sm:$0x3f] %vm84_vm0, %v4376_v53 }

</bundles_post_ra>
